<compile_context>
chip_gen: v7x
topology: tpu7x:2x2x1
jax: 0.10.0
libtpu: 0.0.40
codegen_flags: <defaults>
</compile_context>

<pallas_src>
import functools
import math

import jax
import jax.numpy as jnp
from jax.experimental import pallas as pl
from jax.experimental.pallas import tpu as pltpu

_VMEM_LIMIT = 32 * 1024 * 1024      # explicit scoped-VMEM budget (v7x-safe)
_NEG_INF = -1e30                    # finite "-inf" so online softmax never NaNs
_LN_EPS = 1e-5


# ----------------------------- tiling helpers -------------------------------

def _round_up(x, m):
    return (x + m - 1) // m * m


def _pick_tile(full):
    """Largest of (512, 256, 128) dividing `full`, else the full dim."""
    for c in (512, 256, 128):
        if full % c == 0:
            return c
    return full


def _pick_m_tile(m):
    return min(256, _round_up(m, 8))


def _pad_rows(x, m_pad):
    m = x.shape[0]
    if m_pad == m:
        return x
    return jnp.pad(x, ((0, m_pad - m), (0, 0)))


def _cparams(dims):
    return pltpu.CompilerParams(dimension_semantics=dims,
                                vmem_limit_bytes=_VMEM_LIMIT)


def _layernorm_rows(y, g, b, eps):
    mu = jnp.mean(y, axis=-1, keepdims=True)
    var = jnp.mean(jnp.square(y - mu), axis=-1, keepdims=True)
    return (y - mu) * jax.lax.rsqrt(var + eps) * g + b


# ------------------------------- plain linear --------------------------------

def _linear_kernel(x_ref, w_ref, b_ref, o_ref, acc_ref, *, activation):
    @pl.when(pl.program_id(2) == 0)
    def _():
        acc_ref[...] = jnp.zeros_like(acc_ref)

    acc_ref[...] += jnp.dot(x_ref[...].astype(jnp.bfloat16),
                            w_ref[...].astype(jnp.bfloat16),
                            preferred_element_type=jnp.float32)

    @pl.when(pl.program_id(2) == pl.num_programs(2) - 1)
    def _():
        y = acc_ref[...] + b_ref[...]
        if activation == "relu":
            y = jnp.maximum(y, 0.0)
        o_ref[...] = y.astype(o_ref.dtype)


def pallas_linear(x, w, b, activation=None):
    """x: (M, K), w: (K, N), b: (1, N) -> (M, N); M/N/K tiled."""
    M, K = x.shape
    N = w.shape[1]
    tm = _pick_m_tile(M)
    m_pad = _round_up(M, tm)
    tk = _pick_tile(K)
    tn = _pick_tile(N)
    xp = _pad_rows(x, m_pad)
    out = pl.pallas_call(
        functools.partial(_linear_kernel, activation=activation),
        out_shape=jax.ShapeDtypeStruct((m_pad, N), x.dtype),
        grid_spec=pltpu.PrefetchScalarGridSpec(
            num_scalar_prefetch=0,
            grid=(m_pad // tm, N // tn, K // tk),
            in_specs=[pl.BlockSpec((tm, tk), lambda i, j, k: (i, k)),
                      pl.BlockSpec((tk, tn), lambda i, j, k: (k, j)),
                      pl.BlockSpec((1, tn), lambda i, j, k: (0, j))],
            out_specs=pl.BlockSpec((tm, tn), lambda i, j, k: (i, j)),
            scratch_shapes=[pltpu.VMEM((tm, tn), jnp.float32)]),
        compiler_params=_cparams(("parallel", "parallel", "arbitrary")),
    )(xp, w, b)
    return out[:M] if m_pad != M else out


# -------------------- linear + residual add + LayerNorm ----------------------

def _linear_res_ln_kernel(x_ref, w_ref, b_ref, r_ref, g_ref, be_ref, o_ref, *, eps):
    y = jnp.dot(x_ref[...].astype(jnp.bfloat16), w_ref[...].astype(jnp.bfloat16),
                preferred_element_type=jnp.float32)
    y = y + b_ref[...] + r_ref[...].astype(jnp.float32)
    o_ref[...] = _layernorm_rows(y, g_ref[...], be_ref[...], eps).astype(o_ref.dtype)


def pallas_linear_residual_norm(x, w, b, residual, ln, eps=_LN_EPS):
    """LayerNorm(residual + x @ w + b).  K and N (= d_model) kept whole per block."""
    M, K = x.shape
    D = w.shape[1]
    tm = _pick_m_tile(M)
    m_pad = _round_up(M, tm)
    xp = _pad_rows(x, m_pad)
    rp = _pad_rows(residual, m_pad)
    out = pl.pallas_call(
        functools.partial(_linear_res_ln_kernel, eps=eps),
        out_shape=jax.ShapeDtypeStruct((m_pad, D), x.dtype),
        grid_spec=pltpu.PrefetchScalarGridSpec(
            num_scalar_prefetch=0,
            grid=(m_pad // tm,),
            in_specs=[pl.BlockSpec((tm, K), lambda i: (i, 0)),
                      pl.BlockSpec((K, D), lambda i: (0, 0)),
                      pl.BlockSpec((1, D), lambda i: (0, 0)),
                      pl.BlockSpec((tm, D), lambda i: (i, 0)),
                      pl.BlockSpec((1, D), lambda i: (0, 0)),
                      pl.BlockSpec((1, D), lambda i: (0, 0))],
            out_specs=pl.BlockSpec((tm, D), lambda i: (i, 0))),
        compiler_params=_cparams(("parallel",)),
    )(xp, w, b, rp, ln["g"], ln["b"])
    return out[:M] if m_pad != M else out


# ---------------- fused FFN (lin1+relu+lin2 [+ residual + LN]) ---------------

def _ffn_kernel(x_ref, w1_ref, b1_ref, w2_ref, b2_ref, *rest, fuse_ln, eps):
    if fuse_ln:
        g_ref, be_ref, o_ref, acc_ref = rest
    else:
        o_ref, acc_ref = rest

    @pl.when(pl.program_id(1) == 0)
    def _():
        acc_ref[...] = jnp.zeros_like(acc_ref)

    h = jnp.dot(x_ref[...].astype(jnp.bfloat16), w1_ref[...].astype(jnp.bfloat16),
                preferred_element_type=jnp.float32) + b1_ref[...]
    h = jnp.maximum(h, 0.0)
    acc_ref[...] += jnp.dot(h.astype(jnp.bfloat16), w2_ref[...].astype(jnp.bfloat16),
                            preferred_element_type=jnp.float32)

    # Epilogue value is (cheaply) recomputed every ff step from the resident
    # accumulator; only the final step's value (complete reduction) is stored.
    if fuse_ln:
        y = acc_ref[...] + b2_ref[...] + x_ref[...].astype(jnp.float32)
        y = _layernorm_rows(y, g_ref[...], be_ref[...], eps)
    else:
        y = acc_ref[...] + b2_ref[...]

    @pl.when(pl.program_id(1) == pl.num_programs(1) - 1)
    def _():
        o_ref[...] = y.astype(o_ref.dtype)


def pallas_ffn(x, p, ln=None, eps=_LN_EPS):
    """relu(x @ w1 + b1) @ w2 + b2, ff-tiled so the (M, ff) tensor never hits HBM.
    If `ln` is given, also fuses the residual add (residual == x) and LayerNorm."""
    M, D = x.shape
    FF = p["w1"].shape[1]
    tm = _pick_m_tile(M)
    m_pad = _round_up(M, tm)
    tf = _pick_tile(FF)
    xp = _pad_rows(x, m_pad)
    fuse_ln = ln is not None
    args = [xp, p["w1"], p["b1"], p["w2"], p["b2"]]
    in_specs = [pl.BlockSpec((tm, D), lambda i, f: (i, 0)),
                pl.BlockSpec((D, tf), lambda i, f: (0, f)),
                pl.BlockSpec((1, tf), lambda i, f: (0, f)),
                pl.BlockSpec((tf, D), lambda i, f: (f, 0)),
                pl.BlockSpec((1, D), lambda i, f: (0, 0))]
    if fuse_ln:
        args += [ln["g"], ln["b"]]
        in_specs += [pl.BlockSpec((1, D), lambda i, f: (0, 0)),
                     pl.BlockSpec((1, D), lambda i, f: (0, 0))]
    out = pl.pallas_call(
        functools.partial(_ffn_kernel, fuse_ln=fuse_ln, eps=eps),
        out_shape=jax.ShapeDtypeStruct((m_pad, D), x.dtype),
        grid_spec=pltpu.PrefetchScalarGridSpec(
            num_scalar_prefetch=0,
            grid=(m_pad // tm, FF // tf),
            in_specs=in_specs,
            out_specs=pl.BlockSpec((tm, D), lambda i, f: (i, 0)),
            scratch_shapes=[pltpu.VMEM((tm, D), jnp.float32)]),
        compiler_params=_cparams(("parallel", "arbitrary")),
    )(*args)
    return out[:M] if m_pad != M else out


# ------------------ GLU + residual add + LayerNorm (fused) -------------------

def _glu_res_ln_kernel(x_ref, wa_ref, ba_ref, wb_ref, bb_ref, r_ref, g_ref, be_ref,
                       o_ref, *, eps):
    xb = x_ref[...].astype(jnp.bfloat16)
    a = jnp.dot(xb, wa_ref[...].astype(jnp.bfloat16),
                preferred_element_type=jnp.float32) + ba_ref[...]
    gate = jnp.dot(xb, wb_ref[...].astype(jnp.bfloat16),
                   preferred_element_type=jnp.float32) + bb_ref[...]
    y = a * jax.nn.sigmoid(gate) + r_ref[...].astype(jnp.float32)
    o_ref[...] = _layernorm_rows(y, g_ref[...], be_ref[...], eps).astype(o_ref.dtype)


def pallas_glu_residual_norm(x, p, residual, ln, eps=_LN_EPS):
    """LayerNorm(residual + (x@wa+ba) * sigmoid(x@wb+bb)) — torch GLU convention."""
    M, K = x.shape
    D = p["wa"].shape[1]
    tm = _pick_m_tile(M)
    m_pad = _round_up(M, tm)
    xp = _pad_rows(x, m_pad)
    rp = _pad_rows(residual, m_pad)
    out = pl.pallas_call(
        functools.partial(_glu_res_ln_kernel, eps=eps),
        out_shape=jax.ShapeDtypeStruct((m_pad, D), x.dtype),
        grid_spec=pltpu.PrefetchScalarGridSpec(
            num_scalar_prefetch=0,
            grid=(m_pad // tm,),
            in_specs=[pl.BlockSpec((tm, K), lambda i: (i, 0)),
                      pl.BlockSpec((K, D), lambda i: (0, 0)),
                      pl.BlockSpec((1, D), lambda i: (0, 0)),
                      pl.BlockSpec((K, D), lambda i: (0, 0)),
                      pl.BlockSpec((1, D), lambda i: (0, 0)),
                      pl.BlockSpec((tm, D), lambda i: (i, 0)),
                      pl.BlockSpec((1, D), lambda i: (0, 0)),
                      pl.BlockSpec((1, D), lambda i: (0, 0))],
            out_specs=pl.BlockSpec((tm, D), lambda i: (i, 0))),
        compiler_params=_cparams(("parallel",)),
    )(xp, p["wa"], p["ba"], p["wb"], p["bb"], rp, ln["g"], ln["b"])
    return out[:M] if m_pad != M else out


# ------------------------------ plain LayerNorm ------------------------------

def _ln_kernel(x_ref, g_ref, b_ref, o_ref, *, eps):
    x = x_ref[...].astype(jnp.float32)
    o_ref[...] = _layernorm_rows(x, g_ref[...], b_ref[...], eps).astype(o_ref.dtype)


def pallas_layernorm(x, p, eps=_LN_EPS):
    """x (B, S, D) -> LayerNorm(x) (used for nn.Transformer's final enc/dec norms)."""
    B, S, D = x.shape
    M = B * S
    tm = _pick_m_tile(M)
    m_pad = _round_up(M, tm)
    xp = _pad_rows(x.reshape(M, D), m_pad)
    out = pl.pallas_call(
        functools.partial(_ln_kernel, eps=eps),
        out_shape=jax.ShapeDtypeStruct((m_pad, D), x.dtype),
        grid_spec=pltpu.PrefetchScalarGridSpec(
            num_scalar_prefetch=0,
            grid=(m_pad // tm,),
            in_specs=[pl.BlockSpec((tm, D), lambda i: (i, 0)),
                      pl.BlockSpec((1, D), lambda i: (0, 0)),
                      pl.BlockSpec((1, D), lambda i: (0, 0))],
            out_specs=pl.BlockSpec((tm, D), lambda i: (i, 0))),
        compiler_params=_cparams(("parallel",)),
    )(xp, p["g"], p["b"])
    if m_pad != M:
        out = out[:M]
    return out.reshape(B, S, D)


# ------------------- flash-style multi-head attention ------------------------

def _attn_kernel(q_ref, k_ref, v_ref, o_ref, m_sc, l_sc, acc_sc,
                 *, scale, causal, kv_tile):
    kv = pl.program_id(1)

    @pl.when(kv == 0)
    def _():
        m_sc[...] = jnp.full_like(m_sc, _NEG_INF)
        l_sc[...] = jnp.zeros_like(l_sc)
        acc_sc[...] = jnp.zeros_like(acc_sc)

    # all heads of this batch at once: (H, Sq, Dh) x (H, Tk, Dh)
    q = (q_ref[0].astype(jnp.float32) * scale).astype(jnp.bfloat16)
    k = k_ref[0].astype(jnp.bfloat16)
    s = jnp.einsum("hqd,hkd->hqk", q, k, preferred_element_type=jnp.float32)

    if causal:
        qi = jax.lax.broadcasted_iota(jnp.int32, s.shape, 1)
        kj = jax.lax.broadcasted_iota(jnp.int32, s.shape, 2) + kv * kv_tile
        s = jnp.where(kj > qi, _NEG_INF, s)

    m_prev = m_sc[...]
    m_new = jnp.maximum(m_prev, jnp.max(s, axis=-1, keepdims=True))
    alpha = jnp.exp(m_prev - m_new)
    p = jnp.exp(s - m_new)
    l_sc[...] = alpha * l_sc[...] + jnp.sum(p, axis=-1, keepdims=True)
    acc_sc[...] = alpha * acc_sc[...] + jnp.einsum(
        "hqk,hkd->hqd", p.astype(jnp.bfloat16), v_ref[0].astype(jnp.bfloat16),
        preferred_element_type=jnp.float32)
    m_sc[...] = m_new

    @pl.when(kv == pl.num_programs(1) - 1)
    def _():
        o_ref[0] = (acc_sc[...] *
                    pl.reciprocal(l_sc[...], approx=True)).astype(o_ref.dtype)


def pallas_attention(q, k, v, *, causal):
    """q: (B, H, Sq, Dh), k/v: (B, H, Sk, Dh) -> (B, H, Sq, Dh)."""
    B, H, Sq, Dh = q.shape
    Sk = k.shape[2]
    scale = 1.0 / math.sqrt(Dh)
    tkv = _pick_tile(Sk) if Sk > 512 else Sk
    if Sk % tkv != 0:
        tkv = Sk
    return pl.pallas_call(
        functools.partial(_attn_kernel, scale=scale, causal=causal, kv_tile=tkv),
        out_shape=jax.ShapeDtypeStruct((B, H, Sq, Dh), q.dtype),
        grid_spec=pltpu.PrefetchScalarGridSpec(
            num_scalar_prefetch=0,
            grid=(B, Sk // tkv),
            in_specs=[pl.BlockSpec((1, H, Sq, Dh), lambda b, kv: (b, 0, 0, 0)),
                      pl.BlockSpec((1, H, tkv, Dh), lambda b, kv: (b, 0, kv, 0)),
                      pl.BlockSpec((1, H, tkv, Dh), lambda b, kv: (b, 0, kv, 0))],
            out_specs=pl.BlockSpec((1, H, Sq, Dh), lambda b, kv: (b, 0, 0, 0)),
            scratch_shapes=[pltpu.VMEM((H, Sq, 1), jnp.float32),
                            pltpu.VMEM((H, Sq, 1), jnp.float32),
                            pltpu.VMEM((H, Sq, Dh), jnp.float32)]),
        compiler_params=_cparams(("parallel", "arbitrary")),
    )(q, k, v)


# ------------------------------ parameter init ------------------------------

def init_linear_params(key, in_dim, out_dim, pad_to=None):
    kw, kb = jax.random.split(key)
    lim = 1.0 / math.sqrt(in_dim)
    w = jax.random.uniform(kw, (in_dim, out_dim), jnp.float32, -lim, lim)
    b = jax.random.uniform(kb, (1, out_dim), jnp.float32, -lim, lim)
    if pad_to is not None and out_dim < pad_to:
        w = jnp.pad(w, ((0, 0), (0, pad_to - out_dim)))
        b = jnp.pad(b, ((0, 0), (0, pad_to - out_dim)))
    return {"w": w, "b": b}


def init_layernorm_params(d):
    return {"g": jnp.ones((1, d), jnp.float32), "b": jnp.zeros((1, d), jnp.float32)}


def init_ffn_params(key, d, ff):
    k1, k2 = jax.random.split(key)
    l1 = init_linear_params(k1, d, ff)
    l2 = init_linear_params(k2, ff, d)
    return {"w1": l1["w"], "b1": l1["b"], "w2": l2["w"], "b2": l2["b"]}


def init_glu_params(key, d_in, d_out):
    ka, kb = jax.random.split(key)
    a = init_linear_params(ka, d_in, d_out)
    g = init_linear_params(kb, d_in, d_out)
    return {"wa": a["w"], "ba": a["b"], "wb": g["w"], "bb": g["b"]}


def init_encoder_layer(key, d, ff):
    ks = jax.random.split(key, 3)
    return {"qkv": init_linear_params(ks[0], d, 3 * d),
            "o": init_linear_params(ks[1], d, d),
            "ffn": init_ffn_params(ks[2], d, ff),
            "norm1": init_layernorm_params(d),
            "norm2": init_layernorm_params(d)}


def init_decoder_layer(key, d, ff):
    ks = jax.random.split(key, 6)
    return {"self_qkv": init_linear_params(ks[0], d, 3 * d),
            "self_o": init_linear_params(ks[1], d, d),
            "cross_q": init_linear_params(ks[2], d, d),
            "cross_kv": init_linear_params(ks[3], d, 2 * d),
            "cross_o": init_linear_params(ks[4], d, d),
            "ffn": init_ffn_params(ks[5], d, ff),
            "norm1": init_layernorm_params(d),
            "norm2": init_layernorm_params(d),
            "norm3": init_layernorm_params(d)}


def init_model(key, num_features, d, n_enc, n_dec, ff, out_dim):
    keys = jax.random.split(key, 8)
    return {
        "embed": init_linear_params(keys[0], num_features, d),
        "encoder_layers": [init_encoder_layer(k, d, ff)
                           for k in jax.random.split(keys[1], n_enc)],
        "encoder_norm": init_layernorm_params(d),
        "decoder_layers": [init_decoder_layer(k, d, ff)
                           for k in jax.random.split(keys[2], n_dec)],
        "decoder_norm": init_layernorm_params(d),
        "grn3": {  # TFT-style GatedResidualNetwork: fc1->relu->fc2->GLU->add&norm
            "ffn": init_ffn_params(keys[3], d, ff),
            "glu": init_glu_params(keys[4], d, d),
            "norm": init_layernorm_params(d),
        },
        "glu3": init_glu_params(keys[5], d, d),
        "norm3": init_layernorm_params(d),
        # fc head output padded to 128 lanes (lane-dense stores); sliced outside.
        "fc": init_linear_params(keys[6], d, out_dim,
                                 pad_to=_round_up(out_dim, 128)),
    }


# ------------------------------ model pieces --------------------------------

def sinusoidal_pe(seq_len, d):
    pos = jnp.arange(seq_len, dtype=jnp.float32)[:, None]
    i = jnp.arange(0, d, 2, dtype=jnp.float32)
    div = jnp.exp(-jnp.log(10000.0) * i / d)
    pe = jnp.zeros((seq_len, d), jnp.float32)
    pe = pe.at[:, 0::2].set(jnp.sin(pos * div))
    pe = pe.at[:, 1::2].set(jnp.cos(pos * div))
    return pe


def self_attn_block(x, qkv_p, o_p, ln_p, num_heads, causal):
    """LN(x + o_proj(MHA(x))) — o_proj / residual / LN fused in one kernel."""
    B, S, D = x.shape
    Dh = D // num_heads
    xf = x.reshape(B * S, D)
    qkv = pallas_linear(xf, qkv_p["w"], qkv_p["b"])                     # (B*S, 3D)
    qkv = qkv.reshape(B, S, 3, num_heads, Dh).transpose(2, 0, 3, 1, 4)  # (3,B,H,S,Dh)
    o = pallas_attention(qkv[0], qkv[1], qkv[2], causal=causal)         # (B,H,S,Dh)
    o = o.transpose(0, 2, 1, 3).reshape(B * S, D)
    y = pallas_linear_residual_norm(o, o_p["w"], o_p["b"], xf, ln_p)
    return y.reshape(B, S, D)


def cross_attn_block(x, memory, p, ln_p, num_heads):
    B, Sq, D = x.shape
    Sk = memory.shape[1]
    Dh = D // num_heads
    xf = x.reshape(B * Sq, D)
    q = pallas_linear(xf, p["cross_q"]["w"], p["cross_q"]["b"])
    q = q.reshape(B, Sq, num_heads, Dh).transpose(0, 2, 1, 3)
    kv = pallas_linear(memory.reshape(B * Sk, D),
                       p["cross_kv"]["w"], p["cross_kv"]["b"])
    kv = kv.reshape(B, Sk, 2, num_heads, Dh).transpose(2, 0, 3, 1, 4)
    o = pallas_attention(q, kv[0], kv[1], causal=False)
    o = o.transpose(0, 2, 1, 3).reshape(B * Sq, D)
    y = pallas_linear_residual_norm(o, p["cross_o"]["w"], p["cross_o"]["b"], xf, ln_p)
    return y.reshape(B, Sq, D)


def encoder_layer(x, p, num_heads):
    # The PyTorch module registers src_mask = generate_mask(seq_len), so the
    # encoder self-attention IS causal (matches the module spec).
    B, S, D = x.shape
    x = self_attn_block(x, p["qkv"], p["o"], p["norm1"], num_heads, causal=True)
    x = pallas_ffn(x.reshape(B * S, D), p["ffn"], ln=p["norm2"]).reshape(B, S, D)
    return x


def decoder_layer(x, memory, p, num_heads):
    B, S, D = x.shape
    x = self_attn_block(x, p["self_qkv"], p["self_o"], p["norm1"],
                        num_heads, causal=True)
    x = cross_attn_block(x, memory, p, p["norm2"], num_heads)
    x = pallas_ffn(x.reshape(B * S, D), p["ffn"], ln=p["norm3"]).reshape(B, S, D)
    return x


def transformer_v2_forward(params, source, target, *, num_heads, d_model,
                           output_dim):
    B, S, F = source.shape
    So = target.shape[1]
    D = d_model

    emb = params["embed"]
    x = pallas_linear(source.reshape(B * S, F), emb["w"], emb["b"]).reshape(B, S, D)
    t = pallas_linear(target.reshape(B * So, F), emb["w"], emb["b"]).reshape(B, So, D)
    target_emb = t                                   # pre-positional-encoding copy

    x = x + sinusoidal_pe(S, D)[None]
    t = t + sinusoidal_pe(So, D)[None]

    # encoder (post-norm, with nn.Transformer's final encoder LayerNorm)
    mem = x
    for lp in params["encoder_layers"]:
        mem = encoder_layer(mem, lp, num_heads)
    mem = pallas_layernorm(mem, params["encoder_norm"])

    # decoder (post-norm, with nn.Transformer's final decoder LayerNorm)
    dec = t
    for lp in params["decoder_layers"]:
        dec = decoder_layer(dec, mem, lp, num_heads)
    dec = pallas_layernorm(dec, params["decoder_norm"])

    # grn3: GatedResidualNetwork (fc1 -> relu -> fc2 -> GLU -> add & norm)
    grn = params["grn3"]
    dec_f = dec.reshape(B * So, D)
    h = pallas_ffn(dec_f, grn["ffn"])                          # fc1+relu+fc2 fused
    dec_f = pallas_glu_residual_norm(h, grn["glu"], dec_f, grn["norm"])

    # glu3 then norm3(decoding + target_emb) — fused into one kernel
    out = pallas_glu_residual_norm(dec_f, params["glu3"],
                                   target_emb.reshape(B * So, D), params["norm3"])

    # fc head
    # TODO(synk): MLP(hidden_dim=None) is assumed to reduce to a single Linear(d_model, output_dim).
    y = pallas_linear(out, params["fc"]["w"], params["fc"]["b"])
    y = y[:, :output_dim]                            # drop lane padding
    return y.reshape(B, So, output_dim)


# ----------------------------------- main ------------------------------------

if __name__ == "__main__":
    B, SEQ, OUT_SEQ, FEAT = 2, 8, 8, 4
    D_MODEL, HEADS, N_ENC, N_DEC, FC_DIM, OUT_DIM = 32, 4, 2, 2, 64, 7

    key = jax.random.PRNGKey(0)
    k_src, k_tgt, k_param = jax.random.split(key, 3)
    source = jax.random.normal(k_src, (B, SEQ, FEAT), jnp.float32)
    target = jax.random.normal(k_tgt, (B, OUT_SEQ, FEAT), jnp.float32)

    params = init_model(k_param, FEAT, D_MODEL, N_ENC, N_DEC, FC_DIM, OUT_DIM)

    fwd = jax.jit(functools.partial(transformer_v2_forward, num_heads=HEADS,
                                    d_model=D_MODEL, output_dim=OUT_DIM))
    y = fwd(params, source, target)
    y = jax.block_until_ready(y)
    assert y.shape == (B, OUT_SEQ, OUT_DIM), y.shape
    assert bool(jnp.all(jnp.isfinite(y)))
    print("KERNEL_OK")
</pallas_src>

<mosaic_0001>
module attributes {stable_mosaic.version = 11 : i64} {
  func.func @_linear_kernel(%arg0: i32, %arg1: i32, %arg2: i32, %arg3: memref<16x4xf32, #tpu.memory_space<vmem>>, %arg4: memref<4x32xf32, #tpu.memory_space<vmem>>, %arg5: memref<1x32xf32, #tpu.memory_space<vmem>>, %arg6: memref<16x32xf32, #tpu.memory_space<vmem>>, %arg7: memref<16x32xf32, #tpu.memory_space<vmem>>) attributes {dimension_semantics = [#tpu.dimension_semantics<parallel>, #tpu.dimension_semantics<parallel>, #tpu.dimension_semantics<arbitrary>], iteration_bounds = array<i64: 1, 1, 1>, scalar_prefetch = 0 : i64, scratch_operands = 1 : i64, tpu.core_type = #tpu.core_type<tc>, window_params = [{transform_indices = @transform_0, window_bounds = array<i64: 16, 4>}, {transform_indices = @transform_1, window_bounds = array<i64: 4, 32>}, {transform_indices = @transform_2, window_bounds = array<i64: 1, 32>}, {transform_indices = @transform_3, window_bounds = array<i64: 16, 32>}]} {
    %c0_i32 = arith.constant 0 : i32
    %0 = arith.cmpi eq, %arg2, %c0_i32 : i32
    %1 = arith.extui %0 : i1 to i32
    %c0_i32_0 = arith.constant 0 : i32
    %2 = arith.cmpi ne, %1, %c0_i32_0 : i32
    scf.if %2 {
      %cst_10 = arith.constant 0.000000e+00 : f32
      %14 = vector.broadcast %cst_10 : f32 to vector<16x32xf32>
      %c0_11 = arith.constant 0 : index
      %c0_12 = arith.constant 0 : index
      %15 = vector.load %arg7[%c0_11, %c0_12] : memref<16x32xf32, #tpu.memory_space<vmem>>, vector<16x32xf32>
      tpu.vector_store %arg7[%c0_11, %c0_12], %14 {strides = array<i32>} : memref<16x32xf32, #tpu.memory_space<vmem>>, vector<16x32xf32>,
    } else {
    }
    %c0 = arith.constant 0 : index
    %c0_1 = arith.constant 0 : index
    %3 = vector.load %arg7[%c0, %c0_1] : memref<16x32xf32, #tpu.memory_space<vmem>>, vector<16x32xf32>
    %c0_2 = arith.constant 0 : index
    %c0_3 = arith.constant 0 : index
    %4 = vector.load %arg3[%c0_2, %c0_3] : memref<16x4xf32, #tpu.memory_space<vmem>>, vector<16x4xf32>
    %5 = arith.truncf %4 : vector<16x4xf32> to vector<16x4xbf16>
    %c0_4 = arith.constant 0 : index
    %c0_5 = arith.constant 0 : index
    %6 = vector.load %arg4[%c0_4, %c0_5] : memref<4x32xf32, #tpu.memory_space<vmem>>, vector<4x32xf32>
    %7 = arith.truncf %6 : vector<4x32xf32> to vector<4x32xbf16>
    %cst = arith.constant dense<0.000000e+00> : vector<16x32xf32>
    %8 = tpu.matmul %5, %7, %cst {dimension_numbers = #tpu.dot_dimension_numbers<[1], [0], [0], [1], [0, 0, 1, 1], [], []>} : vector<16x4xbf16>, vector<4x32xbf16>, vector<16x32xf32> -> vector<16x32xf32>
    %9 = arith.addf %3, %8 : vector<16x32xf32>
    %c0_6 = arith.constant 0 : index
    %c0_7 = arith.constant 0 : index
    %10 = vector.load %arg7[%c0_6, %c0_7] : memref<16x32xf32, #tpu.memory_space<vmem>>, vector<16x32xf32>
    tpu.vector_store %arg7[%c0_6, %c0_7], %9 {strides = array<i32>} : memref<16x32xf32, #tpu.memory_space<vmem>>, vector<16x32xf32>,
    %c0_i32_8 = arith.constant 0 : i32
    %11 = arith.cmpi eq, %arg2, %c0_i32_8 : i32
    %12 = arith.extui %11 : i1 to i32
    %c0_i32_9 = arith.constant 0 : i32
    %13 = arith.cmpi ne, %12, %c0_i32_9 : i32
    scf.if %13 {
      %c0_10 = arith.constant 0 : index
      %c0_11 = arith.constant 0 : index
      %14 = vector.load %arg7[%c0_10, %c0_11] : memref<16x32xf32, #tpu.memory_space<vmem>>, vector<16x32xf32>
      %c0_12 = arith.constant 0 : index
      %c0_13 = arith.constant 0 : index
      %15 = vector.load %arg5[%c0_12, %c0_13] : memref<1x32xf32, #tpu.memory_space<vmem>>, vector<1x32xf32>
      %16 = vector.broadcast %15 : vector<1x32xf32> to vector<16x32xf32>
      %17 = arith.addf %14, %16 : vector<16x32xf32>
      %c0_14 = arith.constant 0 : index
      %c0_15 = arith.constant 0 : index
      %18 = vector.load %arg6[%c0_14, %c0_15] : memref<16x32xf32, #tpu.memory_space<vmem>>, vector<16x32xf32>
      tpu.vector_store %arg6[%c0_14, %c0_15], %17 {strides = array<i32>} : memref<16x32xf32, #tpu.memory_space<vmem>>, vector<16x32xf32>,
    } else {
    }
    return
  }
  func.func @transform_0(%arg0: i32, %arg1: i32, %arg2: i32) -> (i32, i32) {
    %c0_i32 = arith.constant 0 : i32
    return %arg0, %arg2 : i32, i32
  }
  func.func @transform_1(%arg0: i32, %arg1: i32, %arg2: i32) -> (i32, i32) {
    %c0_i32 = arith.constant 0 : i32
    return %arg2, %arg1 : i32, i32
  }
  func.func @transform_2(%arg0: i32, %arg1: i32, %arg2: i32) -> (i32, i32) {
    %c0_i32 = arith.constant 0 : i32
    %c0_i32_0 = arith.constant 0 : i32
    return %c0_i32, %arg1 : i32, i32
  }
  func.func @transform_3(%arg0: i32, %arg1: i32, %arg2: i32) -> (i32, i32) {
    %c0_i32 = arith.constant 0 : i32
    return %arg0, %arg1 : i32, i32
  }
}

module attributes {stable_mosaic.version = 11 : i64} {
  func.func @_linear_kernel(%arg0: i32, %arg1: i32, %arg2: i32, %arg3: memref<16x32xf32, #tpu.memory_space<vmem>>, %arg4: memref<32x96xf32, #tpu.memory_space<vmem>>, %arg5: memref<1x96xf32, #tpu.memory_space<vmem>>, %arg6: memref<16x96xf32, #tpu.memory_space<vmem>>, %arg7: memref<16x96xf32, #tpu.memory_space<vmem>>) attributes {dimension_semantics = [#tpu.dimension_semantics<parallel>, #tpu.dimension_semantics<parallel>, #tpu.dimension_semantics<arbitrary>], iteration_bounds = array<i64: 1, 1, 1>, scalar_prefetch = 0 : i64, scratch_operands = 1 : i64, tpu.core_type = #tpu.core_type<tc>, window_params = [{transform_indices = @transform_0, window_bounds = array<i64: 16, 32>}, {transform_indices = @transform_1, window_bounds = array<i64: 32, 96>}, {transform_indices = @transform_2, window_bounds = array<i64: 1, 96>}, {transform_indices = @transform_3, window_bounds = array<i64: 16, 96>}]} {
    %c0_i32 = arith.constant 0 : i32
    %0 = arith.cmpi eq, %arg2, %c0_i32 : i32
    %1 = arith.extui %0 : i1 to i32
    %c0_i32_0 = arith.constant 0 : i32
    %2 = arith.cmpi ne, %1, %c0_i32_0 : i32
    scf.if %2 {
      %cst_10 = arith.constant 0.000000e+00 : f32
      %14 = vector.broadcast %cst_10 : f32 to vector<16x96xf32>
      %c0_11 = arith.constant 0 : index
      %c0_12 = arith.constant 0 : index
      %15 = vector.load %arg7[%c0_11, %c0_12] : memref<16x96xf32, #tpu.memory_space<vmem>>, vector<16x96xf32>
      tpu.vector_store %arg7[%c0_11, %c0_12], %14 {strides = array<i32>} : memref<16x96xf32, #tpu.memory_space<vmem>>, vector<16x96xf32>,
    } else {
    }
    %c0 = arith.constant 0 : index
    %c0_1 = arith.constant 0 : index
    %3 = vector.load %arg7[%c0, %c0_1] : memref<16x96xf32, #tpu.memory_space<vmem>>, vector<16x96xf32>
    %c0_2 = arith.constant 0 : index
    %c0_3 = arith.constant 0 : index
    %4 = vector.load %arg3[%c0_2, %c0_3] : memref<16x32xf32, #tpu.memory_space<vmem>>, vector<16x32xf32>
    %5 = arith.truncf %4 : vector<16x32xf32> to vector<16x32xbf16>
    %c0_4 = arith.constant 0 : index
    %c0_5 = arith.constant 0 : index
    %6 = vector.load %arg4[%c0_4, %c0_5] : memref<32x96xf32, #tpu.memory_space<vmem>>, vector<32x96xf32>
    %7 = arith.truncf %6 : vector<32x96xf32> to vector<32x96xbf16>
    %cst = arith.constant dense<0.000000e+00> : vector<16x96xf32>
    %8 = tpu.matmul %5, %7, %cst {dimension_numbers = #tpu.dot_dimension_numbers<[1], [0], [0], [1], [0, 0, 1, 1], [], []>} : vector<16x32xbf16>, vector<32x96xbf16>, vector<16x96xf32> -> vector<16x96xf32>
    %9 = arith.addf %3, %8 : vector<16x96xf32>
    %c0_6 = arith.constant 0 : index
    %c0_7 = arith.constant 0 : index
    %10 = vector.load %arg7[%c0_6, %c0_7] : memref<16x96xf32, #tpu.memory_space<vmem>>, vector<16x96xf32>
    tpu.vector_store %arg7[%c0_6, %c0_7], %9 {strides = array<i32>} : memref<16x96xf32, #tpu.memory_space<vmem>>, vector<16x96xf32>,
    %c0_i32_8 = arith.constant 0 : i32
    %11 = arith.cmpi eq, %arg2, %c0_i32_8 : i32
    %12 = arith.extui %11 : i1 to i32
    %c0_i32_9 = arith.constant 0 : i32
    %13 = arith.cmpi ne, %12, %c0_i32_9 : i32
    scf.if %13 {
      %c0_10 = arith.constant 0 : index
      %c0_11 = arith.constant 0 : index
      %14 = vector.load %arg7[%c0_10, %c0_11] : memref<16x96xf32, #tpu.memory_space<vmem>>, vector<16x96xf32>
      %c0_12 = arith.constant 0 : index
      %c0_13 = arith.constant 0 : index
      %15 = vector.load %arg5[%c0_12, %c0_13] : memref<1x96xf32, #tpu.memory_space<vmem>>, vector<1x96xf32>
      %16 = vector.broadcast %15 : vector<1x96xf32> to vector<16x96xf32>
      %17 = arith.addf %14, %16 : vector<16x96xf32>
      %c0_14 = arith.constant 0 : index
      %c0_15 = arith.constant 0 : index
      %18 = vector.load %arg6[%c0_14, %c0_15] : memref<16x96xf32, #tpu.memory_space<vmem>>, vector<16x96xf32>
      tpu.vector_store %arg6[%c0_14, %c0_15], %17 {strides = array<i32>} : memref<16x96xf32, #tpu.memory_space<vmem>>, vector<16x96xf32>,
    } else {
    }
    return
  }
  func.func @transform_0(%arg0: i32, %arg1: i32, %arg2: i32) -> (i32, i32) {
    %c0_i32 = arith.constant 0 : i32
    return %arg0, %arg2 : i32, i32
  }
  func.func @transform_1(%arg0: i32, %arg1: i32, %arg2: i32) -> (i32, i32) {
    %c0_i32 = arith.constant 0 : i32
    return %arg2, %arg1 : i32, i32
  }
  func.func @transform_2(%arg0: i32, %arg1: i32, %arg2: i32) -> (i32, i32) {
    %c0_i32 = arith.constant 0 : i32
    %c0_i32_0 = arith.constant 0 : i32
    return %c0_i32, %arg1 : i32, i32
  }
  func.func @transform_3(%arg0: i32, %arg1: i32, %arg2: i32) -> (i32, i32) {
    %c0_i32 = arith.constant 0 : i32
    return %arg0, %arg1 : i32, i32
  }
}

module attributes {stable_mosaic.version = 11 : i64} {
  func.func @_linear_res_ln_kernel(%arg0: i32, %arg1: memref<16x32xf32, #tpu.memory_space<vmem>>, %arg2: memref<32x32xf32, #tpu.memory_space<vmem>>, %arg3: memref<1x32xf32, #tpu.memory_space<vmem>>, %arg4: memref<16x32xf32, #tpu.memory_space<vmem>>, %arg5: memref<1x32xf32, #tpu.memory_space<vmem>>, %arg6: memref<1x32xf32, #tpu.memory_space<vmem>>, %arg7: memref<16x32xf32, #tpu.memory_space<vmem>>) attributes {dimension_semantics = [#tpu.dimension_semantics<parallel>], iteration_bounds = array<i64: 1>, scalar_prefetch = 0 : i64, scratch_operands = 0 : i64, tpu.core_type = #tpu.core_type<tc>, window_params = [{transform_indices = @transform_0, window_bounds = array<i64: 16, 32>}, {pipeline_mode = #tpu.pipeline_mode<synchronous>, transform_indices = @transform_1, window_bounds = array<i64: 32, 32>}, {pipeline_mode = #tpu.pipeline_mode<synchronous>, transform_indices = @transform_2, window_bounds = array<i64: 1, 32>}, {transform_indices = @transform_3, window_bounds = array<i64: 16, 32>}, {pipeline_mode = #tpu.pipeline_mode<synchronous>, transform_indices = @transform_4, window_bounds = array<i64: 1, 32>}, {pipeline_mode = #tpu.pipeline_mode<synchronous>, transform_indices = @transform_5, window_bounds = array<i64: 1, 32>}, {transform_indices = @transform_6, window_bounds = array<i64: 16, 32>}]} {
    %c0 = arith.constant 0 : index
    %c0_0 = arith.constant 0 : index
    %0 = vector.load %arg1[%c0, %c0_0] : memref<16x32xf32, #tpu.memory_space<vmem>>, vector<16x32xf32>
    %1 = arith.truncf %0 : vector<16x32xf32> to vector<16x32xbf16>
    %c0_1 = arith.constant 0 : index
    %c0_2 = arith.constant 0 : index
    %2 = vector.load %arg2[%c0_1, %c0_2] : memref<32x32xf32, #tpu.memory_space<vmem>>, vector<32x32xf32>
    %3 = arith.truncf %2 : vector<32x32xf32> to vector<32x32xbf16>
    %cst = arith.constant dense<0.000000e+00> : vector<16x32xf32>
    %4 = tpu.matmul %1, %3, %cst {dimension_numbers = #tpu.dot_dimension_numbers<[1], [0], [0], [1], [0, 0, 1, 1], [], []>} : vector<16x32xbf16>, vector<32x32xbf16>, vector<16x32xf32> -> vector<16x32xf32>
    %c0_3 = arith.constant 0 : index
    %c0_4 = arith.constant 0 : index
    %5 = vector.load %arg3[%c0_3, %c0_4] : memref<1x32xf32, #tpu.memory_space<vmem>>, vector<1x32xf32>
    %6 = vector.broadcast %5 : vector<1x32xf32> to vector<16x32xf32>
    %7 = arith.addf %4, %6 : vector<16x32xf32>
    %c0_5 = arith.constant 0 : index
    %c0_6 = arith.constant 0 : index
    %8 = vector.load %arg4[%c0_5, %c0_6] : memref<16x32xf32, #tpu.memory_space<vmem>>, vector<16x32xf32>
    %9 = arith.addf %7, %8 : vector<16x32xf32>
    %c0_7 = arith.constant 0 : index
    %c0_8 = arith.constant 0 : index
    %10 = vector.load %arg5[%c0_7, %c0_8] : memref<1x32xf32, #tpu.memory_space<vmem>>, vector<1x32xf32>
    %c0_9 = arith.constant 0 : index
    %c0_10 = arith.constant 0 : index
    %11 = vector.load %arg6[%c0_9, %c0_10] : memref<1x32xf32, #tpu.memory_space<vmem>>, vector<1x32xf32>
    %cst_11 = arith.constant dense<0.000000e+00> : vector<16xf32>
    %12 = vector.multi_reduction <add>, %9, %cst_11 [1] : vector<16x32xf32> to vector<16xf32>
    %13 = vector.shape_cast %12 : vector<16xf32> to vector<16x1xf32>
    %cst_12 = arith.constant 3.200000e+01 : f32
    %14 = vector.broadcast %cst_12 : f32 to vector<16x1xf32>
    %15 = arith.divf %13, %14 : vector<16x1xf32>
    %16 = vector.broadcast %15 : vector<16x1xf32> to vector<16x32xf32>
    %17 = arith.subf %9, %16 : vector<16x32xf32>
    %18 = arith.mulf %17, %17 : vector<16x32xf32>
    %cst_13 = arith.constant dense<0.000000e+00> : vector<16xf32>
    %19 = vector.multi_reduction <add>, %18, %cst_13 [1] : vector<16x32xf32> to vector<16xf32>
    %20 = vector.shape_cast %19 : vector<16xf32> to vector<16x1xf32>
    %cst_14 = arith.constant 3.200000e+01 : f32
    %21 = vector.broadcast %cst_14 : f32 to vector<16x1xf32>
    %22 = arith.divf %20, %21 : vector<16x1xf32>
    %23 = vector.broadcast %15 : vector<16x1xf32> to vector<16x32xf32>
    %24 = arith.subf %9, %23 : vector<16x32xf32>
    %cst_15 = arith.constant 9.99999974E-6 : f32
    %25 = vector.broadcast %cst_15 : f32 to vector<16x1xf32>
    %26 = arith.addf %22, %25 : vector<16x1xf32>
    %27 = math.rsqrt %26 : vector<16x1xf32>
    %28 = vector.broadcast %27 : vector<16x1xf32> to vector<16x32xf32>
    %29 = arith.mulf %24, %28 : vector<16x32xf32>
    %30 = vector.broadcast %10 : vector<1x32xf32> to vector<16x32xf32>
    %31 = arith.mulf %29, %30 : vector<16x32xf32>
    %32 = vector.broadcast %11 : vector<1x32xf32> to vector<16x32xf32>
    %33 = arith.addf %31, %32 : vector<16x32xf32>
    %c0_16 = arith.constant 0 : index
    %c0_17 = arith.constant 0 : index
    %34 = vector.load %arg7[%c0_16, %c0_17] : memref<16x32xf32, #tpu.memory_space<vmem>>, vector<16x32xf32>
    tpu.vector_store %arg7[%c0_16, %c0_17], %33 {strides = array<i32>} : memref<16x32xf32, #tpu.memory_space<vmem>>, vector<16x32xf32>,
    return
  }
  func.func @transform_0(%arg0: i32) -> (i32, i32) {
    %c0_i32 = arith.constant 0 : i32
    %c0_i32_0 = arith.constant 0 : i32
    return %arg0, %c0_i32 : i32, i32
  }
  func.func @transform_1(%arg0: i32) -> (i32, i32) {
    %c0_i32 = arith.constant 0 : i32
    %c0_i32_0 = arith.constant 0 : i32
    %c0_i32_1 = arith.constant 0 : i32
    return %c0_i32, %c0_i32_0 : i32, i32
  }
  func.func @transform_2(%arg0: i32) -> (i32, i32) {
    %c0_i32 = arith.constant 0 : i32
    %c0_i32_0 = arith.constant 0 : i32
    %c0_i32_1 = arith.constant 0 : i32
    return %c0_i32, %c0_i32_0 : i32, i32
  }
  func.func @transform_3(%arg0: i32) -> (i32, i32) {
    %c0_i32 = arith.constant 0 : i32
    %c0_i32_0 = arith.constant 0 : i32
    return %arg0, %c0_i32 : i32, i32
  }
  func.func @transform_4(%arg0: i32) -> (i32, i32) {
    %c0_i32 = arith.constant 0 : i32
    %c0_i32_0 = arith.constant 0 : i32
    %c0_i32_1 = arith.constant 0 : i32
    return %c0_i32, %c0_i32_0 : i32, i32
  }
  func.func @transform_5(%arg0: i32) -> (i32, i32) {
    %c0_i32 = arith.constant 0 : i32
    %c0_i32_0 = arith.constant 0 : i32
    %c0_i32_1 = arith.constant 0 : i32
    return %c0_i32, %c0_i32_0 : i32, i32
  }
  func.func @transform_6(%arg0: i32) -> (i32, i32) {
    %c0_i32 = arith.constant 0 : i32
    %c0_i32_0 = arith.constant 0 : i32
    return %arg0, %c0_i32 : i32, i32
  }
}

module attributes {stable_mosaic.version = 11 : i64} {
  func.func @_attn_kernel(%arg0: i32, %arg1: i32, %arg2: memref<1x4x8x8xf32, #tpu.memory_space<vmem>>, %arg3: memref<1x4x8x8xf32, #tpu.memory_space<vmem>>, %arg4: memref<1x4x8x8xf32, #tpu.memory_space<vmem>>, %arg5: memref<1x4x8x8xf32, #tpu.memory_space<vmem>>, %arg6: memref<4x8x1xf32, #tpu.memory_space<vmem>>, %arg7: memref<4x8x1xf32, #tpu.memory_space<vmem>>, %arg8: memref<4x8x8xf32, #tpu.memory_space<vmem>>) attributes {dimension_semantics = [#tpu.dimension_semantics<parallel>, #tpu.dimension_semantics<arbitrary>], iteration_bounds = array<i64: 2, 1>, scalar_prefetch = 0 : i64, scratch_operands = 3 : i64, tpu.core_type = #tpu.core_type<tc>, window_params = [{transform_indices = @transform_0, window_bounds = array<i64: 1, 4, 8, 8>}, {transform_indices = @transform_1, window_bounds = array<i64: 1, 4, 8, 8>}, {transform_indices = @transform_2, window_bounds = array<i64: 1, 4, 8, 8>}, {transform_indices = @transform_3, window_bounds = array<i64: 1, 4, 8, 8>}]} {
    %c0_i32 = arith.constant 0 : i32
    %0 = arith.cmpi eq, %arg1, %c0_i32 : i32
    %1 = arith.extui %0 : i1 to i32
    %c0_i32_0 = arith.constant 0 : i32
    %2 = arith.cmpi ne, %1, %c0_i32_0 : i32
    scf.if %2 {
      %cst_37 = arith.constant -1.000000e+30 : f32
      %49 = vector.broadcast %cst_37 : f32 to vector<4x8x1xf32>
      %c0_38 = arith.constant 0 : index
      %c0_39 = arith.constant 0 : index
      %c0_40 = arith.constant 0 : index
      %50 = vector.load %arg6[%c0_38, %c0_39, %c0_40] : memref<4x8x1xf32, #tpu.memory_space<vmem>>, vector<4x8x1xf32>
      tpu.vector_store %arg6[%c0_38, %c0_39, %c0_40], %49 {strides = array<i32>} : memref<4x8x1xf32, #tpu.memory_space<vmem>>, vector<4x8x1xf32>,
      %cst_41 = arith.constant 0.000000e+00 : f32
      %51 = vector.broadcast %cst_41 : f32 to vector<4x8x1xf32>
      %c0_42 = arith.constant 0 : index
      %c0_43 = arith.constant 0 : index
      %c0_44 = arith.constant 0 : index
      %52 = vector.load %arg7[%c0_42, %c0_43, %c0_44] : memref<4x8x1xf32, #tpu.memory_space<vmem>>, vector<4x8x1xf32>
      tpu.vector_store %arg7[%c0_42, %c0_43, %c0_44], %51 {strides = array<i32>} : memref<4x8x1xf32, #tpu.memory_space<vmem>>, vector<4x8x1xf32>,
      %cst_45 = arith.constant 0.000000e+00 : f32
      %53 = vector.broadcast %cst_45 : f32 to vector<4x8x8xf32>
      %c0_46 = arith.constant 0 : index
      %c0_47 = arith.constant 0 : index
      %c0_48 = arith.constant 0 : index
      %54 = vector.load %arg8[%c0_46, %c0_47, %c0_48] : memref<4x8x8xf32, #tpu.memory_space<vmem>>, vector<4x8x8xf32>
      tpu.vector_store %arg8[%c0_46, %c0_47, %c0_48], %53 {strides = array<i32>} : memref<4x8x8xf32, #tpu.memory_space<vmem>>, vector<4x8x8xf32>,
    } else {
    }
    %c0 = arith.constant 0 : index
    %c0_1 = arith.constant 0 : index
    %c0_2 = arith.constant 0 : index
    %c0_3 = arith.constant 0 : index
    %3 = vector.load %arg2[%c0, %c0_1, %c0_2, %c0_3] : memref<1x4x8x8xf32, #tpu.memory_space<vmem>>, vector<1x4x8x8xf32>
    %4 = vector.shape_cast %3 : vector<1x4x8x8xf32> to vector<4x8x8xf32>
    %cst = arith.constant 0.353553385 : f32
    %5 = vector.broadcast %cst : f32 to vector<4x8x8xf32>
    %6 = arith.mulf %4, %5 : vector<4x8x8xf32>
    %7 = arith.truncf %6 : vector<4x8x8xf32> to vector<4x8x8xbf16>
    %c0_4 = arith.constant 0 : index
    %c0_5 = arith.constant 0 : index
    %c0_6 = arith.constant 0 : index
    %c0_7 = arith.constant 0 : index
    %8 = vector.load %arg3[%c0_4, %c0_5, %c0_6, %c0_7] : memref<1x4x8x8xf32, #tpu.memory_space<vmem>>, vector<1x4x8x8xf32>
    %9 = vector.shape_cast %8 : vector<1x4x8x8xf32> to vector<4x8x8xf32>
    %10 = arith.truncf %9 : vector<4x8x8xf32> to vector<4x8x8xbf16>
    "tpu.trace_start"() <{level = 10 : i32, message = "hqd,hkd->hqk"}> : () -> ()
    %cst_8 = arith.constant dense<0.000000e+00> : vector<4x8x8xf32>
    %11 = tpu.matmul %7, %10, %cst_8 {dimension_numbers = #tpu.dot_dimension_numbers<[2], [2], [1], [1], [0, 0, 0, 1, 1, 1], [0], [0]>} : vector<4x8x8xbf16>, vector<4x8x8xbf16>, vector<4x8x8xf32> -> vector<4x8x8xf32>
    "tpu.trace_stop"() : () -> ()
    %12 = tpu.iota {dimensions = array<i32: 1>} : vector<4x8x8xi32>
    %13 = tpu.iota {dimensions = array<i32: 2>} : vector<4x8x8xi32>
    %c8_i32 = arith.constant 8 : i32
    %14 = arith.muli %arg1, %c8_i32 : i32
    %15 = vector.broadcast %14 : i32 to vector<4x8x8xi32>
    %16 = arith.addi %13, %15 : vector<4x8x8xi32>
    %17 = arith.cmpi sgt, %16, %12 : vector<4x8x8xi32>
    %cst_9 = arith.constant -1.000000e+30 : f32
    %18 = vector.broadcast %cst_9 : f32 to vector<4x8x8xf32>
    %19 = arith.select %17, %18, %11 : vector<4x8x8xi1>, vector<4x8x8xf32>
    %c0_10 = arith.constant 0 : index
    %c0_11 = arith.constant 0 : index
    %c0_12 = arith.constant 0 : index
    %20 = vector.load %arg6[%c0_10, %c0_11, %c0_12] : memref<4x8x1xf32, #tpu.memory_space<vmem>>, vector<4x8x1xf32>
    %cst_13 = arith.constant dense<0xFF800000> : vector<4x8xf32>
    %21 = vector.multi_reduction <maximumf>, %19, %cst_13 [2] : vector<4x8x8xf32> to vector<4x8xf32>
    %22 = vector.shape_cast %21 : vector<4x8xf32> to vector<4x8x1xf32>
    %23 = arith.maximumf %20, %22 : vector<4x8x1xf32>
    %24 = arith.subf %20, %23 : vector<4x8x1xf32>
    %25 = math.exp %24 : vector<4x8x1xf32>
    %26 = vector.broadcast %23 : vector<4x8x1xf32> to vector<4x8x8xf32>
    %27 = arith.subf %19, %26 : vector<4x8x8xf32>
    %28 = math.exp %27 : vector<4x8x8xf32>
    %c0_14 = arith.constant 0 : index
    %c0_15 = arith.constant 0 : index
    %c0_16 = arith.constant 0 : index
    %29 = vector.load %arg7[%c0_14, %c0_15, %c0_16] : memref<4x8x1xf32, #tpu.memory_space<vmem>>, vector<4x8x1xf32>
    %30 = arith.mulf %25, %29 : vector<4x8x1xf32>
    %cst_17 = arith.constant dense<0.000000e+00> : vector<4x8xf32>
    %31 = vector.multi_reduction <add>, %28, %cst_17 [2] : vector<4x8x8xf32> to vector<4x8xf32>
    %32 = vector.shape_cast %31 : vector<4x8xf32> to vector<4x8x1xf32>
    %33 = arith.addf %30, %32 : vector<4x8x1xf32>
    %c0_18 = arith.constant 0 : index
    %c0_19 = arith.constant 0 : index
    %c0_20 = arith.constant 0 : index
    %34 = vector.load %arg7[%c0_18, %c0_19, %c0_20] : memref<4x8x1xf32, #tpu.memory_space<vmem>>, vector<4x8x1xf32>
    tpu.vector_store %arg7[%c0_18, %c0_19, %c0_20], %33 {strides = array<i32>} : memref<4x8x1xf32, #tpu.memory_space<vmem>>, vector<4x8x1xf32>,
    %c0_21 = arith.constant 0 : index
    %c0_22 = arith.constant 0 : index
    %c0_23 = arith.constant 0 : index
    %35 = vector.load %arg8[%c0_21, %c0_22, %c0_23] : memref<4x8x8xf32, #tpu.memory_space<vmem>>, vector<4x8x8xf32>
    %36 = vector.broadcast %25 : vector<4x8x1xf32> to vector<4x8x8xf32>
    %37 = arith.mulf %36, %35 : vector<4x8x8xf32>
    %38 = arith.truncf %28 : vector<4x8x8xf32> to vector<4x8x8xbf16>
    %c0_24 = arith.constant 0 : index
    %c0_25 = arith.constant 0 : index
    %c0_26 = arith.constant 0 : index
    %c0_27 = arith.constant 0 : index
    %39 = vector.load %arg4[%c0_24, %c0_25, %c0_26, %c0_27] : memref<1x4x8x8xf32, #tpu.memory_space<vmem>>, vector<1x4x8x8xf32>
    %40 = vector.shape_cast %39 : vector<1x4x8x8xf32> to vector<4x8x8xf32>
    %41 = arith.truncf %40 : vector<4x8x8xf32> to vector<4x8x8xbf16>
    "tpu.trace_start"() <{level = 10 : i32, message = "hqk,hkd->hqd"}> : () -> ()
    %cst_28 = arith.constant dense<0.000000e+00> : vector<4x8x8xf32>
    %42 = tpu.matmul %38, %41, %cst_28 {dimension_numbers = #tpu.dot_dimension_numbers<[2], [1], [1], [2], [0, 0, 0, 1, 1, 2], [0], [0]>} : vector<4x8x8xbf16>, vector<4x8x8xbf16>, vector<4x8x8xf32> -> vector<4x8x8xf32>
    "tpu.trace_stop"() : () -> ()
    %43 = arith.addf %37, %42 : vector<4x8x8xf32>
    %c0_29 = arith.constant 0 : index
    %c0_30 = arith.constant 0 : index
    %c0_31 = arith.constant 0 : index
    %44 = vector.load %arg8[%c0_29, %c0_30, %c0_31] : memref<4x8x8xf32, #tpu.memory_space<vmem>>, vector<4x8x8xf32>
    tpu.vector_store %arg8[%c0_29, %c0_30, %c0_31], %43 {strides = array<i32>} : memref<4x8x8xf32, #tpu.memory_space<vmem>>, vector<4x8x8xf32>,
    %c0_32 = arith.constant 0 : index
    %c0_33 = arith.constant 0 : index
    %c0_34 = arith.constant 0 : index
    %45 = vector.load %arg6[%c0_32, %c0_33, %c0_34] : memref<4x8x1xf32, #tpu.memory_space<vmem>>, vector<4x8x1xf32>
    tpu.vector_store %arg6[%c0_32, %c0_33, %c0_34], %23 {strides = array<i32>} : memref<4x8x1xf32, #tpu.memory_space<vmem>>, vector<4x8x1xf32>,
    %c0_i32_35 = arith.constant 0 : i32
    %46 = arith.cmpi eq, %arg1, %c0_i32_35 : i32
    %47 = arith.extui %46 : i1 to i32
    %c0_i32_36 = arith.constant 0 : i32
    %48 = arith.cmpi ne, %47, %c0_i32_36 : i32
    scf.if %48 {
      %c0_37 = arith.constant 0 : index
      %c0_38 = arith.constant 0 : index
      %c0_39 = arith.constant 0 : index
      %49 = vector.load %arg8[%c0_37, %c0_38, %c0_39] : memref<4x8x8xf32, #tpu.memory_space<vmem>>, vector<4x8x8xf32>
      %c0_40 = arith.constant 0 : index
      %c0_41 = arith.constant 0 : index
      %c0_42 = arith.constant 0 : index
      %50 = vector.load %arg7[%c0_40, %c0_41, %c0_42] : memref<4x8x1xf32, #tpu.memory_space<vmem>>, vector<4x8x1xf32>
      %51 = tpu.reciprocal %50 {approx = true} : vector<4x8x1xf32> -> vector<4x8x1xf32>
      %52 = vector.broadcast %51 : vector<4x8x1xf32> to vector<4x8x8xf32>
      %53 = arith.mulf %49, %52 : vector<4x8x8xf32>
      %c0_43 = arith.constant 0 : index
      %c0_44 = arith.constant 0 : index
      %c0_45 = arith.constant 0 : index
      %c0_46 = arith.constant 0 : index
      %54 = vector.load %arg5[%c0_43, %c0_44, %c0_45, %c0_46] : memref<1x4x8x8xf32, #tpu.memory_space<vmem>>, vector<1x4x8x8xf32>
      %55 = vector.shape_cast %54 : vector<1x4x8x8xf32> to vector<4x8x8xf32>
      %56 = vector.shape_cast %53 : vector<4x8x8xf32> to vector<1x4x8x8xf32>
      tpu.vector_store %arg5[%c0_43, %c0_44, %c0_45, %c0_46], %56 {strides = array<i32>} : memref<1x4x8x8xf32, #tpu.memory_space<vmem>>, vector<1x4x8x8xf32>,
    } else {
    }
    return
  }
  func.func @transform_0(%arg0: i32, %arg1: i32) -> (i32, i32, i32, i32) {
    %c0_i32 = arith.constant 0 : i32
    %c0_i32_0 = arith.constant 0 : i32
    %c0_i32_1 = arith.constant 0 : i32
    %c0_i32_2 = arith.constant 0 : i32
    return %arg0, %c0_i32, %c0_i32_0, %c0_i32_1 : i32, i32, i32, i32
  }
  func.func @transform_1(%arg0: i32, %arg1: i32) -> (i32, i32, i32, i32) {
    %c0_i32 = arith.constant 0 : i32
    %c0_i32_0 = arith.constant 0 : i32
    %c0_i32_1 = arith.constant 0 : i32
    return %arg0, %c0_i32, %arg1, %c0_i32_0 : i32, i32, i32, i32
  }
  func.func @transform_2(%arg0: i32, %arg1: i32) -> (i32, i32, i32, i32) {
    %c0_i32 = arith.constant 0 : i32
    %c0_i32_0 = arith.constant 0 : i32
    %c0_i32_1 = arith.constant 0 : i32
    return %arg0, %c0_i32, %arg1, %c0_i32_0 : i32, i32, i32, i32
  }
  func.func @transform_3(%arg0: i32, %arg1: i32) -> (i32, i32, i32, i32) {
    %c0_i32 = arith.constant 0 : i32
    %c0_i32_0 = arith.constant 0 : i32
    %c0_i32_1 = arith.constant 0 : i32
    %c0_i32_2 = arith.constant 0 : i32
    return %arg0, %c0_i32, %c0_i32_0, %c0_i32_1 : i32, i32, i32, i32
  }
}

module attributes {stable_mosaic.version = 11 : i64} {
  func.func @_linear_kernel(%arg0: i32, %arg1: i32, %arg2: i32, %arg3: memref<16x32xf32, #tpu.memory_space<vmem>>, %arg4: memref<32x32xf32, #tpu.memory_space<vmem>>, %arg5: memref<1x32xf32, #tpu.memory_space<vmem>>, %arg6: memref<16x32xf32, #tpu.memory_space<vmem>>, %arg7: memref<16x32xf32, #tpu.memory_space<vmem>>) attributes {dimension_semantics = [#tpu.dimension_semantics<parallel>, #tpu.dimension_semantics<parallel>, #tpu.dimension_semantics<arbitrary>], iteration_bounds = array<i64: 1, 1, 1>, scalar_prefetch = 0 : i64, scratch_operands = 1 : i64, tpu.core_type = #tpu.core_type<tc>, window_params = [{transform_indices = @transform_0, window_bounds = array<i64: 16, 32>}, {transform_indices = @transform_1, window_bounds = array<i64: 32, 32>}, {transform_indices = @transform_2, window_bounds = array<i64: 1, 32>}, {transform_indices = @transform_3, window_bounds = array<i64: 16, 32>}]} {
    %c0_i32 = arith.constant 0 : i32
    %0 = arith.cmpi eq, %arg2, %c0_i32 : i32
    %1 = arith.extui %0 : i1 to i32
    %c0_i32_0 = arith.constant 0 : i32
    %2 = arith.cmpi ne, %1, %c0_i32_0 : i32
    scf.if %2 {
      %cst_10 = arith.constant 0.000000e+00 : f32
      %14 = vector.broadcast %cst_10 : f32 to vector<16x32xf32>
      %c0_11 = arith.constant 0 : index
      %c0_12 = arith.constant 0 : index
      %15 = vector.load %arg7[%c0_11, %c0_12] : memref<16x32xf32, #tpu.memory_space<vmem>>, vector<16x32xf32>
      tpu.vector_store %arg7[%c0_11, %c0_12], %14 {strides = array<i32>} : memref<16x32xf32, #tpu.memory_space<vmem>>, vector<16x32xf32>,
    } else {
    }
    %c0 = arith.constant 0 : index
    %c0_1 = arith.constant 0 : index
    %3 = vector.load %arg7[%c0, %c0_1] : memref<16x32xf32, #tpu.memory_space<vmem>>, vector<16x32xf32>
    %c0_2 = arith.constant 0 : index
    %c0_3 = arith.constant 0 : index
    %4 = vector.load %arg3[%c0_2, %c0_3] : memref<16x32xf32, #tpu.memory_space<vmem>>, vector<16x32xf32>
    %5 = arith.truncf %4 : vector<16x32xf32> to vector<16x32xbf16>
    %c0_4 = arith.constant 0 : index
    %c0_5 = arith.constant 0 : index
    %6 = vector.load %arg4[%c0_4, %c0_5] : memref<32x32xf32, #tpu.memory_space<vmem>>, vector<32x32xf32>
    %7 = arith.truncf %6 : vector<32x32xf32> to vector<32x32xbf16>
    %cst = arith.constant dense<0.000000e+00> : vector<16x32xf32>
    %8 = tpu.matmul %5, %7, %cst {dimension_numbers = #tpu.dot_dimension_numbers<[1], [0], [0], [1], [0, 0, 1, 1], [], []>} : vector<16x32xbf16>, vector<32x32xbf16>, vector<16x32xf32> -> vector<16x32xf32>
    %9 = arith.addf %3, %8 : vector<16x32xf32>
    %c0_6 = arith.constant 0 : index
    %c0_7 = arith.constant 0 : index
    %10 = vector.load %arg7[%c0_6, %c0_7] : memref<16x32xf32, #tpu.memory_space<vmem>>, vector<16x32xf32>
    tpu.vector_store %arg7[%c0_6, %c0_7], %9 {strides = array<i32>} : memref<16x32xf32, #tpu.memory_space<vmem>>, vector<16x32xf32>,
    %c0_i32_8 = arith.constant 0 : i32
    %11 = arith.cmpi eq, %arg2, %c0_i32_8 : i32
    %12 = arith.extui %11 : i1 to i32
    %c0_i32_9 = arith.constant 0 : i32
    %13 = arith.cmpi ne, %12, %c0_i32_9 : i32
    scf.if %13 {
      %c0_10 = arith.constant 0 : index
      %c0_11 = arith.constant 0 : index
      %14 = vector.load %arg7[%c0_10, %c0_11] : memref<16x32xf32, #tpu.memory_space<vmem>>, vector<16x32xf32>
      %c0_12 = arith.constant 0 : index
      %c0_13 = arith.constant 0 : index
      %15 = vector.load %arg5[%c0_12, %c0_13] : memref<1x32xf32, #tpu.memory_space<vmem>>, vector<1x32xf32>
      %16 = vector.broadcast %15 : vector<1x32xf32> to vector<16x32xf32>
      %17 = arith.addf %14, %16 : vector<16x32xf32>
      %c0_14 = arith.constant 0 : index
      %c0_15 = arith.constant 0 : index
      %18 = vector.load %arg6[%c0_14, %c0_15] : memref<16x32xf32, #tpu.memory_space<vmem>>, vector<16x32xf32>
      tpu.vector_store %arg6[%c0_14, %c0_15], %17 {strides = array<i32>} : memref<16x32xf32, #tpu.memory_space<vmem>>, vector<16x32xf32>,
    } else {
    }
    return
  }
  func.func @transform_0(%arg0: i32, %arg1: i32, %arg2: i32) -> (i32, i32) {
    %c0_i32 = arith.constant 0 : i32
    return %arg0, %arg2 : i32, i32
  }
  func.func @transform_1(%arg0: i32, %arg1: i32, %arg2: i32) -> (i32, i32) {
    %c0_i32 = arith.constant 0 : i32
    return %arg2, %arg1 : i32, i32
  }
  func.func @transform_2(%arg0: i32, %arg1: i32, %arg2: i32) -> (i32, i32) {
    %c0_i32 = arith.constant 0 : i32
    %c0_i32_0 = arith.constant 0 : i32
    return %c0_i32, %arg1 : i32, i32
  }
  func.func @transform_3(%arg0: i32, %arg1: i32, %arg2: i32) -> (i32, i32) {
    %c0_i32 = arith.constant 0 : i32
    return %arg0, %arg1 : i32, i32
  }
}

module attributes {stable_mosaic.version = 11 : i64} {
  func.func @_ffn_kernel(%arg0: i32, %arg1: i32, %arg2: memref<16x32xf32, #tpu.memory_space<vmem>>, %arg3: memref<32x64xf32, #tpu.memory_space<vmem>>, %arg4: memref<1x64xf32, #tpu.memory_space<vmem>>, %arg5: memref<64x32xf32, #tpu.memory_space<vmem>>, %arg6: memref<1x32xf32, #tpu.memory_space<vmem>>, %arg7: memref<1x32xf32, #tpu.memory_space<vmem>>, %arg8: memref<1x32xf32, #tpu.memory_space<vmem>>, %arg9: memref<16x32xf32, #tpu.memory_space<vmem>>, %arg10: memref<16x32xf32, #tpu.memory_space<vmem>>) attributes {dimension_semantics = [#tpu.dimension_semantics<parallel>, #tpu.dimension_semantics<arbitrary>], iteration_bounds = array<i64: 1, 1>, scalar_prefetch = 0 : i64, scratch_operands = 1 : i64, tpu.core_type = #tpu.core_type<tc>, window_params = [{transform_indices = @transform_0, window_bounds = array<i64: 16, 32>}, {transform_indices = @transform_1, window_bounds = array<i64: 32, 64>}, {transform_indices = @transform_2, window_bounds = array<i64: 1, 64>}, {transform_indices = @transform_3, window_bounds = array<i64: 64, 32>}, {pipeline_mode = #tpu.pipeline_mode<synchronous>, transform_indices = @transform_4, window_bounds = array<i64: 1, 32>}, {pipeline_mode = #tpu.pipeline_mode<synchronous>, transform_indices = @transform_5, window_bounds = array<i64: 1, 32>}, {pipeline_mode = #tpu.pipeline_mode<synchronous>, transform_indices = @transform_6, window_bounds = array<i64: 1, 32>}, {transform_indices = @transform_7, window_bounds = array<i64: 16, 32>}]} {
    %c0_i32 = arith.constant 0 : i32
    %0 = arith.cmpi eq, %arg1, %c0_i32 : i32
    %1 = arith.extui %0 : i1 to i32
    %c0_i32_0 = arith.constant 0 : i32
    %2 = arith.cmpi ne, %1, %c0_i32_0 : i32
    scf.if %2 {
      %cst_31 = arith.constant 0.000000e+00 : f32
      %53 = vector.broadcast %cst_31 : f32 to vector<16x32xf32>
      %c0_32 = arith.constant 0 : index
      %c0_33 = arith.constant 0 : index
      %54 = vector.load %arg10[%c0_32, %c0_33] : memref<16x32xf32, #tpu.memory_space<vmem>>, vector<16x32xf32>
      tpu.vector_store %arg10[%c0_32, %c0_33], %53 {strides = array<i32>} : memref<16x32xf32, #tpu.memory_space<vmem>>, vector<16x32xf32>,
    } else {
    }
    %c0 = arith.constant 0 : index
    %c0_1 = arith.constant 0 : index
    %3 = vector.load %arg2[%c0, %c0_1] : memref<16x32xf32, #tpu.memory_space<vmem>>, vector<16x32xf32>
    %4 = arith.truncf %3 : vector<16x32xf32> to vector<16x32xbf16>
    %c0_2 = arith.constant 0 : index
    %c0_3 = arith.constant 0 : index
    %5 = vector.load %arg3[%c0_2, %c0_3] : memref<32x64xf32, #tpu.memory_space<vmem>>, vector<32x64xf32>
    %6 = arith.truncf %5 : vector<32x64xf32> to vector<32x64xbf16>
    %cst = arith.constant dense<0.000000e+00> : vector<16x64xf32>
    %7 = tpu.matmul %4, %6, %cst {dimension_numbers = #tpu.dot_dimension_numbers<[1], [0], [0], [1], [0, 0, 1, 1], [], []>} : vector<16x32xbf16>, vector<32x64xbf16>, vector<16x64xf32> -> vector<16x64xf32>
    %c0_4 = arith.constant 0 : index
    %c0_5 = arith.constant 0 : index
    %8 = vector.load %arg4[%c0_4, %c0_5] : memref<1x64xf32, #tpu.memory_space<vmem>>, vector<1x64xf32>
    %9 = vector.broadcast %8 : vector<1x64xf32> to vector<16x64xf32>
    %10 = arith.addf %7, %9 : vector<16x64xf32>
    %cst_6 = arith.constant 0.000000e+00 : f32
    %11 = vector.broadcast %cst_6 : f32 to vector<16x64xf32>
    %12 = arith.maximumf %10, %11 : vector<16x64xf32>
    %c0_7 = arith.constant 0 : index
    %c0_8 = arith.constant 0 : index
    %13 = vector.load %arg10[%c0_7, %c0_8] : memref<16x32xf32, #tpu.memory_space<vmem>>, vector<16x32xf32>
    %14 = arith.truncf %12 : vector<16x64xf32> to vector<16x64xbf16>
    %c0_9 = arith.constant 0 : index
    %c0_10 = arith.constant 0 : index
    %15 = vector.load %arg5[%c0_9, %c0_10] : memref<64x32xf32, #tpu.memory_space<vmem>>, vector<64x32xf32>
    %16 = arith.truncf %15 : vector<64x32xf32> to vector<64x32xbf16>
    %cst_11 = arith.constant dense<0.000000e+00> : vector<16x32xf32>
    %17 = tpu.matmul %14, %16, %cst_11 {dimension_numbers = #tpu.dot_dimension_numbers<[1], [0], [0], [1], [0, 0, 1, 1], [], []>} : vector<16x64xbf16>, vector<64x32xbf16>, vector<16x32xf32> -> vector<16x32xf32>
    %18 = arith.addf %13, %17 : vector<16x32xf32>
    %c0_12 = arith.constant 0 : index
    %c0_13 = arith.constant 0 : index
    %19 = vector.load %arg10[%c0_12, %c0_13] : memref<16x32xf32, #tpu.memory_space<vmem>>, vector<16x32xf32>
    tpu.vector_store %arg10[%c0_12, %c0_13], %18 {strides = array<i32>} : memref<16x32xf32, #tpu.memory_space<vmem>>, vector<16x32xf32>,
    %c0_14 = arith.constant 0 : index
    %c0_15 = arith.constant 0 : index
    %20 = vector.load %arg10[%c0_14, %c0_15] : memref<16x32xf32, #tpu.memory_space<vmem>>, vector<16x32xf32>
    %c0_16 = arith.constant 0 : index
    %c0_17 = arith.constant 0 : index
    %21 = vector.load %arg6[%c0_16, %c0_17] : memref<1x32xf32, #tpu.memory_space<vmem>>, vector<1x32xf32>
    %22 = vector.broadcast %21 : vector<1x32xf32> to vector<16x32xf32>
    %23 = arith.addf %20, %22 : vector<16x32xf32>
    %c0_18 = arith.constant 0 : index
    %c0_19 = arith.constant 0 : index
    %24 = vector.load %arg2[%c0_18, %c0_19] : memref<16x32xf32, #tpu.memory_space<vmem>>, vector<16x32xf32>
    %25 = arith.addf %23, %24 : vector<16x32xf32>
    %c0_20 = arith.constant 0 : index
    %c0_21 = arith.constant 0 : index
    %26 = vector.load %arg7[%c0_20, %c0_21] : memref<1x32xf32, #tpu.memory_space<vmem>>, vector<1x32xf32>
    %c0_22 = arith.constant 0 : index
    %c0_23 = arith.constant 0 : index
    %27 = vector.load %arg8[%c0_22, %c0_23] : memref<1x32xf32, #tpu.memory_space<vmem>>, vector<1x32xf32>
    %cst_24 = arith.constant dense<0.000000e+00> : vector<16xf32>
    %28 = vector.multi_reduction <add>, %25, %cst_24 [1] : vector<16x32xf32> to vector<16xf32>
    %29 = vector.shape_cast %28 : vector<16xf32> to vector<16x1xf32>
    %cst_25 = arith.constant 3.200000e+01 : f32
    %30 = vector.broadcast %cst_25 : f32 to vector<16x1xf32>
    %31 = arith.divf %29, %30 : vector<16x1xf32>
    %32 = vector.broadcast %31 : vector<16x1xf32> to vector<16x32xf32>
    %33 = arith.subf %25, %32 : vector<16x32xf32>
    %34 = arith.mulf %33, %33 : vector<16x32xf32>
    %cst_26 = arith.constant dense<0.000000e+00> : vector<16xf32>
    %35 = vector.multi_reduction <add>, %34, %cst_26 [1] : vector<16x32xf32> to vector<16xf32>
    %36 = vector.shape_cast %35 : vector<16xf32> to vector<16x1xf32>
    %cst_27 = arith.constant 3.200000e+01 : f32
    %37 = vector.broadcast %cst_27 : f32 to vector<16x1xf32>
    %38 = arith.divf %36, %37 : vector<16x1xf32>
    %39 = vector.broadcast %31 : vector<16x1xf32> to vector<16x32xf32>
    %40 = arith.subf %25, %39 : vector<16x32xf32>
    %cst_28 = arith.constant 9.99999974E-6 : f32
    %41 = vector.broadcast %cst_28 : f32 to vector<16x1xf32>
    %42 = arith.addf %38, %41 : vector<16x1xf32>
    %43 = math.rsqrt %42 : vector<16x1xf32>
    %44 = vector.broadcast %43 : vector<16x1xf32> to vector<16x32xf32>
    %45 = arith.mulf %40, %44 : vector<16x32xf32>
    %46 = vector.broadcast %26 : vector<1x32xf32> to vector<16x32xf32>
    %47 = arith.mulf %45, %46 : vector<16x32xf32>
    %48 = vector.broadcast %27 : vector<1x32xf32> to vector<16x32xf32>
    %49 = arith.addf %47, %48 : vector<16x32xf32>
    %c0_i32_29 = arith.constant 0 : i32
    %50 = arith.cmpi eq, %arg1, %c0_i32_29 : i32
    %51 = arith.extui %50 : i1 to i32
    %c0_i32_30 = arith.constant 0 : i32
    %52 = arith.cmpi ne, %51, %c0_i32_30 : i32
    scf.if %52 {
      %c0_31 = arith.constant 0 : index
      %c0_32 = arith.constant 0 : index
      %53 = vector.load %arg9[%c0_31, %c0_32] : memref<16x32xf32, #tpu.memory_space<vmem>>, vector<16x32xf32>
      tpu.vector_store %arg9[%c0_31, %c0_32], %49 {strides = array<i32>} : memref<16x32xf32, #tpu.memory_space<vmem>>, vector<16x32xf32>,
    } else {
    }
    return
  }
  func.func @transform_0(%arg0: i32, %arg1: i32) -> (i32, i32) {
    %c0_i32 = arith.constant 0 : i32
    %c0_i32_0 = arith.constant 0 : i32
    return %arg0, %c0_i32 : i32, i32
  }
  func.func @transform_1(%arg0: i32, %arg1: i32) -> (i32, i32) {
    %c0_i32 = arith.constant 0 : i32
    %c0_i32_0 = arith.constant 0 : i32
    return %c0_i32, %arg1 : i32, i32
  }
  func.func @transform_2(%arg0: i32, %arg1: i32) -> (i32, i32) {
    %c0_i32 = arith.constant 0 : i32
    %c0_i32_0 = arith.constant 0 : i32
    return %c0_i32, %arg1 : i32, i32
  }
  func.func @transform_3(%arg0: i32, %arg1: i32) -> (i32, i32) {
    %c0_i32 = arith.constant 0 : i32
    %c0_i32_0 = arith.constant 0 : i32
    return %arg1, %c0_i32 : i32, i32
  }
  func.func @transform_4(%arg0: i32, %arg1: i32) -> (i32, i32) {
    %c0_i32 = arith.constant 0 : i32
    %c0_i32_0 = arith.constant 0 : i32
    %c0_i32_1 = arith.constant 0 : i32
    return %c0_i32, %c0_i32_0 : i32, i32
  }
  func.func @transform_5(%arg0: i32, %arg1: i32) -> (i32, i32) {
    %c0_i32 = arith.constant 0 : i32
    %c0_i32_0 = arith.constant 0 : i32
    %c0_i32_1 = arith.constant 0 : i32
    return %c0_i32, %c0_i32_0 : i32, i32
  }
  func.func @transform_6(%arg0: i32, %arg1: i32) -> (i32, i32) {
    %c0_i32 = arith.constant 0 : i32
    %c0_i32_0 = arith.constant 0 : i32
    %c0_i32_1 = arith.constant 0 : i32
    return %c0_i32, %c0_i32_0 : i32, i32
  }
  func.func @transform_7(%arg0: i32, %arg1: i32) -> (i32, i32) {
    %c0_i32 = arith.constant 0 : i32
    %c0_i32_0 = arith.constant 0 : i32
    return %arg0, %c0_i32 : i32, i32
  }
}

module attributes {stable_mosaic.version = 11 : i64} {
  func.func @_ln_kernel(%arg0: i32, %arg1: memref<16x32xf32, #tpu.memory_space<vmem>>, %arg2: memref<1x32xf32, #tpu.memory_space<vmem>>, %arg3: memref<1x32xf32, #tpu.memory_space<vmem>>, %arg4: memref<16x32xf32, #tpu.memory_space<vmem>>) attributes {dimension_semantics = [#tpu.dimension_semantics<parallel>], iteration_bounds = array<i64: 1>, scalar_prefetch = 0 : i64, scratch_operands = 0 : i64, tpu.core_type = #tpu.core_type<tc>, window_params = [{transform_indices = @transform_0, window_bounds = array<i64: 16, 32>}, {pipeline_mode = #tpu.pipeline_mode<synchronous>, transform_indices = @transform_1, window_bounds = array<i64: 1, 32>}, {pipeline_mode = #tpu.pipeline_mode<synchronous>, transform_indices = @transform_2, window_bounds = array<i64: 1, 32>}, {transform_indices = @transform_3, window_bounds = array<i64: 16, 32>}]} {
    %c0 = arith.constant 0 : index
    %c0_0 = arith.constant 0 : index
    %0 = vector.load %arg1[%c0, %c0_0] : memref<16x32xf32, #tpu.memory_space<vmem>>, vector<16x32xf32>
    %c0_1 = arith.constant 0 : index
    %c0_2 = arith.constant 0 : index
    %1 = vector.load %arg2[%c0_1, %c0_2] : memref<1x32xf32, #tpu.memory_space<vmem>>, vector<1x32xf32>
    %c0_3 = arith.constant 0 : index
    %c0_4 = arith.constant 0 : index
    %2 = vector.load %arg3[%c0_3, %c0_4] : memref<1x32xf32, #tpu.memory_space<vmem>>, vector<1x32xf32>
    %cst = arith.constant dense<0.000000e+00> : vector<16xf32>
    %3 = vector.multi_reduction <add>, %0, %cst [1] : vector<16x32xf32> to vector<16xf32>
    %4 = vector.shape_cast %3 : vector<16xf32> to vector<16x1xf32>
    %cst_5 = arith.constant 3.200000e+01 : f32
    %5 = vector.broadcast %cst_5 : f32 to vector<16x1xf32>
    %6 = arith.divf %4, %5 : vector<16x1xf32>
    %7 = vector.broadcast %6 : vector<16x1xf32> to vector<16x32xf32>
    %8 = arith.subf %0, %7 : vector<16x32xf32>
    %9 = arith.mulf %8, %8 : vector<16x32xf32>
    %cst_6 = arith.constant dense<0.000000e+00> : vector<16xf32>
    %10 = vector.multi_reduction <add>, %9, %cst_6 [1] : vector<16x32xf32> to vector<16xf32>
    %11 = vector.shape_cast %10 : vector<16xf32> to vector<16x1xf32>
    %cst_7 = arith.constant 3.200000e+01 : f32
    %12 = vector.broadcast %cst_7 : f32 to vector<16x1xf32>
    %13 = arith.divf %11, %12 : vector<16x1xf32>
    %14 = vector.broadcast %6 : vector<16x1xf32> to vector<16x32xf32>
    %15 = arith.subf %0, %14 : vector<16x32xf32>
    %cst_8 = arith.constant 9.99999974E-6 : f32
    %16 = vector.broadcast %cst_8 : f32 to vector<16x1xf32>
    %17 = arith.addf %13, %16 : vector<16x1xf32>
    %18 = math.rsqrt %17 : vector<16x1xf32>
    %19 = vector.broadcast %18 : vector<16x1xf32> to vector<16x32xf32>
    %20 = arith.mulf %15, %19 : vector<16x32xf32>
    %21 = vector.broadcast %1 : vector<1x32xf32> to vector<16x32xf32>
    %22 = arith.mulf %20, %21 : vector<16x32xf32>
    %23 = vector.broadcast %2 : vector<1x32xf32> to vector<16x32xf32>
    %24 = arith.addf %22, %23 : vector<16x32xf32>
    %c0_9 = arith.constant 0 : index
    %c0_10 = arith.constant 0 : index
    %25 = vector.load %arg4[%c0_9, %c0_10] : memref<16x32xf32, #tpu.memory_space<vmem>>, vector<16x32xf32>
    tpu.vector_store %arg4[%c0_9, %c0_10], %24 {strides = array<i32>} : memref<16x32xf32, #tpu.memory_space<vmem>>, vector<16x32xf32>,
    return
  }
  func.func @transform_0(%arg0: i32) -> (i32, i32) {
    %c0_i32 = arith.constant 0 : i32
    %c0_i32_0 = arith.constant 0 : i32
    return %arg0, %c0_i32 : i32, i32
  }
  func.func @transform_1(%arg0: i32) -> (i32, i32) {
    %c0_i32 = arith.constant 0 : i32
    %c0_i32_0 = arith.constant 0 : i32
    %c0_i32_1 = arith.constant 0 : i32
    return %c0_i32, %c0_i32_0 : i32, i32
  }
  func.func @transform_2(%arg0: i32) -> (i32, i32) {
    %c0_i32 = arith.constant 0 : i32
    %c0_i32_0 = arith.constant 0 : i32
    %c0_i32_1 = arith.constant 0 : i32
    return %c0_i32, %c0_i32_0 : i32, i32
  }
  func.func @transform_3(%arg0: i32) -> (i32, i32) {
    %c0_i32 = arith.constant 0 : i32
    %c0_i32_0 = arith.constant 0 : i32
    return %arg0, %c0_i32 : i32, i32
  }
}

module attributes {stable_mosaic.version = 11 : i64} {
  func.func @_linear_kernel(%arg0: i32, %arg1: i32, %arg2: i32, %arg3: memref<16x32xf32, #tpu.memory_space<vmem>>, %arg4: memref<32x64xf32, #tpu.memory_space<vmem>>, %arg5: memref<1x64xf32, #tpu.memory_space<vmem>>, %arg6: memref<16x64xf32, #tpu.memory_space<vmem>>, %arg7: memref<16x64xf32, #tpu.memory_space<vmem>>) attributes {dimension_semantics = [#tpu.dimension_semantics<parallel>, #tpu.dimension_semantics<parallel>, #tpu.dimension_semantics<arbitrary>], iteration_bounds = array<i64: 1, 1, 1>, scalar_prefetch = 0 : i64, scratch_operands = 1 : i64, tpu.core_type = #tpu.core_type<tc>, window_params = [{transform_indices = @transform_0, window_bounds = array<i64: 16, 32>}, {transform_indices = @transform_1, window_bounds = array<i64: 32, 64>}, {transform_indices = @transform_2, window_bounds = array<i64: 1, 64>}, {transform_indices = @transform_3, window_bounds = array<i64: 16, 64>}]} {
    %c0_i32 = arith.constant 0 : i32
    %0 = arith.cmpi eq, %arg2, %c0_i32 : i32
    %1 = arith.extui %0 : i1 to i32
    %c0_i32_0 = arith.constant 0 : i32
    %2 = arith.cmpi ne, %1, %c0_i32_0 : i32
    scf.if %2 {
      %cst_10 = arith.constant 0.000000e+00 : f32
      %14 = vector.broadcast %cst_10 : f32 to vector<16x64xf32>
      %c0_11 = arith.constant 0 : index
      %c0_12 = arith.constant 0 : index
      %15 = vector.load %arg7[%c0_11, %c0_12] : memref<16x64xf32, #tpu.memory_space<vmem>>, vector<16x64xf32>
      tpu.vector_store %arg7[%c0_11, %c0_12], %14 {strides = array<i32>} : memref<16x64xf32, #tpu.memory_space<vmem>>, vector<16x64xf32>,
    } else {
    }
    %c0 = arith.constant 0 : index
    %c0_1 = arith.constant 0 : index
    %3 = vector.load %arg7[%c0, %c0_1] : memref<16x64xf32, #tpu.memory_space<vmem>>, vector<16x64xf32>
    %c0_2 = arith.constant 0 : index
    %c0_3 = arith.constant 0 : index
    %4 = vector.load %arg3[%c0_2, %c0_3] : memref<16x32xf32, #tpu.memory_space<vmem>>, vector<16x32xf32>
    %5 = arith.truncf %4 : vector<16x32xf32> to vector<16x32xbf16>
    %c0_4 = arith.constant 0 : index
    %c0_5 = arith.constant 0 : index
    %6 = vector.load %arg4[%c0_4, %c0_5] : memref<32x64xf32, #tpu.memory_space<vmem>>, vector<32x64xf32>
    %7 = arith.truncf %6 : vector<32x64xf32> to vector<32x64xbf16>
    %cst = arith.constant dense<0.000000e+00> : vector<16x64xf32>
    %8 = tpu.matmul %5, %7, %cst {dimension_numbers = #tpu.dot_dimension_numbers<[1], [0], [0], [1], [0, 0, 1, 1], [], []>} : vector<16x32xbf16>, vector<32x64xbf16>, vector<16x64xf32> -> vector<16x64xf32>
    %9 = arith.addf %3, %8 : vector<16x64xf32>
    %c0_6 = arith.constant 0 : index
    %c0_7 = arith.constant 0 : index
    %10 = vector.load %arg7[%c0_6, %c0_7] : memref<16x64xf32, #tpu.memory_space<vmem>>, vector<16x64xf32>
    tpu.vector_store %arg7[%c0_6, %c0_7], %9 {strides = array<i32>} : memref<16x64xf32, #tpu.memory_space<vmem>>, vector<16x64xf32>,
    %c0_i32_8 = arith.constant 0 : i32
    %11 = arith.cmpi eq, %arg2, %c0_i32_8 : i32
    %12 = arith.extui %11 : i1 to i32
    %c0_i32_9 = arith.constant 0 : i32
    %13 = arith.cmpi ne, %12, %c0_i32_9 : i32
    scf.if %13 {
      %c0_10 = arith.constant 0 : index
      %c0_11 = arith.constant 0 : index
      %14 = vector.load %arg7[%c0_10, %c0_11] : memref<16x64xf32, #tpu.memory_space<vmem>>, vector<16x64xf32>
      %c0_12 = arith.constant 0 : index
      %c0_13 = arith.constant 0 : index
      %15 = vector.load %arg5[%c0_12, %c0_13] : memref<1x64xf32, #tpu.memory_space<vmem>>, vector<1x64xf32>
      %16 = vector.broadcast %15 : vector<1x64xf32> to vector<16x64xf32>
      %17 = arith.addf %14, %16 : vector<16x64xf32>
      %c0_14 = arith.constant 0 : index
      %c0_15 = arith.constant 0 : index
      %18 = vector.load %arg6[%c0_14, %c0_15] : memref<16x64xf32, #tpu.memory_space<vmem>>, vector<16x64xf32>
      tpu.vector_store %arg6[%c0_14, %c0_15], %17 {strides = array<i32>} : memref<16x64xf32, #tpu.memory_space<vmem>>, vector<16x64xf32>,
    } else {
    }
    return
  }
  func.func @transform_0(%arg0: i32, %arg1: i32, %arg2: i32) -> (i32, i32) {
    %c0_i32 = arith.constant 0 : i32
    return %arg0, %arg2 : i32, i32
  }
  func.func @transform_1(%arg0: i32, %arg1: i32, %arg2: i32) -> (i32, i32) {
    %c0_i32 = arith.constant 0 : i32
    return %arg2, %arg1 : i32, i32
  }
  func.func @transform_2(%arg0: i32, %arg1: i32, %arg2: i32) -> (i32, i32) {
    %c0_i32 = arith.constant 0 : i32
    %c0_i32_0 = arith.constant 0 : i32
    return %c0_i32, %arg1 : i32, i32
  }
  func.func @transform_3(%arg0: i32, %arg1: i32, %arg2: i32) -> (i32, i32) {
    %c0_i32 = arith.constant 0 : i32
    return %arg0, %arg1 : i32, i32
  }
}

module attributes {stable_mosaic.version = 11 : i64} {
  func.func @_attn_kernel(%arg0: i32, %arg1: i32, %arg2: memref<1x4x8x8xf32, #tpu.memory_space<vmem>>, %arg3: memref<1x4x8x8xf32, #tpu.memory_space<vmem>>, %arg4: memref<1x4x8x8xf32, #tpu.memory_space<vmem>>, %arg5: memref<1x4x8x8xf32, #tpu.memory_space<vmem>>, %arg6: memref<4x8x1xf32, #tpu.memory_space<vmem>>, %arg7: memref<4x8x1xf32, #tpu.memory_space<vmem>>, %arg8: memref<4x8x8xf32, #tpu.memory_space<vmem>>) attributes {dimension_semantics = [#tpu.dimension_semantics<parallel>, #tpu.dimension_semantics<arbitrary>], iteration_bounds = array<i64: 2, 1>, scalar_prefetch = 0 : i64, scratch_operands = 3 : i64, tpu.core_type = #tpu.core_type<tc>, window_params = [{transform_indices = @transform_0, window_bounds = array<i64: 1, 4, 8, 8>}, {transform_indices = @transform_1, window_bounds = array<i64: 1, 4, 8, 8>}, {transform_indices = @transform_2, window_bounds = array<i64: 1, 4, 8, 8>}, {transform_indices = @transform_3, window_bounds = array<i64: 1, 4, 8, 8>}]} {
    %c0_i32 = arith.constant 0 : i32
    %0 = arith.cmpi eq, %arg1, %c0_i32 : i32
    %1 = arith.extui %0 : i1 to i32
    %c0_i32_0 = arith.constant 0 : i32
    %2 = arith.cmpi ne, %1, %c0_i32_0 : i32
    scf.if %2 {
      %cst_36 = arith.constant -1.000000e+30 : f32
      %41 = vector.broadcast %cst_36 : f32 to vector<4x8x1xf32>
      %c0_37 = arith.constant 0 : index
      %c0_38 = arith.constant 0 : index
      %c0_39 = arith.constant 0 : index
      %42 = vector.load %arg6[%c0_37, %c0_38, %c0_39] : memref<4x8x1xf32, #tpu.memory_space<vmem>>, vector<4x8x1xf32>
      tpu.vector_store %arg6[%c0_37, %c0_38, %c0_39], %41 {strides = array<i32>} : memref<4x8x1xf32, #tpu.memory_space<vmem>>, vector<4x8x1xf32>,
      %cst_40 = arith.constant 0.000000e+00 : f32
      %43 = vector.broadcast %cst_40 : f32 to vector<4x8x1xf32>
      %c0_41 = arith.constant 0 : index
      %c0_42 = arith.constant 0 : index
      %c0_43 = arith.constant 0 : index
      %44 = vector.load %arg7[%c0_41, %c0_42, %c0_43] : memref<4x8x1xf32, #tpu.memory_space<vmem>>, vector<4x8x1xf32>
      tpu.vector_store %arg7[%c0_41, %c0_42, %c0_43], %43 {strides = array<i32>} : memref<4x8x1xf32, #tpu.memory_space<vmem>>, vector<4x8x1xf32>,
      %cst_44 = arith.constant 0.000000e+00 : f32
      %45 = vector.broadcast %cst_44 : f32 to vector<4x8x8xf32>
      %c0_45 = arith.constant 0 : index
      %c0_46 = arith.constant 0 : index
      %c0_47 = arith.constant 0 : index
      %46 = vector.load %arg8[%c0_45, %c0_46, %c0_47] : memref<4x8x8xf32, #tpu.memory_space<vmem>>, vector<4x8x8xf32>
      tpu.vector_store %arg8[%c0_45, %c0_46, %c0_47], %45 {strides = array<i32>} : memref<4x8x8xf32, #tpu.memory_space<vmem>>, vector<4x8x8xf32>,
    } else {
    }
    %c0 = arith.constant 0 : index
    %c0_1 = arith.constant 0 : index
    %c0_2 = arith.constant 0 : index
    %c0_3 = arith.constant 0 : index
    %3 = vector.load %arg2[%c0, %c0_1, %c0_2, %c0_3] : memref<1x4x8x8xf32, #tpu.memory_space<vmem>>, vector<1x4x8x8xf32>
    %4 = vector.shape_cast %3 : vector<1x4x8x8xf32> to vector<4x8x8xf32>
    %cst = arith.constant 0.353553385 : f32
    %5 = vector.broadcast %cst : f32 to vector<4x8x8xf32>
    %6 = arith.mulf %4, %5 : vector<4x8x8xf32>
    %7 = arith.truncf %6 : vector<4x8x8xf32> to vector<4x8x8xbf16>
    %c0_4 = arith.constant 0 : index
    %c0_5 = arith.constant 0 : index
    %c0_6 = arith.constant 0 : index
    %c0_7 = arith.constant 0 : index
    %8 = vector.load %arg3[%c0_4, %c0_5, %c0_6, %c0_7] : memref<1x4x8x8xf32, #tpu.memory_space<vmem>>, vector<1x4x8x8xf32>
    %9 = vector.shape_cast %8 : vector<1x4x8x8xf32> to vector<4x8x8xf32>
    %10 = arith.truncf %9 : vector<4x8x8xf32> to vector<4x8x8xbf16>
    "tpu.trace_start"() <{level = 10 : i32, message = "hqd,hkd->hqk"}> : () -> ()
    %cst_8 = arith.constant dense<0.000000e+00> : vector<4x8x8xf32>
    %11 = tpu.matmul %7, %10, %cst_8 {dimension_numbers = #tpu.dot_dimension_numbers<[2], [2], [1], [1], [0, 0, 0, 1, 1, 1], [0], [0]>} : vector<4x8x8xbf16>, vector<4x8x8xbf16>, vector<4x8x8xf32> -> vector<4x8x8xf32>
    "tpu.trace_stop"() : () -> ()
    %c0_9 = arith.constant 0 : index
    %c0_10 = arith.constant 0 : index
    %c0_11 = arith.constant 0 : index
    %12 = vector.load %arg6[%c0_9, %c0_10, %c0_11] : memref<4x8x1xf32, #tpu.memory_space<vmem>>, vector<4x8x1xf32>
    %cst_12 = arith.constant dense<0xFF800000> : vector<4x8xf32>
    %13 = vector.multi_reduction <maximumf>, %11, %cst_12 [2] : vector<4x8x8xf32> to vector<4x8xf32>
    %14 = vector.shape_cast %13 : vector<4x8xf32> to vector<4x8x1xf32>
    %15 = arith.maximumf %12, %14 : vector<4x8x1xf32>
    %16 = arith.subf %12, %15 : vector<4x8x1xf32>
    %17 = math.exp %16 : vector<4x8x1xf32>
    %18 = vector.broadcast %15 : vector<4x8x1xf32> to vector<4x8x8xf32>
    %19 = arith.subf %11, %18 : vector<4x8x8xf32>
    %20 = math.exp %19 : vector<4x8x8xf32>
    %c0_13 = arith.constant 0 : index
    %c0_14 = arith.constant 0 : index
    %c0_15 = arith.constant 0 : index
    %21 = vector.load %arg7[%c0_13, %c0_14, %c0_15] : memref<4x8x1xf32, #tpu.memory_space<vmem>>, vector<4x8x1xf32>
    %22 = arith.mulf %17, %21 : vector<4x8x1xf32>
    %cst_16 = arith.constant dense<0.000000e+00> : vector<4x8xf32>
    %23 = vector.multi_reduction <add>, %20, %cst_16 [2] : vector<4x8x8xf32> to vector<4x8xf32>
    %24 = vector.shape_cast %23 : vector<4x8xf32> to vector<4x8x1xf32>
    %25 = arith.addf %22, %24 : vector<4x8x1xf32>
    %c0_17 = arith.constant 0 : index
    %c0_18 = arith.constant 0 : index
    %c0_19 = arith.constant 0 : index
    %26 = vector.load %arg7[%c0_17, %c0_18, %c0_19] : memref<4x8x1xf32, #tpu.memory_space<vmem>>, vector<4x8x1xf32>
    tpu.vector_store %arg7[%c0_17, %c0_18, %c0_19], %25 {strides = array<i32>} : memref<4x8x1xf32, #tpu.memory_space<vmem>>, vector<4x8x1xf32>,
    %c0_20 = arith.constant 0 : index
    %c0_21 = arith.constant 0 : index
    %c0_22 = arith.constant 0 : index
    %27 = vector.load %arg8[%c0_20, %c0_21, %c0_22] : memref<4x8x8xf32, #tpu.memory_space<vmem>>, vector<4x8x8xf32>
    %28 = vector.broadcast %17 : vector<4x8x1xf32> to vector<4x8x8xf32>
    %29 = arith.mulf %28, %27 : vector<4x8x8xf32>
    %30 = arith.truncf %20 : vector<4x8x8xf32> to vector<4x8x8xbf16>
    %c0_23 = arith.constant 0 : index
    %c0_24 = arith.constant 0 : index
    %c0_25 = arith.constant 0 : index
    %c0_26 = arith.constant 0 : index
    %31 = vector.load %arg4[%c0_23, %c0_24, %c0_25, %c0_26] : memref<1x4x8x8xf32, #tpu.memory_space<vmem>>, vector<1x4x8x8xf32>
    %32 = vector.shape_cast %31 : vector<1x4x8x8xf32> to vector<4x8x8xf32>
    %33 = arith.truncf %32 : vector<4x8x8xf32> to vector<4x8x8xbf16>
    "tpu.trace_start"() <{level = 10 : i32, message = "hqk,hkd->hqd"}> : () -> ()
    %cst_27 = arith.constant dense<0.000000e+00> : vector<4x8x8xf32>
    %34 = tpu.matmul %30, %33, %cst_27 {dimension_numbers = #tpu.dot_dimension_numbers<[2], [1], [1], [2], [0, 0, 0, 1, 1, 2], [0], [0]>} : vector<4x8x8xbf16>, vector<4x8x8xbf16>, vector<4x8x8xf32> -> vector<4x8x8xf32>
    "tpu.trace_stop"() : () -> ()
    %35 = arith.addf %29, %34 : vector<4x8x8xf32>
    %c0_28 = arith.constant 0 : index
    %c0_29 = arith.constant 0 : index
    %c0_30 = arith.constant 0 : index
    %36 = vector.load %arg8[%c0_28, %c0_29, %c0_30] : memref<4x8x8xf32, #tpu.memory_space<vmem>>, vector<4x8x8xf32>
    tpu.vector_store %arg8[%c0_28, %c0_29, %c0_30], %35 {strides = array<i32>} : memref<4x8x8xf32, #tpu.memory_space<vmem>>, vector<4x8x8xf32>,
    %c0_31 = arith.constant 0 : index
    %c0_32 = arith.constant 0 : index
    %c0_33 = arith.constant 0 : index
    %37 = vector.load %arg6[%c0_31, %c0_32, %c0_33] : memref<4x8x1xf32, #tpu.memory_space<vmem>>, vector<4x8x1xf32>
    tpu.vector_store %arg6[%c0_31, %c0_32, %c0_33], %15 {strides = array<i32>} : memref<4x8x1xf32, #tpu.memory_space<vmem>>, vector<4x8x1xf32>,
    %c0_i32_34 = arith.constant 0 : i32
    %38 = arith.cmpi eq, %arg1, %c0_i32_34 : i32
    %39 = arith.extui %38 : i1 to i32
    %c0_i32_35 = arith.constant 0 : i32
    %40 = arith.cmpi ne, %39, %c0_i32_35 : i32
    scf.if %40 {
      %c0_36 = arith.constant 0 : index
      %c0_37 = arith.constant 0 : index
      %c0_38 = arith.constant 0 : index
      %41 = vector.load %arg8[%c0_36, %c0_37, %c0_38] : memref<4x8x8xf32, #tpu.memory_space<vmem>>, vector<4x8x8xf32>
      %c0_39 = arith.constant 0 : index
      %c0_40 = arith.constant 0 : index
      %c0_41 = arith.constant 0 : index
      %42 = vector.load %arg7[%c0_39, %c0_40, %c0_41] : memref<4x8x1xf32, #tpu.memory_space<vmem>>, vector<4x8x1xf32>
      %43 = tpu.reciprocal %42 {approx = true} : vector<4x8x1xf32> -> vector<4x8x1xf32>
      %44 = vector.broadcast %43 : vector<4x8x1xf32> to vector<4x8x8xf32>
      %45 = arith.mulf %41, %44 : vector<4x8x8xf32>
      %c0_42 = arith.constant 0 : index
      %c0_43 = arith.constant 0 : index
      %c0_44 = arith.constant 0 : index
      %c0_45 = arith.constant 0 : index
      %46 = vector.load %arg5[%c0_42, %c0_43, %c0_44, %c0_45] : memref<1x4x8x8xf32, #tpu.memory_space<vmem>>, vector<1x4x8x8xf32>
      %47 = vector.shape_cast %46 : vector<1x4x8x8xf32> to vector<4x8x8xf32>
      %48 = vector.shape_cast %45 : vector<4x8x8xf32> to vector<1x4x8x8xf32>
      tpu.vector_store %arg5[%c0_42, %c0_43, %c0_44, %c0_45], %48 {strides = array<i32>} : memref<1x4x8x8xf32, #tpu.memory_space<vmem>>, vector<1x4x8x8xf32>,
    } else {
    }
    return
  }
  func.func @transform_0(%arg0: i32, %arg1: i32) -> (i32, i32, i32, i32) {
    %c0_i32 = arith.constant 0 : i32
    %c0_i32_0 = arith.constant 0 : i32
    %c0_i32_1 = arith.constant 0 : i32
    %c0_i32_2 = arith.constant 0 : i32
    return %arg0, %c0_i32, %c0_i32_0, %c0_i32_1 : i32, i32, i32, i32
  }
  func.func @transform_1(%arg0: i32, %arg1: i32) -> (i32, i32, i32, i32) {
    %c0_i32 = arith.constant 0 : i32
    %c0_i32_0 = arith.constant 0 : i32
    %c0_i32_1 = arith.constant 0 : i32
    return %arg0, %c0_i32, %arg1, %c0_i32_0 : i32, i32, i32, i32
  }
  func.func @transform_2(%arg0: i32, %arg1: i32) -> (i32, i32, i32, i32) {
    %c0_i32 = arith.constant 0 : i32
    %c0_i32_0 = arith.constant 0 : i32
    %c0_i32_1 = arith.constant 0 : i32
    return %arg0, %c0_i32, %arg1, %c0_i32_0 : i32, i32, i32, i32
  }
  func.func @transform_3(%arg0: i32, %arg1: i32) -> (i32, i32, i32, i32) {
    %c0_i32 = arith.constant 0 : i32
    %c0_i32_0 = arith.constant 0 : i32
    %c0_i32_1 = arith.constant 0 : i32
    %c0_i32_2 = arith.constant 0 : i32
    return %arg0, %c0_i32, %c0_i32_0, %c0_i32_1 : i32, i32, i32, i32
  }
}

module attributes {stable_mosaic.version = 11 : i64} {
  func.func @_ffn_kernel(%arg0: i32, %arg1: i32, %arg2: memref<16x32xf32, #tpu.memory_space<vmem>>, %arg3: memref<32x64xf32, #tpu.memory_space<vmem>>, %arg4: memref<1x64xf32, #tpu.memory_space<vmem>>, %arg5: memref<64x32xf32, #tpu.memory_space<vmem>>, %arg6: memref<1x32xf32, #tpu.memory_space<vmem>>, %arg7: memref<16x32xf32, #tpu.memory_space<vmem>>, %arg8: memref<16x32xf32, #tpu.memory_space<vmem>>) attributes {dimension_semantics = [#tpu.dimension_semantics<parallel>, #tpu.dimension_semantics<arbitrary>], iteration_bounds = array<i64: 1, 1>, scalar_prefetch = 0 : i64, scratch_operands = 1 : i64, tpu.core_type = #tpu.core_type<tc>, window_params = [{transform_indices = @transform_0, window_bounds = array<i64: 16, 32>}, {transform_indices = @transform_1, window_bounds = array<i64: 32, 64>}, {transform_indices = @transform_2, window_bounds = array<i64: 1, 64>}, {transform_indices = @transform_3, window_bounds = array<i64: 64, 32>}, {pipeline_mode = #tpu.pipeline_mode<synchronous>, transform_indices = @transform_4, window_bounds = array<i64: 1, 32>}, {transform_indices = @transform_5, window_bounds = array<i64: 16, 32>}]} {
    %c0_i32 = arith.constant 0 : i32
    %0 = arith.cmpi eq, %arg1, %c0_i32 : i32
    %1 = arith.extui %0 : i1 to i32
    %c0_i32_0 = arith.constant 0 : i32
    %2 = arith.cmpi ne, %1, %c0_i32_0 : i32
    scf.if %2 {
      %cst_20 = arith.constant 0.000000e+00 : f32
      %27 = vector.broadcast %cst_20 : f32 to vector<16x32xf32>
      %c0_21 = arith.constant 0 : index
      %c0_22 = arith.constant 0 : index
      %28 = vector.load %arg8[%c0_21, %c0_22] : memref<16x32xf32, #tpu.memory_space<vmem>>, vector<16x32xf32>
      tpu.vector_store %arg8[%c0_21, %c0_22], %27 {strides = array<i32>} : memref<16x32xf32, #tpu.memory_space<vmem>>, vector<16x32xf32>,
    } else {
    }
    %c0 = arith.constant 0 : index
    %c0_1 = arith.constant 0 : index
    %3 = vector.load %arg2[%c0, %c0_1] : memref<16x32xf32, #tpu.memory_space<vmem>>, vector<16x32xf32>
    %4 = arith.truncf %3 : vector<16x32xf32> to vector<16x32xbf16>
    %c0_2 = arith.constant 0 : index
    %c0_3 = arith.constant 0 : index
    %5 = vector.load %arg3[%c0_2, %c0_3] : memref<32x64xf32, #tpu.memory_space<vmem>>, vector<32x64xf32>
    %6 = arith.truncf %5 : vector<32x64xf32> to vector<32x64xbf16>
    %cst = arith.constant dense<0.000000e+00> : vector<16x64xf32>
    %7 = tpu.matmul %4, %6, %cst {dimension_numbers = #tpu.dot_dimension_numbers<[1], [0], [0], [1], [0, 0, 1, 1], [], []>} : vector<16x32xbf16>, vector<32x64xbf16>, vector<16x64xf32> -> vector<16x64xf32>
    %c0_4 = arith.constant 0 : index
    %c0_5 = arith.constant 0 : index
    %8 = vector.load %arg4[%c0_4, %c0_5] : memref<1x64xf32, #tpu.memory_space<vmem>>, vector<1x64xf32>
    %9 = vector.broadcast %8 : vector<1x64xf32> to vector<16x64xf32>
    %10 = arith.addf %7, %9 : vector<16x64xf32>
    %cst_6 = arith.constant 0.000000e+00 : f32
    %11 = vector.broadcast %cst_6 : f32 to vector<16x64xf32>
    %12 = arith.maximumf %10, %11 : vector<16x64xf32>
    %c0_7 = arith.constant 0 : index
    %c0_8 = arith.constant 0 : index
    %13 = vector.load %arg8[%c0_7, %c0_8] : memref<16x32xf32, #tpu.memory_space<vmem>>, vector<16x32xf32>
    %14 = arith.truncf %12 : vector<16x64xf32> to vector<16x64xbf16>
    %c0_9 = arith.constant 0 : index
    %c0_10 = arith.constant 0 : index
    %15 = vector.load %arg5[%c0_9, %c0_10] : memref<64x32xf32, #tpu.memory_space<vmem>>, vector<64x32xf32>
    %16 = arith.truncf %15 : vector<64x32xf32> to vector<64x32xbf16>
    %cst_11 = arith.constant dense<0.000000e+00> : vector<16x32xf32>
    %17 = tpu.matmul %14, %16, %cst_11 {dimension_numbers = #tpu.dot_dimension_numbers<[1], [0], [0], [1], [0, 0, 1, 1], [], []>} : vector<16x64xbf16>, vector<64x32xbf16>, vector<16x32xf32> -> vector<16x32xf32>
    %18 = arith.addf %13, %17 : vector<16x32xf32>
    %c0_12 = arith.constant 0 : index
    %c0_13 = arith.constant 0 : index
    %19 = vector.load %arg8[%c0_12, %c0_13] : memref<16x32xf32, #tpu.memory_space<vmem>>, vector<16x32xf32>
    tpu.vector_store %arg8[%c0_12, %c0_13], %18 {strides = array<i32>} : memref<16x32xf32, #tpu.memory_space<vmem>>, vector<16x32xf32>,
    %c0_14 = arith.constant 0 : index
    %c0_15 = arith.constant 0 : index
    %20 = vector.load %arg8[%c0_14, %c0_15] : memref<16x32xf32, #tpu.memory_space<vmem>>, vector<16x32xf32>
    %c0_16 = arith.constant 0 : index
    %c0_17 = arith.constant 0 : index
    %21 = vector.load %arg6[%c0_16, %c0_17] : memref<1x32xf32, #tpu.memory_space<vmem>>, vector<1x32xf32>
    %22 = vector.broadcast %21 : vector<1x32xf32> to vector<16x32xf32>
    %23 = arith.addf %20, %22 : vector<16x32xf32>
    %c0_i32_18 = arith.constant 0 : i32
    %24 = arith.cmpi eq, %arg1, %c0_i32_18 : i32
    %25 = arith.extui %24 : i1 to i32
    %c0_i32_19 = arith.constant 0 : i32
    %26 = arith.cmpi ne, %25, %c0_i32_19 : i32
    scf.if %26 {
      %c0_20 = arith.constant 0 : index
      %c0_21 = arith.constant 0 : index
      %27 = vector.load %arg7[%c0_20, %c0_21] : memref<16x32xf32, #tpu.memory_space<vmem>>, vector<16x32xf32>
      tpu.vector_store %arg7[%c0_20, %c0_21], %23 {strides = array<i32>} : memref<16x32xf32, #tpu.memory_space<vmem>>, vector<16x32xf32>,
    } else {
    }
    return
  }
  func.func @transform_0(%arg0: i32, %arg1: i32) -> (i32, i32) {
    %c0_i32 = arith.constant 0 : i32
    %c0_i32_0 = arith.constant 0 : i32
    return %arg0, %c0_i32 : i32, i32
  }
  func.func @transform_1(%arg0: i32, %arg1: i32) -> (i32, i32) {
    %c0_i32 = arith.constant 0 : i32
    %c0_i32_0 = arith.constant 0 : i32
    return %c0_i32, %arg1 : i32, i32
  }
  func.func @transform_2(%arg0: i32, %arg1: i32) -> (i32, i32) {
    %c0_i32 = arith.constant 0 : i32
    %c0_i32_0 = arith.constant 0 : i32
    return %c0_i32, %arg1 : i32, i32
  }
  func.func @transform_3(%arg0: i32, %arg1: i32) -> (i32, i32) {
    %c0_i32 = arith.constant 0 : i32
    %c0_i32_0 = arith.constant 0 : i32
    return %arg1, %c0_i32 : i32, i32
  }
  func.func @transform_4(%arg0: i32, %arg1: i32) -> (i32, i32) {
    %c0_i32 = arith.constant 0 : i32
    %c0_i32_0 = arith.constant 0 : i32
    %c0_i32_1 = arith.constant 0 : i32
    return %c0_i32, %c0_i32_0 : i32, i32
  }
  func.func @transform_5(%arg0: i32, %arg1: i32) -> (i32, i32) {
    %c0_i32 = arith.constant 0 : i32
    %c0_i32_0 = arith.constant 0 : i32
    return %arg0, %c0_i32 : i32, i32
  }
}

module attributes {stable_mosaic.version = 11 : i64} {
  func.func @_glu_res_ln_kernel(%arg0: i32, %arg1: memref<16x32xf32, #tpu.memory_space<vmem>>, %arg2: memref<32x32xf32, #tpu.memory_space<vmem>>, %arg3: memref<1x32xf32, #tpu.memory_space<vmem>>, %arg4: memref<32x32xf32, #tpu.memory_space<vmem>>, %arg5: memref<1x32xf32, #tpu.memory_space<vmem>>, %arg6: memref<16x32xf32, #tpu.memory_space<vmem>>, %arg7: memref<1x32xf32, #tpu.memory_space<vmem>>, %arg8: memref<1x32xf32, #tpu.memory_space<vmem>>, %arg9: memref<16x32xf32, #tpu.memory_space<vmem>>) attributes {dimension_semantics = [#tpu.dimension_semantics<parallel>], iteration_bounds = array<i64: 1>, scalar_prefetch = 0 : i64, scratch_operands = 0 : i64, tpu.core_type = #tpu.core_type<tc>, window_params = [{transform_indices = @transform_0, window_bounds = array<i64: 16, 32>}, {pipeline_mode = #tpu.pipeline_mode<synchronous>, transform_indices = @transform_1, window_bounds = array<i64: 32, 32>}, {pipeline_mode = #tpu.pipeline_mode<synchronous>, transform_indices = @transform_2, window_bounds = array<i64: 1, 32>}, {pipeline_mode = #tpu.pipeline_mode<synchronous>, transform_indices = @transform_3, window_bounds = array<i64: 32, 32>}, {pipeline_mode = #tpu.pipeline_mode<synchronous>, transform_indices = @transform_4, window_bounds = array<i64: 1, 32>}, {transform_indices = @transform_5, window_bounds = array<i64: 16, 32>}, {pipeline_mode = #tpu.pipeline_mode<synchronous>, transform_indices = @transform_6, window_bounds = array<i64: 1, 32>}, {pipeline_mode = #tpu.pipeline_mode<synchronous>, transform_indices = @transform_7, window_bounds = array<i64: 1, 32>}, {transform_indices = @transform_8, window_bounds = array<i64: 16, 32>}]} {
    %c0 = arith.constant 0 : index
    %c0_0 = arith.constant 0 : index
    %0 = vector.load %arg1[%c0, %c0_0] : memref<16x32xf32, #tpu.memory_space<vmem>>, vector<16x32xf32>
    %1 = arith.truncf %0 : vector<16x32xf32> to vector<16x32xbf16>
    %c0_1 = arith.constant 0 : index
    %c0_2 = arith.constant 0 : index
    %2 = vector.load %arg2[%c0_1, %c0_2] : memref<32x32xf32, #tpu.memory_space<vmem>>, vector<32x32xf32>
    %3 = arith.truncf %2 : vector<32x32xf32> to vector<32x32xbf16>
    %cst = arith.constant dense<0.000000e+00> : vector<16x32xf32>
    %4 = tpu.matmul %1, %3, %cst {dimension_numbers = #tpu.dot_dimension_numbers<[1], [0], [0], [1], [0, 0, 1, 1], [], []>} : vector<16x32xbf16>, vector<32x32xbf16>, vector<16x32xf32> -> vector<16x32xf32>
    %c0_3 = arith.constant 0 : index
    %c0_4 = arith.constant 0 : index
    %5 = vector.load %arg3[%c0_3, %c0_4] : memref<1x32xf32, #tpu.memory_space<vmem>>, vector<1x32xf32>
    %6 = vector.broadcast %5 : vector<1x32xf32> to vector<16x32xf32>
    %7 = arith.addf %4, %6 : vector<16x32xf32>
    %c0_5 = arith.constant 0 : index
    %c0_6 = arith.constant 0 : index
    %8 = vector.load %arg4[%c0_5, %c0_6] : memref<32x32xf32, #tpu.memory_space<vmem>>, vector<32x32xf32>
    %9 = arith.truncf %8 : vector<32x32xf32> to vector<32x32xbf16>
    %cst_7 = arith.constant dense<0.000000e+00> : vector<16x32xf32>
    %10 = tpu.matmul %1, %9, %cst_7 {dimension_numbers = #tpu.dot_dimension_numbers<[1], [0], [0], [1], [0, 0, 1, 1], [], []>} : vector<16x32xbf16>, vector<32x32xbf16>, vector<16x32xf32> -> vector<16x32xf32>
    %c0_8 = arith.constant 0 : index
    %c0_9 = arith.constant 0 : index
    %11 = vector.load %arg5[%c0_8, %c0_9] : memref<1x32xf32, #tpu.memory_space<vmem>>, vector<1x32xf32>
    %12 = vector.broadcast %11 : vector<1x32xf32> to vector<16x32xf32>
    %13 = arith.addf %10, %12 : vector<16x32xf32>
    %14 = arith.negf %13 : vector<16x32xf32>
    %15 = math.exp %14 : vector<16x32xf32>
    %cst_10 = arith.constant 1.000000e+00 : f32
    %16 = vector.broadcast %cst_10 : f32 to vector<16x32xf32>
    %17 = arith.addf %16, %15 : vector<16x32xf32>
    %18 = arith.divf %16, %17 : vector<16x32xf32>
    %19 = arith.mulf %7, %18 : vector<16x32xf32>
    %c0_11 = arith.constant 0 : index
    %c0_12 = arith.constant 0 : index
    %20 = vector.load %arg6[%c0_11, %c0_12] : memref<16x32xf32, #tpu.memory_space<vmem>>, vector<16x32xf32>
    %21 = arith.addf %19, %20 : vector<16x32xf32>
    %c0_13 = arith.constant 0 : index
    %c0_14 = arith.constant 0 : index
    %22 = vector.load %arg7[%c0_13, %c0_14] : memref<1x32xf32, #tpu.memory_space<vmem>>, vector<1x32xf32>
    %c0_15 = arith.constant 0 : index
    %c0_16 = arith.constant 0 : index
    %23 = vector.load %arg8[%c0_15, %c0_16] : memref<1x32xf32, #tpu.memory_space<vmem>>, vector<1x32xf32>
    %cst_17 = arith.constant dense<0.000000e+00> : vector<16xf32>
    %24 = vector.multi_reduction <add>, %21, %cst_17 [1] : vector<16x32xf32> to vector<16xf32>
    %25 = vector.shape_cast %24 : vector<16xf32> to vector<16x1xf32>
    %cst_18 = arith.constant 3.200000e+01 : f32
    %26 = vector.broadcast %cst_18 : f32 to vector<16x1xf32>
    %27 = arith.divf %25, %26 : vector<16x1xf32>
    %28 = vector.broadcast %27 : vector<16x1xf32> to vector<16x32xf32>
    %29 = arith.subf %21, %28 : vector<16x32xf32>
    %30 = arith.mulf %29, %29 : vector<16x32xf32>
    %cst_19 = arith.constant dense<0.000000e+00> : vector<16xf32>
    %31 = vector.multi_reduction <add>, %30, %cst_19 [1] : vector<16x32xf32> to vector<16xf32>
    %32 = vector.shape_cast %31 : vector<16xf32> to vector<16x1xf32>
    %cst_20 = arith.constant 3.200000e+01 : f32
    %33 = vector.broadcast %cst_20 : f32 to vector<16x1xf32>
    %34 = arith.divf %32, %33 : vector<16x1xf32>
    %35 = vector.broadcast %27 : vector<16x1xf32> to vector<16x32xf32>
    %36 = arith.subf %21, %35 : vector<16x32xf32>
    %cst_21 = arith.constant 9.99999974E-6 : f32
    %37 = vector.broadcast %cst_21 : f32 to vector<16x1xf32>
    %38 = arith.addf %34, %37 : vector<16x1xf32>
    %39 = math.rsqrt %38 : vector<16x1xf32>
    %40 = vector.broadcast %39 : vector<16x1xf32> to vector<16x32xf32>
    %41 = arith.mulf %36, %40 : vector<16x32xf32>
    %42 = vector.broadcast %22 : vector<1x32xf32> to vector<16x32xf32>
    %43 = arith.mulf %41, %42 : vector<16x32xf32>
    %44 = vector.broadcast %23 : vector<1x32xf32> to vector<16x32xf32>
    %45 = arith.addf %43, %44 : vector<16x32xf32>
    %c0_22 = arith.constant 0 : index
    %c0_23 = arith.constant 0 : index
    %46 = vector.load %arg9[%c0_22, %c0_23] : memref<16x32xf32, #tpu.memory_space<vmem>>, vector<16x32xf32>
    tpu.vector_store %arg9[%c0_22, %c0_23], %45 {strides = array<i32>} : memref<16x32xf32, #tpu.memory_space<vmem>>, vector<16x32xf32>,
    return
  }
  func.func @transform_0(%arg0: i32) -> (i32, i32) {
    %c0_i32 = arith.constant 0 : i32
    %c0_i32_0 = arith.constant 0 : i32
    return %arg0, %c0_i32 : i32, i32
  }
  func.func @transform_1(%arg0: i32) -> (i32, i32) {
    %c0_i32 = arith.constant 0 : i32
    %c0_i32_0 = arith.constant 0 : i32
    %c0_i32_1 = arith.constant 0 : i32
    return %c0_i32, %c0_i32_0 : i32, i32
  }
  func.func @transform_2(%arg0: i32) -> (i32, i32) {
    %c0_i32 = arith.constant 0 : i32
    %c0_i32_0 = arith.constant 0 : i32
    %c0_i32_1 = arith.constant 0 : i32
    return %c0_i32, %c0_i32_0 : i32, i32
  }
  func.func @transform_3(%arg0: i32) -> (i32, i32) {
    %c0_i32 = arith.constant 0 : i32
    %c0_i32_0 = arith.constant 0 : i32
    %c0_i32_1 = arith.constant 0 : i32
    return %c0_i32, %c0_i32_0 : i32, i32
  }
  func.func @transform_4(%arg0: i32) -> (i32, i32) {
    %c0_i32 = arith.constant 0 : i32
    %c0_i32_0 = arith.constant 0 : i32
    %c0_i32_1 = arith.constant 0 : i32
    return %c0_i32, %c0_i32_0 : i32, i32
  }
  func.func @transform_5(%arg0: i32) -> (i32, i32) {
    %c0_i32 = arith.constant 0 : i32
    %c0_i32_0 = arith.constant 0 : i32
    return %arg0, %c0_i32 : i32, i32
  }
  func.func @transform_6(%arg0: i32) -> (i32, i32) {
    %c0_i32 = arith.constant 0 : i32
    %c0_i32_0 = arith.constant 0 : i32
    %c0_i32_1 = arith.constant 0 : i32
    return %c0_i32, %c0_i32_0 : i32, i32
  }
  func.func @transform_7(%arg0: i32) -> (i32, i32) {
    %c0_i32 = arith.constant 0 : i32
    %c0_i32_0 = arith.constant 0 : i32
    %c0_i32_1 = arith.constant 0 : i32
    return %c0_i32, %c0_i32_0 : i32, i32
  }
  func.func @transform_8(%arg0: i32) -> (i32, i32) {
    %c0_i32 = arith.constant 0 : i32
    %c0_i32_0 = arith.constant 0 : i32
    return %arg0, %c0_i32 : i32, i32
  }
}

module attributes {stable_mosaic.version = 11 : i64} {
  func.func @_linear_kernel(%arg0: i32, %arg1: i32, %arg2: i32, %arg3: memref<16x32xf32, #tpu.memory_space<vmem>>, %arg4: memref<32x128xf32, #tpu.memory_space<vmem>>, %arg5: memref<1x128xf32, #tpu.memory_space<vmem>>, %arg6: memref<16x128xf32, #tpu.memory_space<vmem>>, %arg7: memref<16x128xf32, #tpu.memory_space<vmem>>) attributes {dimension_semantics = [#tpu.dimension_semantics<parallel>, #tpu.dimension_semantics<parallel>, #tpu.dimension_semantics<arbitrary>], iteration_bounds = array<i64: 1, 1, 1>, scalar_prefetch = 0 : i64, scratch_operands = 1 : i64, tpu.core_type = #tpu.core_type<tc>, window_params = [{transform_indices = @transform_0, window_bounds = array<i64: 16, 32>}, {transform_indices = @transform_1, window_bounds = array<i64: 32, 128>}, {transform_indices = @transform_2, window_bounds = array<i64: 1, 128>}, {transform_indices = @transform_3, window_bounds = array<i64: 16, 128>}]} {
    %c0_i32 = arith.constant 0 : i32
    %0 = arith.cmpi eq, %arg2, %c0_i32 : i32
    %1 = arith.extui %0 : i1 to i32
    %c0_i32_0 = arith.constant 0 : i32
    %2 = arith.cmpi ne, %1, %c0_i32_0 : i32
    scf.if %2 {
      %cst_10 = arith.constant 0.000000e+00 : f32
      %14 = vector.broadcast %cst_10 : f32 to vector<16x128xf32>
      %c0_11 = arith.constant 0 : index
      %c0_12 = arith.constant 0 : index
      %15 = vector.load %arg7[%c0_11, %c0_12] : memref<16x128xf32, #tpu.memory_space<vmem>>, vector<16x128xf32>
      tpu.vector_store %arg7[%c0_11, %c0_12], %14 {strides = array<i32>} : memref<16x128xf32, #tpu.memory_space<vmem>>, vector<16x128xf32>,
    } else {
    }
    %c0 = arith.constant 0 : index
    %c0_1 = arith.constant 0 : index
    %3 = vector.load %arg7[%c0, %c0_1] : memref<16x128xf32, #tpu.memory_space<vmem>>, vector<16x128xf32>
    %c0_2 = arith.constant 0 : index
    %c0_3 = arith.constant 0 : index
    %4 = vector.load %arg3[%c0_2, %c0_3] : memref<16x32xf32, #tpu.memory_space<vmem>>, vector<16x32xf32>
    %5 = arith.truncf %4 : vector<16x32xf32> to vector<16x32xbf16>
    %c0_4 = arith.constant 0 : index
    %c0_5 = arith.constant 0 : index
    %6 = vector.load %arg4[%c0_4, %c0_5] : memref<32x128xf32, #tpu.memory_space<vmem>>, vector<32x128xf32>
    %7 = arith.truncf %6 : vector<32x128xf32> to vector<32x128xbf16>
    %cst = arith.constant dense<0.000000e+00> : vector<16x128xf32>
    %8 = tpu.matmul %5, %7, %cst {dimension_numbers = #tpu.dot_dimension_numbers<[1], [0], [0], [1], [0, 0, 1, 1], [], []>} : vector<16x32xbf16>, vector<32x128xbf16>, vector<16x128xf32> -> vector<16x128xf32>
    %9 = arith.addf %3, %8 : vector<16x128xf32>
    %c0_6 = arith.constant 0 : index
    %c0_7 = arith.constant 0 : index
    %10 = vector.load %arg7[%c0_6, %c0_7] : memref<16x128xf32, #tpu.memory_space<vmem>>, vector<16x128xf32>
    tpu.vector_store %arg7[%c0_6, %c0_7], %9 {strides = array<i32>} : memref<16x128xf32, #tpu.memory_space<vmem>>, vector<16x128xf32>,
    %c0_i32_8 = arith.constant 0 : i32
    %11 = arith.cmpi eq, %arg2, %c0_i32_8 : i32
    %12 = arith.extui %11 : i1 to i32
    %c0_i32_9 = arith.constant 0 : i32
    %13 = arith.cmpi ne, %12, %c0_i32_9 : i32
    scf.if %13 {
      %c0_10 = arith.constant 0 : index
      %c0_11 = arith.constant 0 : index
      %14 = vector.load %arg7[%c0_10, %c0_11] : memref<16x128xf32, #tpu.memory_space<vmem>>, vector<16x128xf32>
      %c0_12 = arith.constant 0 : index
      %c0_13 = arith.constant 0 : index
      %15 = vector.load %arg5[%c0_12, %c0_13] : memref<1x128xf32, #tpu.memory_space<vmem>>, vector<1x128xf32>
      %16 = vector.broadcast %15 : vector<1x128xf32> to vector<16x128xf32>
      %17 = arith.addf %14, %16 : vector<16x128xf32>
      %c0_14 = arith.constant 0 : index
      %c0_15 = arith.constant 0 : index
      %18 = vector.load %arg6[%c0_14, %c0_15] : memref<16x128xf32, #tpu.memory_space<vmem>>, vector<16x128xf32>
      tpu.vector_store %arg6[%c0_14, %c0_15], %17 {strides = array<i32>} : memref<16x128xf32, #tpu.memory_space<vmem>>, vector<16x128xf32>,
    } else {
    }
    return
  }
  func.func @transform_0(%arg0: i32, %arg1: i32, %arg2: i32) -> (i32, i32) {
    %c0_i32 = arith.constant 0 : i32
    return %arg0, %arg2 : i32, i32
  }
  func.func @transform_1(%arg0: i32, %arg1: i32, %arg2: i32) -> (i32, i32) {
    %c0_i32 = arith.constant 0 : i32
    return %arg2, %arg1 : i32, i32
  }
  func.func @transform_2(%arg0: i32, %arg1: i32, %arg2: i32) -> (i32, i32) {
    %c0_i32 = arith.constant 0 : i32
    %c0_i32_0 = arith.constant 0 : i32
    return %c0_i32, %arg1 : i32, i32
  }
  func.func @transform_3(%arg0: i32, %arg1: i32, %arg2: i32) -> (i32, i32) {
    %c0_i32 = arith.constant 0 : i32
    return %arg0, %arg1 : i32, i32
  }
}

</mosaic_0001>

<bundles_post_ra>
// kernel: transformer_v2_forward.32
= control target key start
LH: loop header
LB: loop body
LE: loop exit
PB: predicated region body
PF: predicated region fallthrough
CT: control target
= control target key end

     0   :  { %vm19_vm0 = vcmask 261120   ;;  %v115_v0 = vmov 0.0   ;;  %vm33_vm1 = vcmask 1041408   ;;  %vm116_vm2 = vmmov 0   ;;  %s161_s1 = inlined_call_operand.vmem [shape: f32[4,32], index: 1, kind: input, shape index: {}]   ;;  %s162_s0 = inlined_call_operand.vmem [shape: f32[16,4], index: 0, kind: input, shape index: {}]   ;;  %s163_s2 = inlined_call_operand.vmem [shape: f32[1,32], index: 2, kind: input, shape index: {}]   ;;  %s164_s3 = inlined_call_operand.vmem [shape: f32[16,32], index: 3, kind: output, shape index: {}]  }
   0x1   :  { %20 = vst.msk [vmem:[#allocation2] sm:$0xff] %vm19_vm0, %v115_v0  ;;  %21 = vst.msk [vmem:[#allocation2 + $0x8] sm:$0xff] %vm19_vm0, %v115_v0  ;;  %107 = vmatprep.subr.bf16.mxu0 %v115_v0  ;;  %v27_v1 = vld [vmem:[%s161_s1] sm:$0xf]  ;;  %109 = vmatprep.mubr.msk.bf16.mxu0 %vm116_vm2, %v115_v0  ;;  %v25_v3 = vld [vmem:[%s162_s0 + $0x8] sm:$0xff]  ;;  %vm29_vm3 = vcmask 31744  }
   0x2   :  { %v24_v2 = vld [vmem:[%s162_s0] sm:$0xff]  ;;  %v28_v4 = vpack.c.bf16 %v27_v1, %v27_v1 }
   0x3   :  { %v26_v6 = vpack.c.bf16 %v25_v3, %v24_v2  ;;  %v104_v15 = vld [vmem:[%s163_s2] ss:$0 sm:$0xff] }
   0x4   :  { %v35_v5 = vsel %vm33_vm1, %v28_v4, 0 }
   0x5   :  { %108 = vmatpush3.bf16.msra.mxu0 %v35_v5 }
   0x8   :  { %110 = vmatmul.mubr.msk.bf16.vlgmr.msra.gmra.mrb[0].mxu0 %vm29_vm3, %v26_v6  ;;  %v22_v7 = vld [vmem:[#allocation2] sm:$0xff]  ;;  %v23_v9 = vld [vmem:[#allocation2 + $0x8] sm:$0xff] }
  0xdb   :  { %v71_v8 = vpop.f32.mrb[0].mxu0 }
  0xdc   :  { %v78_v10 = vadd.f32 %v71_v8, %v22_v7  ;;  %v111_v11 = vpop.f32.mrb[1].mxu0 }
  0xdd   :  { %v74_v12 = vpop.f32.mrb[2].mxu0 }
  0xde   :  { %81 = vst.msk [vmem:[#allocation2] sm:$0xff] %vm19_vm0, %v78_v10  ;;  %v79_v13 = vadd.f32 %v74_v12, %v23_v9  ;;  %v112_v14 = vpop.f32.mrb[3].mxu0 }
  0xe0   :  { %82 = vst.msk [vmem:[#allocation2 + $0x8] sm:$0xff] %vm19_vm0, %v79_v13 }
  0xe5   :  { %v86_v16 = vld [vmem:[#allocation2] sm:$0xff] }
  0xe6   :  { %v95_v17 = vadd.f32 %v104_v15, %v86_v16 }
  0xe7   :  { %v87_v18 = vld [vmem:[#allocation2 + $0x8] sm:$0xff] }
  0xe8   :  { %97 = vst.msk [vmem:[%s164_s3] sm:$0xff] %vm19_vm0, %v95_v17  ;;  %v96_v19 = vadd.f32 %v104_v15, %v87_v18 }
  0xea   :  { %98 = vst.msk [vmem:[%s164_s3 + $0x8] sm:$0xff] %vm19_vm0, %v96_v19 }

// kernel: transformer_v2_forward.43
= control target key start
LH: loop header
LB: loop body
LE: loop exit
PB: predicated region body
PF: predicated region fallthrough
CT: control target
= control target key end

     0   :  { %vm19_vm0 = vcmask 785408   ;;  %v118_v0 = vmov 0.0   ;;  %vm119_vm1 = vmmov 0   ;;  %vm33_vm2 = vcmask 261120   ;;  %s173_s1 = inlined_call_operand.vmem [shape: f32[32,96], index: 1, kind: input, shape index: {}]   ;;  %s174_s0 = inlined_call_operand.vmem [shape: f32[16,32], index: 0, kind: input, shape index: {}]   ;;  %s175_s2 = inlined_call_operand.vmem [shape: f32[1,96], index: 2, kind: input, shape index: {}]   ;;  %s176_s3 = inlined_call_operand.vmem [shape: f32[16,96], index: 3, kind: output, shape index: {}]  }
   0x1   :  { %108 = vmatprep.subr.bf16.mxu0 %v118_v0  ;;  %v27_v1 = vld [vmem:[%s173_s1] sm:$0xff]  ;;  %v28_v2 = vld [vmem:[%s173_s1 + $0x8] sm:$0xff]  ;;  %v29_v3 = vld [vmem:[%s173_s1 + $0x10] sm:$0xff]  ;;  %112 = vmatprep.mubr.msk.bf16.mxu0 %vm119_vm1, %v118_v0  ;;  %20 = vst.msk [vmem:[#allocation2] sm:$0xff] %vm19_vm0, %v118_v0 }
   0x2   :  { %21 = vst.msk [vmem:[#allocation2 + $0x8] sm:$0xff] %vm19_vm0, %v118_v0  ;;  %v31_v4 = vpack.c.bf16 %v28_v2, %v27_v1  ;;  %v30_v5 = vld [vmem:[%s173_s1 + $0x18] sm:$0xff]  ;;  %v24_v7 = vld [vmem:[%s174_s0] sm:$0xff]  ;;  %v25_v8 = vld [vmem:[%s174_s0 + $0x8] sm:$0xff] }
   0x3   :  { %v32_v6 = vpack.c.bf16 %v30_v5, %v29_v3  ;;  %v26_v9 = vpack.c.bf16 %v25_v8, %v24_v7  ;;  %v104_v18 = vld [vmem:[%s175_s2] ss:$0 sm:$0xff] }
   0x4   :  { %109 = vmatpush3.bf16.msra.mxu0 %v31_v4 }
   0x5   :  { %110 = vmatprep.subr.bf16.mxu0 %v118_v0 }
   0x8   :  { %111 = vmatpush3.bf16.msra.mxu0 %v32_v6  ;;  %v22_v10 = vld [vmem:[#allocation2] sm:$0xff] }
   0x9   :  { %v23_v12 = vld [vmem:[#allocation2 + $0x8] sm:$0xff] }
   0xb   :  { %113 = vmatmul.mubr.msk.bf16.vlgmr.msra.gmra.mrb[0].mxu0 %vm33_vm2, %v26_v9 }
  0xde   :  { %v71_v11 = vpop.f32.mrb[0].mxu0 }
  0xdf   :  { %v78_v13 = vadd.f32 %v71_v11, %v22_v10  ;;  %v114_v14 = vpop.f32.mrb[1].mxu0 }
  0xe0   :  { %v74_v15 = vpop.f32.mrb[2].mxu0 }
  0xe1   :  { %81 = vst.msk [vmem:[#allocation2] sm:$0xff] %vm19_vm0, %v78_v13  ;;  %v79_v16 = vadd.f32 %v74_v15, %v23_v12  ;;  %v115_v17 = vpop.f32.mrb[3].mxu0 }
  0xe3   :  { %82 = vst.msk [vmem:[#allocation2 + $0x8] sm:$0xff] %vm19_vm0, %v79_v16 }
  0xe8   :  { %v86_v19 = vld [vmem:[#allocation2] sm:$0xff] }
  0xe9   :  { %v95_v20 = vadd.f32 %v104_v18, %v86_v19 }
  0xea   :  { %v87_v21 = vld [vmem:[#allocation2 + $0x8] sm:$0xff] }
  0xeb   :  { %97 = vst.msk [vmem:[%s176_s3] sm:$0xff] %vm19_vm0, %v95_v20  ;;  %v96_v22 = vadd.f32 %v104_v18, %v87_v21 }
  0xed   :  { %98 = vst.msk [vmem:[%s176_s3 + $0x8] sm:$0xff] %vm19_vm0, %v96_v22 }

// kernel: transformer_v2_forward.45
= control target key start
LH: loop header
LB: loop body
LE: loop exit
PB: predicated region body
PF: predicated region fallthrough
CT: control target
= control target key end

     0   :  { %v161_v0 = vmov 0.0   ;;  %vm162_vm0 = vmmov 0   ;;  %vm40_vm1 = vcmask 261120   ;;  %s244_s1 = inlined_call_operand.vmem [shape: f32[32,32], index: 1, kind: input, shape index: {}]   ;;  %s245_s0 = inlined_call_operand.vmem [shape: f32[16,32], index: 0, kind: input, shape index: {}]   ;;  %s246_s2 = inlined_call_operand.vmem [shape: f32[1,32], index: 2, kind: input, shape index: {}]   ;;  %s247_s3 = inlined_call_operand.vmem [shape: f32[16,32], index: 3, kind: input, shape index: {}]   ;;  %s248_s4 = inlined_call_operand.vmem [shape: f32[1,32], index: 4, kind: input, shape index: {}]   ;;  %s249_s5 = inlined_call_operand.vmem [shape: f32[1,32], index: 5, kind: input, shape index: {}]   ;;  %s250_s6 = inlined_call_operand.vmem [shape: f32[16,32], index: 6, kind: output, shape index: {}]  }
   0x1   :  { %147 = vmatprep.subr.bf16.mxu0 %v161_v0  ;;  %v27_v1 = vld [vmem:[%s244_s1] sm:$0xff]  ;;  %v28_v2 = vld [vmem:[%s244_s1 + $0x8] sm:$0xff]  ;;  %v29_v3 = vld [vmem:[%s244_s1 + $0x10] sm:$0xff]  ;;  %151 = vmatprep.mubr.msk.bf16.mxu0 %vm162_vm0, %v161_v0 }
   0x2   :  { %v31_v4 = vpack.c.bf16 %v28_v2, %v27_v1  ;;  %v30_v5 = vld [vmem:[%s244_s1 + $0x18] sm:$0xff]  ;;  %v24_v7 = vld [vmem:[%s245_s0] sm:$0xff]  ;;  %v25_v8 = vld [vmem:[%s245_s0 + $0x8] sm:$0xff] }
   0x3   :  { %v32_v6 = vpack.c.bf16 %v30_v5, %v29_v3  ;;  %v26_v9 = vpack.c.bf16 %v25_v8, %v24_v7  ;;  %v140_v10 = vld [vmem:[%s246_s2] ss:$0 sm:$0xff]  ;;  %v86_v16 = vld [vmem:[%s247_s3 + $0x8] sm:$0xff] }
   0x4   :  { %148 = vmatpush3.bf16.msra.mxu0 %v31_v4  ;;  %v85_v12 = vld [vmem:[%s247_s3] sm:$0xff] }
   0x5   :  { %149 = vmatprep.subr.bf16.mxu0 %v161_v0  ;;  %v142_v40 = vld [vmem:[%s248_s4] ss:$0 sm:$0xff] }
   0x6   :  { %v143_v42 = vld [vmem:[%s249_s5] ss:$0 sm:$0xff] }
   0x8   :  { %150 = vmatpush3.bf16.msra.mxu0 %v32_v6 }
   0xb   :  { %152 = vmatmul.mubr.msk.bf16.vlgmr.msra.gmra.mrb[0].mxu0 %vm40_vm1, %v26_v9 }
  0xde   :  { %v78_v11 = vpop.f32.mrb[0].mxu0 }
  0xdf   :  { %v79_v13 = vadd.f32 %v140_v10, %v78_v11  ;;  %v153_v14 = vpop.f32.mrb[1].mxu0 }
  0xe0   :  { %v81_v15 = vpop.f32.mrb[2].mxu0 }
  0xe1   :  { %v82_v17 = vadd.f32 %v140_v10, %v81_v15  ;;  %v154_v18 = vpop.f32.mrb[3].mxu0  ;;  %v87_v19 = vadd.f32 %v85_v12, %v79_v13 }
  0xe3   :  { %v91_v20 = vsel %vm40_vm1, %v87_v19, 0.0  ;;  %v88_v21 = vadd.f32 %v86_v16, %v82_v17 }
  0xe4   :  { %92 = vadd.xlane.f32.xlu0 %v91_v20 }
  0xe5   :  { %v94_v22 = vsel %vm40_vm1, %v88_v21, 0.0 }
  0xe8   :  { %95 = vadd.xlane.f32.xlu0 %v94_v22 }
 0x171   :  { %v93_v23 = vpop.xlane.xlu0 %92 }
 0x172   :  { %v98_v24 = vmul.f32 0.03125, %v93_v23 }
 0x174   :  { %v100_v25 = vsub.f32 %v87_v19, %v98_v24 }
 0x175   :  { %v96_v26 = vpop.xlane.xlu0 %95 }
 0x176   :  { %v99_v27 = vmul.f32 0.03125, %v96_v26  ;;  %v102_v28 = vmul.f32 %v100_v25, %v100_v25 }
 0x178   :  { %v101_v29 = vsub.f32 %v88_v21, %v99_v27  ;;  %v104_v30 = vsel %vm40_vm1, %v102_v28, 0.0 }
 0x179   :  { %105 = vadd.xlane.f32.xlu1 %v104_v30 }
 0x17a   :  { %v103_v31 = vmul.f32 %v101_v29, %v101_v29 }
 0x17c   :  { %v107_v32 = vsel %vm40_vm1, %v103_v31, 0.0 }
 0x17d   :  { %108 = vadd.xlane.f32.xlu1 %v107_v32 }
 0x206   :  { %v106_v33 = vpop.xlane.xlu1 %105 }
 0x207   :  { %v110_v34 = vmul.f32 0.03125, %v106_v33 }
 0x209   :  { %v112_v35 = vadd.f32 1e-05, %v110_v34 }
 0x20a   :  { %v109_v36 = vpop.xlane.xlu1 %108 }
 0x20b   :  { %157 = vrsqrt.f32 %v112_v35  ;;  %v111_v37 = vmul.f32 0.03125, %v109_v36 }
 0x20d   :  { %v113_v38 = vadd.f32 1e-05, %v111_v37 }
 0x20f   :  { %159 = vrsqrt.f32 %v113_v38 }
 0x215   :  { %v158_v39 = vpop.eup %157 }
 0x216   :  { %v116_v41 = vmul.f32 %v158_v39, %v100_v25 }
 0x218   :  { %v124_v43 = vmul.f32 %v142_v40, %v116_v41 }
 0x219   :  { %v160_v44 = vpop.eup %159 }
 0x21a   :  { %v132_v45 = vadd.f32 %v143_v42, %v124_v43  ;;  %v117_v46 = vmul.f32 %v160_v44, %v101_v29 }
 0x21c   :  { %134 = vst.msk [vmem:[%s250_s6] sm:$0xff] %vm40_vm1, %v132_v45  ;;  %v125_v47 = vmul.f32 %v142_v40, %v117_v46 }
 0x21e   :  { %v133_v48 = vadd.f32 %v143_v42, %v125_v47 }
 0x220   :  { %135 = vst.msk [vmem:[%s250_s6 + $0x8] sm:$0xff] %vm40_vm1, %v133_v48 }

// kernel: transformer_v2_forward.46
= control target key start
LH: loop header
LB: loop body
LE: loop exit
PB: predicated region body
PF: predicated region fallthrough
CT: control target
= control target key end

     0   :  { %vm19_vm0 = vcmask 261120   ;;  %v117_v0 = vmov 0.0   ;;  %vm118_vm1 = vmmov 0   ;;  %s173_s1 = inlined_call_operand.vmem [shape: f32[32,32], index: 1, kind: input, shape index: {}]   ;;  %s174_s0 = inlined_call_operand.vmem [shape: f32[16,32], index: 0, kind: input, shape index: {}]   ;;  %s175_s2 = inlined_call_operand.vmem [shape: f32[1,32], index: 2, kind: input, shape index: {}]   ;;  %s176_s3 = inlined_call_operand.vmem [shape: f32[16,32], index: 3, kind: output, shape index: {}]  }
   0x1   :  { %107 = vmatprep.subr.bf16.mxu0 %v117_v0  ;;  %v27_v1 = vld [vmem:[%s173_s1] sm:$0xff]  ;;  %v28_v2 = vld [vmem:[%s173_s1 + $0x8] sm:$0xff]  ;;  %v29_v3 = vld [vmem:[%s173_s1 + $0x10] sm:$0xff]  ;;  %111 = vmatprep.mubr.msk.bf16.mxu0 %vm118_vm1, %v117_v0  ;;  %20 = vst.msk [vmem:[#allocation2] sm:$0xff] %vm19_vm0, %v117_v0 }
   0x2   :  { %21 = vst.msk [vmem:[#allocation2 + $0x8] sm:$0xff] %vm19_vm0, %v117_v0  ;;  %v31_v4 = vpack.c.bf16 %v28_v2, %v27_v1  ;;  %v30_v5 = vld [vmem:[%s173_s1 + $0x18] sm:$0xff]  ;;  %v24_v7 = vld [vmem:[%s174_s0] sm:$0xff]  ;;  %v25_v8 = vld [vmem:[%s174_s0 + $0x8] sm:$0xff] }
   0x3   :  { %v32_v6 = vpack.c.bf16 %v30_v5, %v29_v3  ;;  %v26_v9 = vpack.c.bf16 %v25_v8, %v24_v7  ;;  %v103_v18 = vld [vmem:[%s175_s2] ss:$0 sm:$0xff] }
   0x4   :  { %108 = vmatpush3.bf16.msra.mxu0 %v31_v4 }
   0x5   :  { %109 = vmatprep.subr.bf16.mxu0 %v117_v0 }
   0x8   :  { %110 = vmatpush3.bf16.msra.mxu0 %v32_v6  ;;  %v22_v10 = vld [vmem:[#allocation2] sm:$0xff] }
   0x9   :  { %v23_v12 = vld [vmem:[#allocation2 + $0x8] sm:$0xff] }
   0xb   :  { %112 = vmatmul.mubr.msk.bf16.vlgmr.msra.gmra.mrb[0].mxu0 %vm19_vm0, %v26_v9 }
  0xde   :  { %v71_v11 = vpop.f32.mrb[0].mxu0 }
  0xdf   :  { %v78_v13 = vadd.f32 %v71_v11, %v22_v10  ;;  %v113_v14 = vpop.f32.mrb[1].mxu0 }
  0xe0   :  { %v74_v15 = vpop.f32.mrb[2].mxu0 }
  0xe1   :  { %80 = vst.msk [vmem:[#allocation2] sm:$0xff] %vm19_vm0, %v78_v13  ;;  %v79_v16 = vadd.f32 %v74_v15, %v23_v12  ;;  %v114_v17 = vpop.f32.mrb[3].mxu0 }
  0xe3   :  { %81 = vst.msk [vmem:[#allocation2 + $0x8] sm:$0xff] %vm19_vm0, %v79_v16 }
  0xe8   :  { %v85_v19 = vld [vmem:[#allocation2] sm:$0xff] }
  0xe9   :  { %v94_v20 = vadd.f32 %v103_v18, %v85_v19 }
  0xea   :  { %v86_v21 = vld [vmem:[#allocation2 + $0x8] sm:$0xff] }
  0xeb   :  { %96 = vst.msk [vmem:[%s176_s3] sm:$0xff] %vm19_vm0, %v94_v20  ;;  %v95_v22 = vadd.f32 %v103_v18, %v86_v21 }
  0xed   :  { %97 = vst.msk [vmem:[%s176_s3 + $0x8] sm:$0xff] %vm19_vm0, %v95_v22 }

// kernel: transformer_v2_forward.44
= control target key start
LH: loop header
LB: loop body
LE: loop exit
PB: predicated region body
PF: predicated region fallthrough
CT: control target
= control target key end

     0   :  { %s1146_s12 = smov 0   ;;  %s1148_s13 = smov 0   ;;  %s1339_s0 = inlined_call_operand.vmem [shape: f32[2,4,8,8], index: 0, kind: input, shape index: {}]   ;;  %s1340_s1 = inlined_call_operand.vmem [shape: f32[2,4,8,8], index: 1, kind: input, shape index: {}]   ;;  %s1341_s2 = inlined_call_operand.vmem [shape: f32[2,4,8,8], index: 2, kind: input, shape index: {}]   ;;  %s1342_s3 = inlined_call_operand.vmem [shape: f32[2,4,8,8], index: 3, kind: output, shape index: {}]  }
   0x1   :  { %s1150_s14 = smov 0  }
   0x2 LB: > { %s25_s15 = sadd.s32 1, %s1116_s13  ;;  %p957_p0 = scmp.ge.s32.totalorder %s1120_s14, 1  ;;  %s1120_s14 = sphi %s1150_s14, %s13_s14   ;;  %s1116_s13 = sphi %s1148_s13, %s1344_s13   ;;  %s1112_s12 = sphi %s1146_s12, %s1343_s12  }
   0x3   : > { %p27_p1 = scmp.ge.s32.totalorder %s25_s15, 2  ;;  %p179_p2 = scmp.lt.s32.totalorder %s1120_s14, 3 }
   0x5   : > { %s1346_s15 = smov (%p27_p1, %s25_s15), 0  ;;  %p180_p3 = pnand %p957_p0, %p179_p2 }
   0x6   : > { %p219_p4 = scmp.lt.s32.totalorder (!%p180_p3), %s1112_s12, 1  ;;  %vm259_vm0 = vcmask (!%p180_p3), 64512   ;;  %v1122_v0 = vmov (!%p180_p3), 0.0   ;;  %vm1123_vm1 = vmmov (!%p180_p3), 0   ;;  %vm250_vm2 = vcmask (!%p180_p3), 7168  }
   0x7   : > { %183 = sbr.rel (%p180_p3) target bundleno = 836 (0x344), region = 32  ;;  %996 = vmatprep.subr.bf16.mxu0 (!%p180_p3), %v1122_v0  ;;  %260 = vst.msk [vmem:[#allocation4] sm:$0xff] (!%p180_p3), %vm259_vm0, %v1122_v0  ;;  %261 = vst.msk [vmem:[#allocation4 + $0x8] sm:$0xff] (!%p180_p3), %vm259_vm0, %v1122_v0  ;;  %1002 = vmatprep.subr.bf16.mxu1 (!%p180_p3), %v1122_v0  ;;  %v1124_v25 = vmov (!%p180_p3), -1e+30   ;;  %v469_v26 = vlaneseq (!%p180_p3)  ;;  %v1125_v53 = vmov (!%p180_p3), 0  }
   0x8   : > { %262 = vst.msk [vmem:[#allocation4 + $0x10] sm:$0xff] (!%p180_p3), %vm259_vm0, %v1122_v0  ;;  %263 = vst.msk [vmem:[#allocation4 + $0x18] sm:$0xff] (!%p180_p3), %vm259_vm0, %v1122_v0  ;;  %998 = vmatprep.mubr.msk.bf16.mxu0 (!%p180_p3), %vm1123_vm1, %v1122_v0  ;;  %1004 = vmatprep.mubr.msk.bf16.mxu1 (!%p180_p3), %vm1123_vm1, %v1122_v0  ;;  %vm617_vm4 = vcmask (!%p180_p3), 1043456  }
   0x9   : > { %251 = vst.msk [vmem:[#allocation2] sm:$0xff] (!%p180_p3), %vm250_vm2, %v1124_v25  ;;  %252 = vst.msk [vmem:[#allocation2 + $0x8] sm:$0xff] (!%p180_p3), %vm250_vm2, %v1124_v25  ;;  %v470_v27 = vshrl.u32 (!%p180_p3), %v469_v26, 7  ;;  %v472_v28 = vand.u32 (!%p180_p3), 127, %v469_v26  ;;  %1072 = vset.pattern.permute.xlu0 (!%p180_p3), %v1125_v53  ;;  %1073 = vset.pattern.permute.xlu1 (!%p180_p3), %v1125_v53 }
   0xa   : > { %253 = vst.msk [vmem:[#allocation2 + $0x10] sm:$0xff] (!%p180_p3), %vm250_vm2, %v1124_v25  ;;  %254 = vst.msk [vmem:[#allocation2 + $0x18] sm:$0xff] (!%p180_p3), %vm250_vm2, %v1124_v25 }
   0xb   : > { %255 = vst.msk [vmem:[#allocation3] sm:$0xff] (!%p180_p3), %vm250_vm2, %v1122_v0  ;;  %256 = vst.msk [vmem:[#allocation3 + $0x8] sm:$0xff] (!%p180_p3), %vm250_vm2, %v1122_v0  ;;  %vm476_vm3 = vcmp.gt.s32.totalorder (!%p180_p3), %v472_v28, %v470_v27 }
   0xc   : > { %257 = vst.msk [vmem:[#allocation3 + $0x10] sm:$0xff] (!%p180_p3), %vm250_vm2, %v1122_v0  ;;  %258 = vst.msk [vmem:[#allocation3 + $0x18] sm:$0xff] (!%p180_p3), %vm250_vm2, %v1122_v0 }
   0xe   : > { %s1348_s12 = smov (!%p219_p4, %s1112_s12), 1 }
   0xf   : > { %s1178_s16 = sshll.u32 %s1348_s12, 5 }
  0x10   : > { %s231_s19 = scalar_lea.vmem %s1340_s1, %s1178_s16  ;;  %s223_s22 = scalar_lea.vmem %s1339_s0, %s1178_s16  ;;  %v1240_v54 = vld [vmem:[#allocation2] sm:$0xff]  ;;  %v1245_v57 = vld [vmem:[#allocation2 + $0x8] sm:$0xff] }
  0x11   : > { %v276_v1 = vld [vmem:[%s231_s19] sm:$0xff]  ;;  %v277_v2 = vld [vmem:[%s231_s19 + $0x8] sm:$0xff]  ;;  %v278_v7 = vld [vmem:[%s231_s19 + $0x10] sm:$0xff]  ;;  %s239_s25 = scalar_lea.vmem %s1341_s2, %s1178_s16  ;;  %s244_s28 = scalar_lea.vmem %s1342_s3, %s1178_s16 }
  0x12   : > { %v264_v3 = vld [vmem:[%s223_s22] sm:$0xff]  ;;  %v280_v4 = vpack.c.bf16 %v276_v1, %v276_v1  ;;  %v281_v5 = vpack.c.bf16 %v277_v2, %v277_v2  ;;  %v265_v6 = vld [vmem:[%s223_s22 + $0x8] sm:$0xff]  ;;  %v279_v8 = vld [vmem:[%s231_s19 + $0x18] sm:$0xff]  ;;  %v282_v13 = vpack.c.bf16 %v278_v7, %v278_v7 }
  0x13   : > { %v268_v11 = vmul.f32 0.35355338, %v264_v3  ;;  %v269_v12 = vmul.f32 0.35355338, %v265_v6  ;;  %v283_v14 = vpack.c.bf16 %v279_v8, %v279_v8  ;;  %v266_v17 = vld [vmem:[%s223_s22 + $0x10] sm:$0xff]  ;;  %v267_v18 = vld [vmem:[%s223_s22 + $0x18] sm:$0xff] }
  0x14   : > { %v289_v9 = vsel %vm259_vm0, %v280_v4, 0  ;;  %v335_v10 = vsel %vm259_vm0, %v281_v5, 0  ;;  %v381_v19 = vsel %vm259_vm0, %v282_v13, 0  ;;  %v270_v21 = vmul.f32 0.35355338, %v266_v17  ;;  %v1255_v61 = vld [vmem:[#allocation2 + $0x10] sm:$0xff] }
  0x15   : > { %997 = vmatpush3.bf16.xpose.msra.mxu0 %v289_v9  ;;  %1003 = vmatpush3.bf16.xpose.msra.mxu1 %v335_v10  ;;  %v272_v15 = vpack.c.bf16 %v268_v11, %v268_v11  ;;  %v273_v16 = vpack.c.bf16 %v269_v12, %v269_v12  ;;  %v427_v20 = vsel %vm259_vm0, %v283_v14, 0  ;;  %v271_v22 = vmul.f32 0.35355338, %v267_v18  ;;  %v1265_v2 = vld [vmem:[#allocation2 + $0x18] sm:$0xff]  ;;  %v606_v6 = vld [vmem:[%s239_s25] sm:$0xff]  ;;  %v607_v10 = vld [vmem:[%s239_s25 + $0x8] sm:$0xff] }
  0x16   : > { %1008 = vmatprep.subr.bf16.mxu0 %v1122_v0  ;;  %1014 = vmatprep.subr.bf16.mxu1 %v1122_v0  ;;  %v274_v23 = vpack.c.bf16 %v270_v21, %v270_v21  ;;  %v610_v7 = vpack.c.bf16 %v606_v6, %v606_v6  ;;  %v611_v11 = vpack.c.bf16 %v607_v10, %v607_v10  ;;  %v608_v13 = vld [vmem:[%s239_s25 + $0x10] sm:$0xff]  ;;  %v546_v53 = vld [vmem:[#allocation3 + $0x8] sm:$0xff] }
  0x17   : > { %v275_v24 = vpack.c.bf16 %v271_v22, %v271_v22  ;;  %v612_v14 = vpack.c.bf16 %v608_v13, %v608_v13 }
  0x18   : > { %v619_v9 = vsel %vm617_vm4, %v610_v7, 0  ;;  %v665_v12 = vsel %vm617_vm4, %v611_v11, 0  ;;  %v574_v11 = vld [vmem:[#allocation4] sm:$0xff] }
  0x1c   : > { %999 = vmatmul.mubr.msk.bf16.vlgmr.msra.gmra.mrb[0].mxu0 %vm259_vm0, %v272_v15  ;;  %1005 = vmatmul.mubr.msk.bf16.vlgmr.msra.gmra.mrb[0].mxu1 %vm259_vm0, %v273_v16  ;;  %v711_v15 = vsel %vm617_vm4, %v612_v14, 0  ;;  %v609_v16 = vld [vmem:[%s239_s25 + $0x18] sm:$0xff]  ;;  %v575_v14 = vld [vmem:[#allocation4 + $0x8] sm:$0xff] }
  0x1d   : > { %1009 = vmatpush3.bf16.xpose.msra.mxu0 %v381_v19  ;;  %1015 = vmatpush3.bf16.xpose.msra.mxu1 %v427_v20  ;;  %v613_v17 = vpack.c.bf16 %v609_v16, %v609_v16 }
  0x1e   : > { %1010 = vmatprep.mubr.msk.bf16.mxu0 %vm1123_vm1, %v1122_v0  ;;  %1016 = vmatprep.mubr.msk.bf16.mxu1 %vm1123_vm1, %v1122_v0 }
  0x1f   : > { %1020 = vmatprep.subr.bf16.mxu0 %v1122_v0  ;;  %1026 = vmatprep.subr.bf16.mxu1 %v1122_v0  ;;  %v757_v18 = vsel %vm617_vm4, %v613_v17, 0 }
  0x24   : > { %1011 = vmatmul.mubr.msk.bf16.vlgmr.msra.gmra.mrb[4].mxu0 %vm259_vm0, %v274_v23  ;;  %1017 = vmatmul.mubr.msk.bf16.vlgmr.msra.gmra.mrb[4].mxu1 %vm259_vm0, %v275_v24 }
  0x25   : > { %1022 = vmatprep.mubr.msk.bf16.mxu0 %vm1123_vm1, %v1122_v0  ;;  %1028 = vmatprep.mubr.msk.bf16.mxu1 %vm1123_vm1, %v1122_v0 }
  0x26   : > { %1021 = vmatpush3.bf16.msra.mxu0 %v619_v9  ;;  %1027 = vmatpush3.bf16.msra.mxu1 %v665_v12 }
  0x27   : > { %1032 = vmatprep.subr.bf16.mxu0 %v1122_v0  ;;  %1038 = vmatprep.subr.bf16.mxu1 %v1122_v0 }
  0xef   : > { %v325_v29 = vpop.f32.mrb[0].mxu0  ;;  %v371_v30 = vpop.f32.mrb[0].mxu1 }
  0xf0   : > { %v1221_v31 = vsel %vm476_vm3, -1e+30, %v325_v29  ;;  %v1000_v32 = vpop.f32.mrb[1].mxu0  ;;  %v1224_v33 = vsel %vm476_vm3, -1e+30, %v371_v30  ;;  %v1006_v34 = vpop.f32.mrb[1].mxu1 }
  0xf1   : > { %v328_v35 = vpop.f32.mrb[2].mxu0  ;;  %v485_v36 = vsel %vm259_vm0, %v1221_v31, -inf  ;;  %v374_v37 = vpop.f32.mrb[2].mxu1  ;;  %v488_v40 = vsel %vm259_vm0, %v1224_v33, -inf }
  0xf2   : > { %486 = vmax.xlane.f32.xlu0 %v485_v36  ;;  %v1001_v38 = vpop.f32.mrb[3].mxu0  ;;  %v1007_v39 = vpop.f32.mrb[3].mxu1 }
  0xf6   : > { %489 = vmax.xlane.f32.xlu0 %v488_v40 }
  0xf7   : > { %v417_v41 = vpop.f32.mrb[4].mxu0  ;;  %v463_v42 = vpop.f32.mrb[4].mxu1 }
  0xf8   : > { %v1231_v43 = vsel %vm476_vm3, -1e+30, %v417_v41  ;;  %v1012_v44 = vpop.f32.mrb[5].mxu0  ;;  %v1234_v45 = vsel %vm476_vm3, -1e+30, %v463_v42  ;;  %v1018_v46 = vpop.f32.mrb[5].mxu1 }
  0xf9   : > { %v420_v47 = vpop.f32.mrb[6].mxu0  ;;  %v491_v48 = vsel %vm259_vm0, %v1231_v43, -inf  ;;  %v466_v49 = vpop.f32.mrb[6].mxu1  ;;  %v494_v52 = vsel %vm259_vm0, %v1234_v45, -inf }
  0xfa   : > { %492 = vmax.xlane.f32.xlu1 %v491_v48  ;;  %v1013_v50 = vpop.f32.mrb[7].mxu0  ;;  %v1019_v51 = vpop.f32.mrb[7].mxu1 }
  0xfb   : > { %v545_v50 = vld [vmem:[#allocation3] sm:$0xff] }
  0xfe   : > { %495 = vmax.xlane.f32.xlu1 %v494_v52 }
 0x17f   : > { %v487_v55 = vpop.xlane.xlu0 %486 }
 0x180   : > { %v1243_v56 = vmax.f32 %v1240_v54, %v487_v55 }
 0x182   : > { %v501_v58 = vsub.f32 %v1240_v54, %v1243_v56  ;;  %807 = vst.msk [vmem:[#allocation2] sm:$0xff] %vm250_vm2, %v1243_v56  ;;  %515 = vperm.xlu0 %1072, %v1243_v56  }
 0x183   : > { %v490_v59 = vpop.xlane.xlu0 %489 }
 0x184   : > { %v1253_v60 = vmax.f32 %v1245_v57, %v490_v59 }
 0x186   : > { %v502_v62 = vsub.f32 %v1245_v57, %v1253_v60  ;;  %808 = vst.msk [vmem:[#allocation2 + $0x8] sm:$0xff] %vm250_vm2, %v1253_v60  ;;  %520 = vperm.xlu1 %1073, %v1253_v60   ;;  %v547_v57 = vld [vmem:[#allocation3 + $0x10] sm:$0xff] }
 0x187   : > { %v493_v63 = vpop.xlane.xlu1 %492 }
 0x188   : > { %v1263_v1 = vmax.f32 %v1255_v61, %v493_v63  ;;  %v507_v41 = vmul.f32 1.442695, %v502_v62 }
 0x18a   : > { %v503_v3 = vsub.f32 %v1255_v61, %v1263_v1  ;;  %809 = vst.msk [vmem:[#allocation2 + $0x10] sm:$0xff] %vm250_vm2, %v1263_v1  ;;  %525 = vperm.xlu1 %1073, %v1263_v1   ;;  %v548_v61 = vld [vmem:[#allocation3 + $0x18] sm:$0xff] }
 0x18b   : > { %v496_v4 = vpop.xlane.xlu1 %495 }
 0x18c   : > { %v1277_v5 = vmax.f32 %v1265_v2, %v496_v4  ;;  %v509_v44 = vmul.f32 1.442695, %v503_v3 }
 0x18e   : > { %v504_v8 = vsub.f32 %v1265_v2, %v1277_v5  ;;  %810 = vst.msk [vmem:[#allocation2 + $0x18] sm:$0xff] %vm250_vm2, %v1277_v5  ;;  %530 = vperm.xlu1 %1073, %v1277_v5  }
 0x201   : > { %v516_v19 = vpop.permute.xlu0 %515 }
 0x202   : > { %v533_v20 = vsub.f32 %v1221_v31, %v516_v19 }
 0x204   : > { %v537_v21 = vmul.f32 1.442695, %v533_v20 }
 0x205   : > { %v521_v22 = vpop.permute.xlu1 %520 }
 0x206   : > { %1074 = vpow2.f32 %v537_v21  ;;  %v534_v23 = vsub.f32 %v1224_v33, %v521_v22 }
 0x208   : > { %v539_v24 = vmul.f32 1.442695, %v534_v23  ;;  %v576_v23 = vld [vmem:[#allocation4 + $0x10] sm:$0xff] }
 0x209   : > { %v526_v25 = vpop.permute.xlu1 %525 }
 0x20a   : > { %1076 = vpow2.f32 %v539_v24  ;;  %v535_v26 = vsub.f32 %v1231_v43, %v526_v25 }
 0x20c   : > { %v541_v27 = vmul.f32 1.442695, %v535_v26 }
 0x20d   : > { %v531_v28 = vpop.permute.xlu1 %530 }
 0x20e   : > { %1078 = vpow2.f32 %v541_v27  ;;  %v536_v29 = vsub.f32 %v1234_v45, %v531_v28  ;;  %v511_v45 = vmul.f32 1.442695, %v504_v8 }
 0x210   : > { %v1075_v30 = vpop.eup %1074  ;;  %v543_v32 = vmul.f32 1.442695, %v536_v29 }
 0x211   : > { %v553_v34 = vsel %vm259_vm0, %v1075_v30, 0.0  ;;  %v602_v31 = vpack.c.bf16 %v1075_v30, %v1075_v30  ;;  %v577_v30 = vld [vmem:[#allocation4 + $0x18] sm:$0xff] }
 0x212   : > { %1080 = vpow2.f32 %v543_v32  ;;  %554 = vadd.xlane.f32.xlu1 %v553_v34 }
 0x213   : > { %1023 = vmatmul.mubr.msk.bf16.vlgmr.msra.gmra.mrb[8].mxu0 %vm259_vm0, %v602_v31  ;;  %1082 = vpow2.f32 %v507_v41 }
 0x214   : > { %v1077_v33 = vpop.eup %1076  ;;  %1033 = vmatpush3.bf16.msra.mxu0 %v711_v15  ;;  %1034 = vmatprep.mubr.msk.bf16.mxu0 %vm1123_vm1, %v1122_v0 }
 0x215   : > { %v556_v35 = vsel %vm259_vm0, %v1077_v33, 0.0  ;;  %v603_v36 = vpack.c.bf16 %v1077_v33, %v1077_v33 }
 0x216   : > { %557 = vadd.xlane.f32.xlu0 %v556_v35 }
 0x217   : > { %1029 = vmatmul.mubr.msk.bf16.vlgmr.msra.gmra.mrb[8].mxu1 %vm259_vm0, %v603_v36 }
 0x218   : > { %v1079_v37 = vpop.eup %1078  ;;  %1039 = vmatpush3.bf16.msra.mxu1 %v757_v18  ;;  %1040 = vmatprep.mubr.msk.bf16.mxu1 %vm1123_vm1, %v1122_v0  ;;  %v505_v0 = vmul.f32 1.442695, %v501_v58 }
 0x219   : > { %v559_v38 = vsel %vm259_vm0, %v1079_v37, 0.0  ;;  %v604_v39 = vpack.c.bf16 %v1079_v37, %v1079_v37 }
 0x21a   : > { %560 = vadd.xlane.f32.xlu1 %v559_v38  ;;  %1084 = vpow2.f32 %v505_v0 }
 0x21b   : > { %1035 = vmatmul.mubr.msk.bf16.vlgmr.msra.gmra.mrb[12].mxu0 %vm259_vm0, %v604_v39  ;;  %1086 = vpow2.f32 %v509_v44 }
 0x21c   : > { %v1081_v40 = vpop.eup %1080  ;;  %1088 = vpow2.f32 %v511_v45 }
 0x21d   : > { %v562_v42 = vsel %vm259_vm0, %v1081_v40, 0.0  ;;  %v605_v43 = vpack.c.bf16 %v1081_v40, %v1081_v40  ;;  %v1083_v46 = vpop.eup %1082 }
 0x21e   : > { %563 = vadd.xlane.f32.xlu1 %v562_v42  ;;  %v550_v55 = vmul.f32 %v1083_v46, %v546_v53 }
 0x21f   : > { %1041 = vmatmul.mubr.msk.bf16.vlgmr.msra.gmra.mrb[12].mxu1 %vm259_vm0, %v605_v43 }
 0x224   : > { %v1085_v47 = vpop.eup %1084 }
 0x225   : > { %v1087_v48 = vpop.eup %1086  ;;  %v549_v51 = vmul.f32 %v1085_v47, %v545_v50 }
 0x226   : > { %v1089_v49 = vpop.eup %1088  ;;  %v551_v59 = vmul.f32 %v1087_v48, %v547_v57 }
 0x227   : > { %v552_v1 = vmul.f32 %v1089_v49, %v548_v61 }
 0x22c   : > { %585 = vperm.xlu0 %1072, %v1083_v46  }
 0x22f   : > { %580 = vperm.xlu1 %1073, %v1085_v47  }
 0x233   : > { %590 = vperm.xlu1 %1073, %v1087_v48  }
 0x237   : > { %595 = vperm.xlu1 %1073, %v1089_v49  }
 0x29f   : > { %v555_v52 = vpop.xlane.xlu1 %554 }
 0x2a0   : > { %v565_v54 = vadd.f32 %v555_v52, %v549_v51 }
 0x2a2   : > { %570 = vst.msk [vmem:[#allocation3] sm:$0xff] %vm250_vm2, %v565_v54 }
 0x2a3   : > { %v558_v56 = vpop.xlane.xlu0 %557 }
 0x2a4   : > { %v566_v58 = vadd.f32 %v558_v56, %v550_v55 }
 0x2a6   : > { %571 = vst.msk [vmem:[#allocation3 + $0x8] sm:$0xff] %vm250_vm2, %v566_v58 }
 0x2a7   : > { %v561_v60 = vpop.xlane.xlu1 %560 }
 0x2a8   : > { %v567_v62 = vadd.f32 %v561_v60, %v551_v59 }
 0x2a9   : > { %v818_v63 = vld [vmem:[#allocation3] sm:$0xff] }
 0x2aa   : > { %572 = vst.msk [vmem:[#allocation3 + $0x10] sm:$0xff] %vm250_vm2, %v567_v62  ;;  %1090 = vrcp.f32 %v818_v63 }
 0x2ab   : > { %v564_v2 = vpop.xlane.xlu1 %563  ;;  %v586_v15 = vpop.permute.xlu0 %585 }
 0x2ac   : > { %v568_v3 = vadd.f32 %v564_v2, %v552_v1  ;;  %v599_v21 = vmul.f32 %v586_v15, %v575_v14 }
 0x2ad   : > { %v819_v4 = vld [vmem:[#allocation3 + $0x8] sm:$0xff] }
 0x2ae   : > { %573 = vst.msk [vmem:[#allocation3 + $0x18] sm:$0xff] %vm250_vm2, %v568_v3  ;;  %1092 = vrcp.f32 %v819_v4 }
 0x2af   : > { %v581_v12 = vpop.permute.xlu1 %580 }
 0x2b0   : > { %v598_v13 = vmul.f32 %v581_v12, %v574_v11 }
 0x2b1   : > { %v820_v5 = vld [vmem:[#allocation3 + $0x10] sm:$0xff] }
 0x2b2   : > { %1094 = vrcp.f32 %v820_v5 }
 0x2b3   : > { %v591_v19 = vpop.permute.xlu1 %590 }
 0x2b4   : > { %v1091_v6 = vpop.eup %1090  ;;  %v600_v28 = vmul.f32 %v591_v19, %v576_v23 }
 0x2b5   : > { %828 = vperm.xlu1 %1073, %v1091_v6   ;;  %v821_v7 = vld [vmem:[#allocation3 + $0x18] sm:$0xff] }
 0x2b6   : > { %1096 = vrcp.f32 %v821_v7 }
 0x2b7   : > { %v596_v32 = vpop.permute.xlu1 %595 }
 0x2b8   : > { %v1093_v8 = vpop.eup %1092  ;;  %v601_v36 = vmul.f32 %v596_v32, %v577_v30 }
 0x2b9   : > { %833 = vperm.xlu0 %1072, %v1093_v8  }
 0x2bc   : > { %v1095_v9 = vpop.eup %1094 }
 0x2bd   : > { %838 = vperm.xlu1 %1073, %v1095_v9  }
 0x2c0   : > { %v1097_v10 = vpop.eup %1096 }
 0x2c1   : > { %843 = vperm.xlu0 %1072, %v1097_v10  }
 0x2e6   : > { %v655_v16 = vpop.f32.mrb[8].mxu0 }
 0x2e7   : > { %v799_v17 = vadd.f32 %v655_v16, %v598_v13  ;;  %v1024_v18 = vpop.f32.mrb[9].mxu0 }
 0x2e8   : > { %v658_v20 = vpop.f32.mrb[10].mxu0 }
 0x2e9   : > { %803 = vst.msk [vmem:[#allocation4] sm:$0xff] %vm259_vm0, %v799_v17  ;;  %v1025_v22 = vpop.f32.mrb[11].mxu0 }
 0x2ea   : > { %v701_v24 = vpop.f32.mrb[8].mxu1 }
 0x2eb   : > { %v800_v25 = vadd.f32 %v701_v24, %v599_v21  ;;  %v1030_v26 = vpop.f32.mrb[9].mxu1 }
 0x2ec   : > { %v704_v27 = vpop.f32.mrb[10].mxu1 }
 0x2ed   : > { %804 = vst.msk [vmem:[#allocation4 + $0x8] sm:$0xff] %vm259_vm0, %v800_v25  ;;  %v1031_v29 = vpop.f32.mrb[11].mxu1 }
 0x2ee   : > { %v747_v34 = vpop.f32.mrb[12].mxu0 }
 0x2ef   : > { %v801_v31 = vadd.f32 %v747_v34, %v600_v28  ;;  %v1036_v33 = vpop.f32.mrb[13].mxu0 }
 0x2f0   : > { %v750_v35 = vpop.f32.mrb[14].mxu0  ;;  %v814_v0 = vld [vmem:[#allocation4] sm:$0xff] }
 0x2f1   : > { %805 = vst.msk [vmem:[#allocation4 + $0x10] sm:$0xff] %vm259_vm0, %v801_v31  ;;  %v1037_v37 = vpop.f32.mrb[15].mxu0 }
 0x2f2   : > { %v793_v38 = vpop.f32.mrb[12].mxu1 }
 0x2f3   : > { %v802_v39 = vadd.f32 %v793_v38, %v601_v36  ;;  %v1042_v40 = vpop.f32.mrb[13].mxu1 }
 0x2f4   : > { %v796_v41 = vpop.f32.mrb[14].mxu1  ;;  %v815_v45 = vld [vmem:[#allocation4 + $0x8] sm:$0xff] }
 0x2f5   : > { %806 = vst.msk [vmem:[#allocation4 + $0x18] sm:$0xff] %vm259_vm0, %v802_v39  ;;  %v1043_v42 = vpop.f32.mrb[15].mxu1 }
 0x2f8   : > { %v816_v49 = vld [vmem:[#allocation4 + $0x10] sm:$0xff] }
 0x2fc   : > { %v817_v52 = vld [vmem:[#allocation4 + $0x18] sm:$0xff] }
 0x334   : > { %v829_v43 = vpop.permute.xlu1 %828 }
 0x335   : > { %v846_v44 = vmul.f32 %v829_v43, %v814_v0 }
 0x337   : > { %850 = vst.msk [vmem:[%s244_s28] sm:$0xff] %vm259_vm0, %v846_v44 }
 0x338   : > { %v834_v46 = vpop.permute.xlu0 %833 }
 0x339   : > { %v847_v47 = vmul.f32 %v834_v46, %v815_v45 }
 0x33b   : > { %851 = vst.msk [vmem:[%s244_s28 + $0x8] sm:$0xff] %vm259_vm0, %v847_v47 }
 0x33c   : > { %v839_v48 = vpop.permute.xlu1 %838 }
 0x33d   : > { %v848_v50 = vmul.f32 %v839_v48, %v816_v49 }
 0x33f   : > { %852 = vst.msk [vmem:[%s244_s28 + $0x10] sm:$0xff] %vm259_vm0, %v848_v50 }
 0x340   : > { %v844_v51 = vpop.permute.xlu0 %843 }
 0x341   : > { %v849_v53 = vmul.f32 %v844_v51, %v817_v52 }
 0x343   : > { %853 = vst.msk [vmem:[%s244_s28 + $0x18] sm:$0xff] %vm259_vm0, %v849_v53 }
 0x344 PF: > { %s13_s14 = sadd.s32 1, %s1120_s14   ;;  %s1343_s12 = smov %s1116_s13 }
 0x345   : > { %p10_p5 = scmp.ge.s32.totalorder %s13_s14, 4   ;;  %s1344_s13 = smov %s1346_s15 }
 0x347   :  { %12 = sbr.rel (!%p10_p5) target bundleno = 2 (0x2), region = 76 }

// kernel: transformer_v2_forward.42
= control target key start
LH: loop header
LB: loop body
LE: loop exit
PB: predicated region body
PF: predicated region fallthrough
CT: control target
= control target key end

     0   :  { %vm18_vm0 = vcmask 261120   ;;  %s118_s0 = inlined_call_operand.vmem [shape: f32[16,32], index: 0, kind: input, shape index: {}]   ;;  %s119_s1 = inlined_call_operand.vmem [shape: f32[1,32], index: 1, kind: input, shape index: {}]   ;;  %s120_s2 = inlined_call_operand.vmem [shape: f32[1,32], index: 2, kind: input, shape index: {}]   ;;  %s121_s3 = inlined_call_operand.vmem [shape: f32[16,32], index: 3, kind: output, shape index: {}]  }
   0x1   :  { %v14_v0 = vld [vmem:[%s118_s0] sm:$0xff]  ;;  %v15_v1 = vld [vmem:[%s118_s0 + $0x8] sm:$0xff] }
   0x2   :  { %v19_v2 = vsel %vm18_vm0, %v14_v0, 0.0  ;;  %v22_v3 = vsel %vm18_vm0, %v15_v1, 0.0  ;;  %v68_v21 = vld [vmem:[%s119_s1] ss:$0 sm:$0xff] }
   0x3   :  { %20 = vadd.xlane.f32.xlu0 %v19_v2  ;;  %v69_v23 = vld [vmem:[%s120_s2] ss:$0 sm:$0xff] }
   0x7   :  { %23 = vadd.xlane.f32.xlu0 %v22_v3 }
  0x90   :  { %v21_v4 = vpop.xlane.xlu0 %20 }
  0x91   :  { %v26_v5 = vmul.f32 0.03125, %v21_v4 }
  0x93   :  { %v28_v6 = vsub.f32 %v14_v0, %v26_v5 }
  0x94   :  { %v24_v7 = vpop.xlane.xlu0 %23 }
  0x95   :  { %v27_v8 = vmul.f32 0.03125, %v24_v7  ;;  %v30_v9 = vmul.f32 %v28_v6, %v28_v6 }
  0x97   :  { %v29_v10 = vsub.f32 %v15_v1, %v27_v8  ;;  %v32_v11 = vsel %vm18_vm0, %v30_v9, 0.0 }
  0x98   :  { %33 = vadd.xlane.f32.xlu1 %v32_v11 }
  0x99   :  { %v31_v12 = vmul.f32 %v29_v10, %v29_v10 }
  0x9b   :  { %v35_v13 = vsel %vm18_vm0, %v31_v12, 0.0 }
  0x9c   :  { %36 = vadd.xlane.f32.xlu1 %v35_v13 }
 0x125   :  { %v34_v14 = vpop.xlane.xlu1 %33 }
 0x126   :  { %v38_v15 = vmul.f32 0.03125, %v34_v14 }
 0x128   :  { %v40_v16 = vadd.f32 1e-05, %v38_v15 }
 0x129   :  { %v37_v17 = vpop.xlane.xlu1 %36 }
 0x12a   :  { %70 = vrsqrt.f32 %v40_v16  ;;  %v39_v18 = vmul.f32 0.03125, %v37_v17 }
 0x12c   :  { %v41_v19 = vadd.f32 1e-05, %v39_v18 }
 0x12e   :  { %72 = vrsqrt.f32 %v41_v19 }
 0x134   :  { %v71_v20 = vpop.eup %70 }
 0x135   :  { %v44_v22 = vmul.f32 %v71_v20, %v28_v6 }
 0x137   :  { %v52_v24 = vmul.f32 %v68_v21, %v44_v22 }
 0x138   :  { %v73_v25 = vpop.eup %72 }
 0x139   :  { %v60_v26 = vadd.f32 %v69_v23, %v52_v24  ;;  %v45_v27 = vmul.f32 %v73_v25, %v29_v10 }
 0x13b   :  { %62 = vst.msk [vmem:[%s121_s3] sm:$0xff] %vm18_vm0, %v60_v26  ;;  %v53_v28 = vmul.f32 %v68_v21, %v45_v27 }
 0x13d   :  { %v61_v29 = vadd.f32 %v69_v23, %v53_v28 }
 0x13f   :  { %63 = vst.msk [vmem:[%s121_s3 + $0x8] sm:$0xff] %vm18_vm0, %v61_v29 }

// kernel: transformer_v2_forward.37
= control target key start
LH: loop header
LB: loop body
LE: loop exit
PB: predicated region body
PF: predicated region fallthrough
CT: control target
= control target key end

     0   :  { %vm31_vm0 = vcmask 261120   ;;  %v270_v0 = vmov 0.0   ;;  %vm271_vm1 = vmmov 0   ;;  %vm112_vm2 = vcmask 523264   ;;  %s383_s1 = inlined_call_operand.vmem [shape: f32[32,64], index: 1, kind: input, shape index: {}]   ;;  %s384_s3 = inlined_call_operand.vmem [shape: f32[64,32], index: 3, kind: input, shape index: {}]   ;;  %s385_s0 = inlined_call_operand.vmem [shape: f32[16,32], index: 0, kind: input, shape index: {}]   ;;  %s386_s2 = inlined_call_operand.vmem [shape: f32[1,64], index: 2, kind: input, shape index: {}]   ;;  %s387_s4 = inlined_call_operand.vmem [shape: f32[1,32], index: 4, kind: input, shape index: {}]   ;;  %s388_s5 = inlined_call_operand.vmem [shape: f32[1,32], index: 5, kind: input, shape index: {}]   ;;  %s389_s6 = inlined_call_operand.vmem [shape: f32[1,32], index: 6, kind: input, shape index: {}]   ;;  %s390_s7 = inlined_call_operand.vmem [shape: f32[16,32], index: 7, kind: output, shape index: {}]  }
   0x1   :  { %244 = vmatprep.subr.bf16.mxu0 %v270_v0  ;;  %v37_v1 = vld [vmem:[%s383_s1] sm:$0xff]  ;;  %v38_v2 = vld [vmem:[%s383_s1 + $0x8] sm:$0xff]  ;;  %v39_v3 = vld [vmem:[%s383_s1 + $0x10] sm:$0xff]  ;;  %248 = vmatprep.mubr.msk.bf16.mxu0 %vm271_vm1, %v270_v0  ;;  %32 = vst.msk [vmem:[#allocation2] sm:$0xff] %vm31_vm0, %v270_v0 }
   0x2   :  { %33 = vst.msk [vmem:[#allocation2 + $0x8] sm:$0xff] %vm31_vm0, %v270_v0  ;;  %v41_v4 = vpack.c.bf16 %v38_v2, %v37_v1  ;;  %v40_v5 = vld [vmem:[%s383_s1 + $0x18] sm:$0xff]  ;;  %252 = vmatprep.subr.bf16.mxu1 %v270_v0  ;;  %260 = vmatprep.mubr.msk.bf16.mxu1 %vm271_vm1, %v270_v0  ;;  %v100_v6 = vld [vmem:[%s384_s3] sm:$0xff]  ;;  %v101_v7 = vld [vmem:[%s384_s3 + $0x8] sm:$0xff] }
   0x3   :  { %v102_v8 = vld [vmem:[%s384_s3 + $0x10] sm:$0xff]  ;;  %v42_v9 = vpack.c.bf16 %v40_v5, %v39_v3  ;;  %v34_v10 = vld [vmem:[%s385_s0] sm:$0xff]  ;;  %v35_v11 = vld [vmem:[%s385_s0 + $0x8] sm:$0xff]  ;;  %v108_v12 = vpack.c.bf16 %v101_v7, %v100_v6 }
   0x4   :  { %245 = vmatpush3.bf16.msra.mxu0 %v41_v4  ;;  %v103_v13 = vld [vmem:[%s384_s3 + $0x18] sm:$0xff]  ;;  %v36_v15 = vpack.c.bf16 %v35_v11, %v34_v10  ;;  %v104_v16 = vld [vmem:[%s384_s3 + $0x20] sm:$0xff]  ;;  %v105_v17 = vld [vmem:[%s384_s3 + $0x28] sm:$0xff] }
   0x5   :  { %246 = vmatprep.subr.bf16.mxu0 %v270_v0  ;;  %253 = vmatpush3.bf16.msra.mxu1 %v108_v12  ;;  %v109_v14 = vpack.c.bf16 %v103_v13, %v102_v8  ;;  %v110_v18 = vpack.c.bf16 %v105_v17, %v104_v16  ;;  %v106_v19 = vld [vmem:[%s384_s3 + $0x30] sm:$0xff]  ;;  %v107_v20 = vld [vmem:[%s384_s3 + $0x38] sm:$0xff]  ;;  %v230_v22 = vld [vmem:[%s386_s2] ss:$0 sm:$0xff] }
   0x6   :  { %254 = vmatprep.subr.bf16.mxu1 %v270_v0  ;;  %v111_v21 = vpack.c.bf16 %v107_v20, %v106_v19  ;;  %v233_v40 = vld [vmem:[%s387_s4] ss:$0 sm:$0xff] }
   0x7   :  { %v234_v2 = vld [vmem:[%s388_s5] ss:$0 sm:$0xff] }
   0x8   :  { %247 = vmatpush3.bf16.msra.mxu0 %v42_v9  ;;  %v97_v32 = vld [vmem:[#allocation2] sm:$0xff] }
   0x9   :  { %255 = vmatpush3.bf16.msra.mxu1 %v109_v14  ;;  %v98_v34 = vld [vmem:[#allocation2 + $0x8] sm:$0xff]  ;;  %v235_v4 = vld [vmem:[%s389_s6] ss:$0 sm:$0xff] }
   0xa   :  { %256 = vmatprep.subr.bf16.mxu1 %v270_v0 }
   0xb   :  { %249 = vmatmul.mubr.msk.bf16.vlgmr.msra.gmra.mrb[0].mxu0 %vm31_vm0, %v36_v15 }
   0xd   :  { %257 = vmatpush3.bf16.msra.mxu1 %v110_v18 }
   0xe   :  { %258 = vmatprep.subr.bf16.mxu1 %v270_v0 }
  0x11   :  { %259 = vmatpush3.bf16.msra.mxu1 %v111_v21 }
  0xde   :  { %v88_v23 = vpop.f32.mrb[0].mxu0 }
  0xdf   :  { %v89_v24 = vadd.f32 %v230_v22, %v88_v23  ;;  %v250_v25 = vpop.f32.mrb[1].mxu0 }
  0xe0   :  { %v91_v26 = vpop.f32.mrb[2].mxu0 }
  0xe1   :  { %v92_v27 = vadd.f32 %v230_v22, %v91_v26  ;;  %v251_v28 = vpop.f32.mrb[3].mxu0  ;;  %v95_v29 = vmax.f32 %v89_v24, 0.0 }
  0xe3   :  { %v96_v30 = vmax.f32 %v92_v27, 0.0 }
  0xe5   :  { %v99_v31 = vpack.c.bf16 %v96_v30, %v95_v29 }
  0xe7   :  { %261 = vmatmul.mubr.msk.bf16.vlgmr.msra.gmra.mrb[0].mxu1 %vm112_vm2, %v99_v31 }
 0x1ba   :  { %v150_v33 = vpop.f32.mrb[0].mxu1 }
 0x1bb   :  { %v157_v35 = vadd.f32 %v150_v33, %v97_v32  ;;  %v262_v36 = vpop.f32.mrb[1].mxu1 }
 0x1bc   :  { %v153_v37 = vpop.f32.mrb[2].mxu1 }
 0x1bd   :  { %159 = vst.msk [vmem:[#allocation2] sm:$0xff] %vm31_vm0, %v157_v35  ;;  %v158_v38 = vadd.f32 %v153_v37, %v98_v34  ;;  %v263_v39 = vpop.f32.mrb[3].mxu1 }
 0x1bf   :  { %160 = vst.msk [vmem:[#allocation2 + $0x8] sm:$0xff] %vm31_vm0, %v158_v38 }
 0x1c4   :  { %v161_v41 = vld [vmem:[#allocation2] sm:$0xff] }
 0x1c5   :  { %v170_v42 = vadd.f32 %v233_v40, %v161_v41 }
 0x1c6   :  { %v162_v43 = vld [vmem:[#allocation2 + $0x8] sm:$0xff] }
 0x1c7   :  { %v174_v44 = vadd.f32 %v170_v42, %v34_v10  ;;  %v171_v45 = vadd.f32 %v233_v40, %v162_v43 }
 0x1c9   :  { %v178_v46 = vsel %vm31_vm0, %v174_v44, 0.0  ;;  %v175_v47 = vadd.f32 %v171_v45, %v35_v11 }
 0x1ca   :  { %179 = vadd.xlane.f32.xlu0 %v178_v46 }
 0x1cb   :  { %v181_v48 = vsel %vm31_vm0, %v175_v47, 0.0 }
 0x1ce   :  { %182 = vadd.xlane.f32.xlu0 %v181_v48 }
 0x257   :  { %v180_v49 = vpop.xlane.xlu0 %179 }
 0x258   :  { %v185_v50 = vmul.f32 0.03125, %v180_v49 }
 0x25a   :  { %v187_v51 = vsub.f32 %v174_v44, %v185_v50 }
 0x25b   :  { %v183_v52 = vpop.xlane.xlu0 %182 }
 0x25c   :  { %v186_v53 = vmul.f32 0.03125, %v183_v52  ;;  %v189_v54 = vmul.f32 %v187_v51, %v187_v51 }
 0x25e   :  { %v188_v55 = vsub.f32 %v175_v47, %v186_v53  ;;  %v191_v56 = vsel %vm31_vm0, %v189_v54, 0.0 }
 0x25f   :  { %192 = vadd.xlane.f32.xlu1 %v191_v56 }
 0x260   :  { %v190_v57 = vmul.f32 %v188_v55, %v188_v55 }
 0x262   :  { %v194_v58 = vsel %vm31_vm0, %v190_v57, 0.0 }
 0x263   :  { %195 = vadd.xlane.f32.xlu1 %v194_v58 }
 0x2ec   :  { %v193_v59 = vpop.xlane.xlu1 %192 }
 0x2ed   :  { %v197_v60 = vmul.f32 0.03125, %v193_v59 }
 0x2ef   :  { %v199_v61 = vadd.f32 1e-05, %v197_v60 }
 0x2f0   :  { %v196_v62 = vpop.xlane.xlu1 %195 }
 0x2f1   :  { %266 = vrsqrt.f32 %v199_v61  ;;  %v198_v63 = vmul.f32 0.03125, %v196_v62 }
 0x2f3   :  { %v200_v0 = vadd.f32 1e-05, %v198_v63 }
 0x2f5   :  { %268 = vrsqrt.f32 %v200_v0 }
 0x2fb   :  { %v267_v1 = vpop.eup %266 }
 0x2fc   :  { %v203_v3 = vmul.f32 %v267_v1, %v187_v51 }
 0x2fe   :  { %v211_v5 = vmul.f32 %v234_v2, %v203_v3 }
 0x2ff   :  { %v269_v6 = vpop.eup %268 }
 0x300   :  { %v219_v7 = vadd.f32 %v235_v4, %v211_v5  ;;  %v204_v8 = vmul.f32 %v269_v6, %v188_v55 }
 0x302   :  { %224 = vst.msk [vmem:[%s390_s7] sm:$0xff] %vm31_vm0, %v219_v7  ;;  %v212_v9 = vmul.f32 %v234_v2, %v204_v8 }
 0x304   :  { %v220_v10 = vadd.f32 %v235_v4, %v212_v9 }
 0x306   :  { %225 = vst.msk [vmem:[%s390_s7 + $0x8] sm:$0xff] %vm31_vm0, %v220_v10 }

// kernel: transformer_v2_forward.47
= control target key start
LH: loop header
LB: loop body
LE: loop exit
PB: predicated region body
PF: predicated region fallthrough
CT: control target
= control target key end

     0   :  { %vm19_vm0 = vcmask 523264   ;;  %v118_v0 = vmov 0.0   ;;  %vm119_vm1 = vmmov 0   ;;  %vm33_vm2 = vcmask 261120   ;;  %s173_s1 = inlined_call_operand.vmem [shape: f32[32,64], index: 1, kind: input, shape index: {}]   ;;  %s174_s0 = inlined_call_operand.vmem [shape: f32[16,32], index: 0, kind: input, shape index: {}]   ;;  %s175_s2 = inlined_call_operand.vmem [shape: f32[1,64], index: 2, kind: input, shape index: {}]   ;;  %s176_s3 = inlined_call_operand.vmem [shape: f32[16,64], index: 3, kind: output, shape index: {}]  }
   0x1   :  { %108 = vmatprep.subr.bf16.mxu0 %v118_v0  ;;  %v27_v1 = vld [vmem:[%s173_s1] sm:$0xff]  ;;  %v28_v2 = vld [vmem:[%s173_s1 + $0x8] sm:$0xff]  ;;  %v29_v3 = vld [vmem:[%s173_s1 + $0x10] sm:$0xff]  ;;  %112 = vmatprep.mubr.msk.bf16.mxu0 %vm119_vm1, %v118_v0  ;;  %20 = vst.msk [vmem:[#allocation2] sm:$0xff] %vm19_vm0, %v118_v0 }
   0x2   :  { %21 = vst.msk [vmem:[#allocation2 + $0x8] sm:$0xff] %vm19_vm0, %v118_v0  ;;  %v31_v4 = vpack.c.bf16 %v28_v2, %v27_v1  ;;  %v30_v5 = vld [vmem:[%s173_s1 + $0x18] sm:$0xff]  ;;  %v24_v7 = vld [vmem:[%s174_s0] sm:$0xff]  ;;  %v25_v8 = vld [vmem:[%s174_s0 + $0x8] sm:$0xff] }
   0x3   :  { %v32_v6 = vpack.c.bf16 %v30_v5, %v29_v3  ;;  %v26_v9 = vpack.c.bf16 %v25_v8, %v24_v7  ;;  %v104_v18 = vld [vmem:[%s175_s2] ss:$0 sm:$0xff] }
   0x4   :  { %109 = vmatpush3.bf16.msra.mxu0 %v31_v4 }
   0x5   :  { %110 = vmatprep.subr.bf16.mxu0 %v118_v0 }
   0x8   :  { %111 = vmatpush3.bf16.msra.mxu0 %v32_v6  ;;  %v22_v10 = vld [vmem:[#allocation2] sm:$0xff] }
   0x9   :  { %v23_v12 = vld [vmem:[#allocation2 + $0x8] sm:$0xff] }
   0xb   :  { %113 = vmatmul.mubr.msk.bf16.vlgmr.msra.gmra.mrb[0].mxu0 %vm33_vm2, %v26_v9 }
  0xde   :  { %v71_v11 = vpop.f32.mrb[0].mxu0 }
  0xdf   :  { %v78_v13 = vadd.f32 %v71_v11, %v22_v10  ;;  %v114_v14 = vpop.f32.mrb[1].mxu0 }
  0xe0   :  { %v74_v15 = vpop.f32.mrb[2].mxu0 }
  0xe1   :  { %81 = vst.msk [vmem:[#allocation2] sm:$0xff] %vm19_vm0, %v78_v13  ;;  %v79_v16 = vadd.f32 %v74_v15, %v23_v12  ;;  %v115_v17 = vpop.f32.mrb[3].mxu0 }
  0xe3   :  { %82 = vst.msk [vmem:[#allocation2 + $0x8] sm:$0xff] %vm19_vm0, %v79_v16 }
  0xe8   :  { %v86_v19 = vld [vmem:[#allocation2] sm:$0xff] }
  0xe9   :  { %v95_v20 = vadd.f32 %v104_v18, %v86_v19 }
  0xea   :  { %v87_v21 = vld [vmem:[#allocation2 + $0x8] sm:$0xff] }
  0xeb   :  { %97 = vst.msk [vmem:[%s176_s3] sm:$0xff] %vm19_vm0, %v95_v20  ;;  %v96_v22 = vadd.f32 %v104_v18, %v87_v21 }
  0xed   :  { %98 = vst.msk [vmem:[%s176_s3 + $0x8] sm:$0xff] %vm19_vm0, %v96_v22 }

// kernel: transformer_v2_forward.60
= control target key start
LH: loop header
LB: loop body
LE: loop exit
PB: predicated region body
PF: predicated region fallthrough
CT: control target
= control target key end

     0   :  { %vm25_vm0 = vcmask 261120   ;;  %v209_v0 = vmov 0.0   ;;  %vm210_vm1 = vmmov 0   ;;  %vm106_vm2 = vcmask 523264   ;;  %s302_s1 = inlined_call_operand.vmem [shape: f32[32,64], index: 1, kind: input, shape index: {}]   ;;  %s303_s3 = inlined_call_operand.vmem [shape: f32[64,32], index: 3, kind: input, shape index: {}]   ;;  %s304_s0 = inlined_call_operand.vmem [shape: f32[16,32], index: 0, kind: input, shape index: {}]   ;;  %s305_s2 = inlined_call_operand.vmem [shape: f32[1,64], index: 2, kind: input, shape index: {}]   ;;  %s306_s4 = inlined_call_operand.vmem [shape: f32[1,32], index: 4, kind: input, shape index: {}]   ;;  %s307_s5 = inlined_call_operand.vmem [shape: f32[16,32], index: 5, kind: output, shape index: {}]  }
   0x1   :  { %187 = vmatprep.subr.bf16.mxu0 %v209_v0  ;;  %v31_v1 = vld [vmem:[%s302_s1] sm:$0xff]  ;;  %v32_v2 = vld [vmem:[%s302_s1 + $0x8] sm:$0xff]  ;;  %v33_v3 = vld [vmem:[%s302_s1 + $0x10] sm:$0xff]  ;;  %191 = vmatprep.mubr.msk.bf16.mxu0 %vm210_vm1, %v209_v0  ;;  %26 = vst.msk [vmem:[#allocation2] sm:$0xff] %vm25_vm0, %v209_v0 }
   0x2   :  { %27 = vst.msk [vmem:[#allocation2 + $0x8] sm:$0xff] %vm25_vm0, %v209_v0  ;;  %v35_v4 = vpack.c.bf16 %v32_v2, %v31_v1  ;;  %v34_v5 = vld [vmem:[%s302_s1 + $0x18] sm:$0xff]  ;;  %195 = vmatprep.subr.bf16.mxu1 %v209_v0  ;;  %203 = vmatprep.mubr.msk.bf16.mxu1 %vm210_vm1, %v209_v0  ;;  %v94_v6 = vld [vmem:[%s303_s3] sm:$0xff]  ;;  %v95_v7 = vld [vmem:[%s303_s3 + $0x8] sm:$0xff] }
   0x3   :  { %v96_v8 = vld [vmem:[%s303_s3 + $0x10] sm:$0xff]  ;;  %v36_v9 = vpack.c.bf16 %v34_v5, %v33_v3  ;;  %v28_v10 = vld [vmem:[%s304_s0] sm:$0xff]  ;;  %v29_v11 = vld [vmem:[%s304_s0 + $0x8] sm:$0xff]  ;;  %v102_v12 = vpack.c.bf16 %v95_v7, %v94_v6 }
   0x4   :  { %188 = vmatpush3.bf16.msra.mxu0 %v35_v4  ;;  %v97_v13 = vld [vmem:[%s303_s3 + $0x18] sm:$0xff]  ;;  %v30_v15 = vpack.c.bf16 %v29_v11, %v28_v10  ;;  %v98_v16 = vld [vmem:[%s303_s3 + $0x20] sm:$0xff]  ;;  %v99_v17 = vld [vmem:[%s303_s3 + $0x28] sm:$0xff] }
   0x5   :  { %189 = vmatprep.subr.bf16.mxu0 %v209_v0  ;;  %196 = vmatpush3.bf16.msra.mxu1 %v102_v12  ;;  %v103_v14 = vpack.c.bf16 %v97_v13, %v96_v8  ;;  %v104_v18 = vpack.c.bf16 %v99_v17, %v98_v16  ;;  %v100_v19 = vld [vmem:[%s303_s3 + $0x30] sm:$0xff]  ;;  %v101_v20 = vld [vmem:[%s303_s3 + $0x38] sm:$0xff]  ;;  %v175_v22 = vld [vmem:[%s305_s2] ss:$0 sm:$0xff] }
   0x6   :  { %197 = vmatprep.subr.bf16.mxu1 %v209_v0  ;;  %v105_v21 = vpack.c.bf16 %v101_v20, %v100_v19  ;;  %v178_v40 = vld [vmem:[%s306_s4] ss:$0 sm:$0xff] }
   0x8   :  { %190 = vmatpush3.bf16.msra.mxu0 %v36_v9  ;;  %v91_v32 = vld [vmem:[#allocation2] sm:$0xff] }
   0x9   :  { %198 = vmatpush3.bf16.msra.mxu1 %v103_v14  ;;  %v92_v34 = vld [vmem:[#allocation2 + $0x8] sm:$0xff] }
   0xa   :  { %199 = vmatprep.subr.bf16.mxu1 %v209_v0 }
   0xb   :  { %192 = vmatmul.mubr.msk.bf16.vlgmr.msra.gmra.mrb[0].mxu0 %vm25_vm0, %v30_v15 }
   0xd   :  { %200 = vmatpush3.bf16.msra.mxu1 %v104_v18 }
   0xe   :  { %201 = vmatprep.subr.bf16.mxu1 %v209_v0 }
  0x11   :  { %202 = vmatpush3.bf16.msra.mxu1 %v105_v21 }
  0xde   :  { %v82_v23 = vpop.f32.mrb[0].mxu0 }
  0xdf   :  { %v83_v24 = vadd.f32 %v175_v22, %v82_v23  ;;  %v193_v25 = vpop.f32.mrb[1].mxu0 }
  0xe0   :  { %v85_v26 = vpop.f32.mrb[2].mxu0 }
  0xe1   :  { %v86_v27 = vadd.f32 %v175_v22, %v85_v26  ;;  %v194_v28 = vpop.f32.mrb[3].mxu0  ;;  %v89_v29 = vmax.f32 %v83_v24, 0.0 }
  0xe3   :  { %v90_v30 = vmax.f32 %v86_v27, 0.0 }
  0xe5   :  { %v93_v31 = vpack.c.bf16 %v90_v30, %v89_v29 }
  0xe7   :  { %204 = vmatmul.mubr.msk.bf16.vlgmr.msra.gmra.mrb[0].mxu1 %vm106_vm2, %v93_v31 }
 0x1ba   :  { %v144_v33 = vpop.f32.mrb[0].mxu1 }
 0x1bb   :  { %v151_v35 = vadd.f32 %v144_v33, %v91_v32  ;;  %v205_v36 = vpop.f32.mrb[1].mxu1 }
 0x1bc   :  { %v147_v37 = vpop.f32.mrb[2].mxu1 }
 0x1bd   :  { %153 = vst.msk [vmem:[#allocation2] sm:$0xff] %vm25_vm0, %v151_v35  ;;  %v152_v38 = vadd.f32 %v147_v37, %v92_v34  ;;  %v206_v39 = vpop.f32.mrb[3].mxu1 }
 0x1bf   :  { %154 = vst.msk [vmem:[#allocation2 + $0x8] sm:$0xff] %vm25_vm0, %v152_v38 }
 0x1c4   :  { %v155_v41 = vld [vmem:[#allocation2] sm:$0xff] }
 0x1c5   :  { %v164_v42 = vadd.f32 %v178_v40, %v155_v41 }
 0x1c6   :  { %v156_v43 = vld [vmem:[#allocation2 + $0x8] sm:$0xff] }
 0x1c7   :  { %169 = vst.msk [vmem:[%s307_s5] sm:$0xff] %vm25_vm0, %v164_v42  ;;  %v165_v44 = vadd.f32 %v178_v40, %v156_v43 }
 0x1c9   :  { %170 = vst.msk [vmem:[%s307_s5 + $0x8] sm:$0xff] %vm25_vm0, %v165_v44 }

// kernel: transformer_v2_forward.61
= control target key start
LH: loop header
LB: loop body
LE: loop exit
PB: predicated region body
PF: predicated region fallthrough
CT: control target
= control target key end

     0   :  { %v258_v0 = vmov 0.0   ;;  %vm259_vm0 = vmmov 0   ;;  %vm46_vm1 = vcmask 261120   ;;  %s367_s3 = inlined_call_operand.vmem [shape: f32[32,32], index: 3, kind: input, shape index: {}]   ;;  %s368_s1 = inlined_call_operand.vmem [shape: f32[32,32], index: 1, kind: input, shape index: {}]   ;;  %s369_s0 = inlined_call_operand.vmem [shape: f32[16,32], index: 0, kind: input, shape index: {}]   ;;  %s370_s4 = inlined_call_operand.vmem [shape: f32[1,32], index: 4, kind: input, shape index: {}]   ;;  %s371_s2 = inlined_call_operand.vmem [shape: f32[1,32], index: 2, kind: input, shape index: {}]   ;;  %s372_s5 = inlined_call_operand.vmem [shape: f32[16,32], index: 5, kind: input, shape index: {}]   ;;  %s373_s6 = inlined_call_operand.vmem [shape: f32[1,32], index: 6, kind: input, shape index: {}]   ;;  %s374_s7 = inlined_call_operand.vmem [shape: f32[1,32], index: 7, kind: input, shape index: {}]   ;;  %s375_s8 = inlined_call_operand.vmem [shape: f32[16,32], index: 8, kind: output, shape index: {}]  }
   0x1   :  { %236 = vmatprep.subr.bf16.mxu1 %v258_v0  ;;  %v91_v1 = vld [vmem:[%s367_s3] sm:$0xff]  ;;  %v92_v2 = vld [vmem:[%s367_s3 + $0x8] sm:$0xff]  ;;  %v93_v3 = vld [vmem:[%s367_s3 + $0x10] sm:$0xff]  ;;  %240 = vmatprep.mubr.msk.bf16.mxu1 %vm259_vm0, %v258_v0 }
   0x2   :  { %v95_v4 = vpack.c.bf16 %v92_v2, %v91_v1  ;;  %v94_v5 = vld [vmem:[%s367_s3 + $0x18] sm:$0xff]  ;;  %228 = vmatprep.subr.bf16.mxu0 %v258_v0  ;;  %232 = vmatprep.mubr.msk.bf16.mxu0 %vm259_vm0, %v258_v0  ;;  %v33_v6 = vld [vmem:[%s368_s1] sm:$0xff]  ;;  %v34_v7 = vld [vmem:[%s368_s1 + $0x8] sm:$0xff] }
   0x3   :  { %v35_v8 = vld [vmem:[%s368_s1 + $0x10] sm:$0xff]  ;;  %v96_v9 = vpack.c.bf16 %v94_v5, %v93_v3  ;;  %v30_v10 = vld [vmem:[%s369_s0] sm:$0xff]  ;;  %v31_v11 = vld [vmem:[%s369_s0 + $0x8] sm:$0xff]  ;;  %v37_v12 = vpack.c.bf16 %v34_v7, %v33_v6 }
   0x4   :  { %237 = vmatpush3.bf16.msra.mxu1 %v95_v4  ;;  %v36_v13 = vld [vmem:[%s368_s1 + $0x18] sm:$0xff]  ;;  %v32_v15 = vpack.c.bf16 %v31_v11, %v30_v10  ;;  %v216_v16 = vld [vmem:[%s370_s4] ss:$0 sm:$0xff]  ;;  %v160_v40 = vld [vmem:[%s372_s5 + $0x8] sm:$0xff] }
   0x5   :  { %238 = vmatprep.subr.bf16.mxu1 %v258_v0  ;;  %229 = vmatpush3.bf16.msra.mxu0 %v37_v12  ;;  %v38_v14 = vpack.c.bf16 %v36_v13, %v35_v8  ;;  %v214_v33 = vld [vmem:[%s371_s2] ss:$0 sm:$0xff] }
   0x6   :  { %230 = vmatprep.subr.bf16.mxu0 %v258_v0  ;;  %v159_v36 = vld [vmem:[%s372_s5] sm:$0xff] }
   0x7   :  { %v220_v63 = vld [vmem:[%s373_s6] ss:$0 sm:$0xff] }
   0x8   :  { %239 = vmatpush3.bf16.msra.mxu1 %v96_v9  ;;  %v221_v1 = vld [vmem:[%s374_s7] ss:$0 sm:$0xff] }
   0x9   :  { %231 = vmatpush3.bf16.msra.mxu0 %v38_v14 }
   0xb   :  { %241 = vmatmul.mubr.msk.bf16.vlgmr.msra.gmra.mrb[0].mxu1 %vm46_vm1, %v32_v15 }
   0xc   :  { %233 = vmatmul.mubr.msk.bf16.vlgmr.msra.gmra.mrb[0].mxu0 %vm46_vm1, %v32_v15 }
  0xde   :  { %v138_v17 = vpop.f32.mrb[0].mxu1 }
  0xdf   :  { %v139_v18 = vadd.f32 %v216_v16, %v138_v17  ;;  %v242_v19 = vpop.f32.mrb[1].mxu1  ;;  %v84_v21 = vpop.f32.mrb[0].mxu0 }
  0xe0   :  { %v141_v20 = vpop.f32.mrb[2].mxu1  ;;  %v234_v25 = vpop.f32.mrb[1].mxu0  ;;  %v85_v34 = vadd.f32 %v214_v33, %v84_v21 }
  0xe1   :  { %v218_v22 = vmul.f32 -1.442695, %v139_v18  ;;  %v142_v23 = vadd.f32 %v216_v16, %v141_v20  ;;  %v243_v24 = vpop.f32.mrb[3].mxu1  ;;  %v87_v26 = vpop.f32.mrb[2].mxu0 }
  0xe2   :  { %v235_v28 = vpop.f32.mrb[3].mxu0  ;;  %v88_v38 = vadd.f32 %v214_v33, %v87_v26 }
  0xe3   :  { %246 = vpow2.f32 %v218_v22  ;;  %v219_v27 = vmul.f32 -1.442695, %v142_v23 }
  0xe5   :  { %248 = vpow2.f32 %v219_v27 }
  0xed   :  { %v247_v29 = vpop.eup %246 }
  0xee   :  { %v151_v30 = vadd.f32 1.0, %v247_v29 }
  0xef   :  { %v249_v31 = vpop.eup %248 }
  0xf0   :  { %250 = vrcp.f32 %v151_v30  ;;  %v152_v32 = vadd.f32 1.0, %v249_v31 }
  0xf2   :  { %252 = vrcp.f32 %v152_v32 }
  0xfa   :  { %v251_v35 = vpop.eup %250 }
  0xfb   :  { %v157_v37 = vmul.f32 %v251_v35, %v85_v34 }
  0xfc   :  { %v253_v39 = vpop.eup %252 }
  0xfd   :  { %v158_v41 = vmul.f32 %v253_v39, %v88_v38  ;;  %v161_v42 = vadd.f32 %v159_v36, %v157_v37 }
  0xff   :  { %v165_v43 = vsel %vm46_vm1, %v161_v42, 0.0  ;;  %v162_v44 = vadd.f32 %v160_v40, %v158_v41 }
 0x100   :  { %166 = vadd.xlane.f32.xlu0 %v165_v43 }
 0x101   :  { %v168_v45 = vsel %vm46_vm1, %v162_v44, 0.0 }
 0x104   :  { %169 = vadd.xlane.f32.xlu0 %v168_v45 }
 0x18d   :  { %v167_v46 = vpop.xlane.xlu0 %166 }
 0x18e   :  { %v172_v47 = vmul.f32 0.03125, %v167_v46 }
 0x190   :  { %v174_v48 = vsub.f32 %v161_v42, %v172_v47 }
 0x191   :  { %v170_v49 = vpop.xlane.xlu0 %169 }
 0x192   :  { %v173_v50 = vmul.f32 0.03125, %v170_v49  ;;  %v176_v51 = vmul.f32 %v174_v48, %v174_v48 }
 0x194   :  { %v175_v52 = vsub.f32 %v162_v44, %v173_v50  ;;  %v178_v53 = vsel %vm46_vm1, %v176_v51, 0.0 }
 0x195   :  { %179 = vadd.xlane.f32.xlu1 %v178_v53 }
 0x196   :  { %v177_v54 = vmul.f32 %v175_v52, %v175_v52 }
 0x198   :  { %v181_v55 = vsel %vm46_vm1, %v177_v54, 0.0 }
 0x199   :  { %182 = vadd.xlane.f32.xlu1 %v181_v55 }
 0x222   :  { %v180_v56 = vpop.xlane.xlu1 %179 }
 0x223   :  { %v184_v57 = vmul.f32 0.03125, %v180_v56 }
 0x225   :  { %v186_v58 = vadd.f32 1e-05, %v184_v57 }
 0x226   :  { %v183_v59 = vpop.xlane.xlu1 %182 }
 0x227   :  { %254 = vrsqrt.f32 %v186_v58  ;;  %v185_v60 = vmul.f32 0.03125, %v183_v59 }
 0x229   :  { %v187_v61 = vadd.f32 1e-05, %v185_v60 }
 0x22b   :  { %256 = vrsqrt.f32 %v187_v61 }
 0x231   :  { %v255_v62 = vpop.eup %254 }
 0x232   :  { %v190_v0 = vmul.f32 %v255_v62, %v174_v48 }
 0x234   :  { %v198_v2 = vmul.f32 %v220_v63, %v190_v0 }
 0x235   :  { %v257_v3 = vpop.eup %256 }
 0x236   :  { %v206_v4 = vadd.f32 %v221_v1, %v198_v2  ;;  %v191_v5 = vmul.f32 %v257_v3, %v175_v52 }
 0x238   :  { %208 = vst.msk [vmem:[%s375_s8] sm:$0xff] %vm46_vm1, %v206_v4  ;;  %v199_v6 = vmul.f32 %v220_v63, %v191_v5 }
 0x23a   :  { %v207_v7 = vadd.f32 %v221_v1, %v199_v6 }
 0x23c   :  { %209 = vst.msk [vmem:[%s375_s8 + $0x8] sm:$0xff] %vm46_vm1, %v207_v7 }

// kernel: transformer_v2_forward.63
= control target key start
LH: loop header
LB: loop body
LE: loop exit
PB: predicated region body
PF: predicated region fallthrough
CT: control target
= control target key end

     0   :  { %v116_v0 = vmov 0.0   ;;  %vm117_vm0 = vmmov 0   ;;  %vm32_vm1 = vcmask 261120   ;;  %s165_s1 = inlined_call_operand.vmem [shape: f32[32,128], index: 1, kind: input, shape index: {}]   ;;  %s166_s0 = inlined_call_operand.vmem [shape: f32[16,32], index: 0, kind: input, shape index: {}]   ;;  %s167_s2 = inlined_call_operand.vmem [shape: f32[1,128], index: 2, kind: input, shape index: {}]   ;;  %s168_s3 = inlined_call_operand.vmem [shape: f32[16,128], index: 3, kind: output, shape index: {}]  }
   0x1   :  { %106 = vmatprep.subr.bf16.mxu0 %v116_v0  ;;  %v26_v1 = vld [vmem:[%s165_s1] sm:$0xff]  ;;  %v27_v2 = vld [vmem:[%s165_s1 + $0x8] sm:$0xff]  ;;  %v28_v3 = vld [vmem:[%s165_s1 + $0x10] sm:$0xff]  ;;  %110 = vmatprep.mubr.msk.bf16.mxu0 %vm117_vm0, %v116_v0 }
   0x2   :  { %v30_v4 = vpack.c.bf16 %v27_v2, %v26_v1  ;;  %v29_v5 = vld [vmem:[%s165_s1 + $0x18] sm:$0xff]  ;;  %v23_v7 = vld [vmem:[%s166_s0] sm:$0xff]  ;;  %v24_v8 = vld [vmem:[%s166_s0 + $0x8] sm:$0xff] }
   0x3   :  { %v31_v6 = vpack.c.bf16 %v29_v5, %v28_v3  ;;  %v25_v9 = vpack.c.bf16 %v24_v8, %v23_v7  ;;  %v102_v10 = vld [vmem:[%s167_s2] ss:$0 sm:$0xff] }
   0x4   :  { %107 = vmatpush3.bf16.msra.mxu0 %v30_v4 }
   0x5   :  { %108 = vmatprep.subr.bf16.mxu0 %v116_v0 }
   0x8   :  { %109 = vmatpush3.bf16.msra.mxu0 %v31_v6 }
   0xb   :  { %111 = vmatmul.mubr.msk.bf16.vlgmr.msra.gmra.mrb[0].mxu0 %vm32_vm1, %v25_v9 }
  0xde   :  { %v70_v11 = vpop.f32.mrb[0].mxu0 }
  0xdf   :  { %v93_v12 = vadd.f32 %v102_v10, %v70_v11  ;;  %v112_v13 = vpop.f32.mrb[1].mxu0 }
  0xe0   :  { %v73_v14 = vpop.f32.mrb[2].mxu0 }
  0xe1   :  { %95 = vst [vmem:[%s168_s3] sm:$0xff] %v93_v12  ;;  %v94_v15 = vadd.f32 %v102_v10, %v73_v14  ;;  %v113_v16 = vpop.f32.mrb[3].mxu0 }
  0xe3   :  { %96 = vst [vmem:[%s168_s3 + $0x8] sm:$0xff] %v94_v15 }

// kernel: transformer_v2_forward.48
= control target key start
LH: loop header
LB: loop body
LE: loop exit
PB: predicated region body
PF: predicated region fallthrough
CT: control target
= control target key end

     0   :  { %s1134_s12 = smov 0   ;;  %s1136_s13 = smov 0   ;;  %s1323_s0 = inlined_call_operand.vmem [shape: f32[2,4,8,8], index: 0, kind: input, shape index: {}]   ;;  %s1324_s1 = inlined_call_operand.vmem [shape: f32[2,4,8,8], index: 1, kind: input, shape index: {}]   ;;  %s1325_s2 = inlined_call_operand.vmem [shape: f32[2,4,8,8], index: 2, kind: input, shape index: {}]   ;;  %s1326_s3 = inlined_call_operand.vmem [shape: f32[2,4,8,8], index: 3, kind: output, shape index: {}]  }
   0x1   :  { %s1138_s14 = smov 0  }
   0x2 LB: > { %s25_s15 = sadd.s32 1, %s1104_s13  ;;  %p945_p0 = scmp.ge.s32.totalorder %s1108_s14, 1  ;;  %s1108_s14 = sphi %s1138_s14, %s13_s14   ;;  %s1104_s13 = sphi %s1136_s13, %s1328_s13   ;;  %s1100_s12 = sphi %s1134_s12, %s1327_s12  }
   0x3   : > { %p27_p1 = scmp.ge.s32.totalorder %s25_s15, 2  ;;  %p179_p2 = scmp.lt.s32.totalorder %s1108_s14, 3 }
   0x5   : > { %s1330_s15 = smov (%p27_p1, %s25_s15), 0  ;;  %p180_p3 = pnand %p945_p0, %p179_p2 }
   0x6   : > { %p219_p4 = scmp.lt.s32.totalorder (!%p180_p3), %s1100_s12, 1  ;;  %vm259_vm0 = vcmask (!%p180_p3), 64512   ;;  %v1110_v0 = vmov (!%p180_p3), 0.0   ;;  %vm1111_vm1 = vmmov (!%p180_p3), 0   ;;  %vm250_vm2 = vcmask (!%p180_p3), 7168  }
   0x7   : > { %183 = sbr.rel (%p180_p3) target bundleno = 835 (0x343), region = 32  ;;  %984 = vmatprep.subr.bf16.mxu0 (!%p180_p3), %v1110_v0  ;;  %260 = vst.msk [vmem:[#allocation4] sm:$0xff] (!%p180_p3), %vm259_vm0, %v1110_v0  ;;  %261 = vst.msk [vmem:[#allocation4 + $0x8] sm:$0xff] (!%p180_p3), %vm259_vm0, %v1110_v0  ;;  %990 = vmatprep.subr.bf16.mxu1 (!%p180_p3), %v1110_v0  ;;  %v1112_v25 = vmov (!%p180_p3), -1e+30   ;;  %v1113_v46 = vmov (!%p180_p3), 0  }
   0x8   : > { %262 = vst.msk [vmem:[#allocation4 + $0x10] sm:$0xff] (!%p180_p3), %vm259_vm0, %v1110_v0  ;;  %263 = vst.msk [vmem:[#allocation4 + $0x18] sm:$0xff] (!%p180_p3), %vm259_vm0, %v1110_v0  ;;  %986 = vmatprep.mubr.msk.bf16.mxu0 (!%p180_p3), %vm1111_vm1, %v1110_v0  ;;  %992 = vmatprep.mubr.msk.bf16.mxu1 (!%p180_p3), %vm1111_vm1, %v1110_v0  ;;  %vm605_vm3 = vcmask (!%p180_p3), 1043456  }
   0x9   : > { %251 = vst.msk [vmem:[#allocation2] sm:$0xff] (!%p180_p3), %vm250_vm2, %v1112_v25  ;;  %252 = vst.msk [vmem:[#allocation2 + $0x8] sm:$0xff] (!%p180_p3), %vm250_vm2, %v1112_v25  ;;  %1060 = vset.pattern.permute.xlu0 (!%p180_p3), %v1113_v46  ;;  %1061 = vset.pattern.permute.xlu1 (!%p180_p3), %v1113_v46 }
   0xa   : > { %253 = vst.msk [vmem:[#allocation2 + $0x10] sm:$0xff] (!%p180_p3), %vm250_vm2, %v1112_v25  ;;  %254 = vst.msk [vmem:[#allocation2 + $0x18] sm:$0xff] (!%p180_p3), %vm250_vm2, %v1112_v25 }
   0xb   : > { %255 = vst.msk [vmem:[#allocation3] sm:$0xff] (!%p180_p3), %vm250_vm2, %v1110_v0  ;;  %256 = vst.msk [vmem:[#allocation3 + $0x8] sm:$0xff] (!%p180_p3), %vm250_vm2, %v1110_v0 }
   0xc   : > { %257 = vst.msk [vmem:[#allocation3 + $0x10] sm:$0xff] (!%p180_p3), %vm250_vm2, %v1110_v0  ;;  %258 = vst.msk [vmem:[#allocation3 + $0x18] sm:$0xff] (!%p180_p3), %vm250_vm2, %v1110_v0 }
   0xe   : > { %s1332_s12 = smov (!%p219_p4, %s1100_s12), 1 }
   0xf   : > { %s1166_s16 = sshll.u32 %s1332_s12, 5 }
  0x10   : > { %s231_s19 = scalar_lea.vmem %s1324_s1, %s1166_s16  ;;  %s223_s22 = scalar_lea.vmem %s1323_s0, %s1166_s16  ;;  %v1224_v47 = vld [vmem:[#allocation2] sm:$0xff]  ;;  %v1229_v50 = vld [vmem:[#allocation2 + $0x8] sm:$0xff] }
  0x11   : > { %v276_v1 = vld [vmem:[%s231_s19] sm:$0xff]  ;;  %v277_v2 = vld [vmem:[%s231_s19 + $0x8] sm:$0xff]  ;;  %v278_v7 = vld [vmem:[%s231_s19 + $0x10] sm:$0xff]  ;;  %s239_s25 = scalar_lea.vmem %s1325_s2, %s1166_s16  ;;  %s244_s28 = scalar_lea.vmem %s1326_s3, %s1166_s16 }
  0x12   : > { %v264_v3 = vld [vmem:[%s223_s22] sm:$0xff]  ;;  %v280_v4 = vpack.c.bf16 %v276_v1, %v276_v1  ;;  %v281_v5 = vpack.c.bf16 %v277_v2, %v277_v2  ;;  %v265_v6 = vld [vmem:[%s223_s22 + $0x8] sm:$0xff]  ;;  %v279_v8 = vld [vmem:[%s231_s19 + $0x18] sm:$0xff]  ;;  %v282_v13 = vpack.c.bf16 %v278_v7, %v278_v7 }
  0x13   : > { %v268_v11 = vmul.f32 0.35355338, %v264_v3  ;;  %v269_v12 = vmul.f32 0.35355338, %v265_v6  ;;  %v283_v14 = vpack.c.bf16 %v279_v8, %v279_v8  ;;  %v266_v17 = vld [vmem:[%s223_s22 + $0x10] sm:$0xff]  ;;  %v267_v18 = vld [vmem:[%s223_s22 + $0x18] sm:$0xff] }
  0x14   : > { %v289_v9 = vsel %vm259_vm0, %v280_v4, 0  ;;  %v335_v10 = vsel %vm259_vm0, %v281_v5, 0  ;;  %v381_v19 = vsel %vm259_vm0, %v282_v13, 0  ;;  %v270_v21 = vmul.f32 0.35355338, %v266_v17  ;;  %v1239_v54 = vld [vmem:[#allocation2 + $0x10] sm:$0xff] }
  0x15   : > { %985 = vmatpush3.bf16.xpose.msra.mxu0 %v289_v9  ;;  %991 = vmatpush3.bf16.xpose.msra.mxu1 %v335_v10  ;;  %v272_v15 = vpack.c.bf16 %v268_v11, %v268_v11  ;;  %v273_v16 = vpack.c.bf16 %v269_v12, %v269_v12  ;;  %v427_v20 = vsel %vm259_vm0, %v283_v14, 0  ;;  %v271_v22 = vmul.f32 0.35355338, %v267_v18  ;;  %v1249_v58 = vld [vmem:[#allocation2 + $0x18] sm:$0xff]  ;;  %v594_v62 = vld [vmem:[%s239_s25] sm:$0xff]  ;;  %v595_v3 = vld [vmem:[%s239_s25 + $0x8] sm:$0xff] }
  0x16   : > { %996 = vmatprep.subr.bf16.mxu0 %v1110_v0  ;;  %1002 = vmatprep.subr.bf16.mxu1 %v1110_v0  ;;  %v274_v23 = vpack.c.bf16 %v270_v21, %v270_v21  ;;  %v598_v63 = vpack.c.bf16 %v594_v62, %v594_v62  ;;  %v599_v4 = vpack.c.bf16 %v595_v3, %v595_v3  ;;  %v596_v6 = vld [vmem:[%s239_s25 + $0x10] sm:$0xff]  ;;  %v597_v9 = vld [vmem:[%s239_s25 + $0x18] sm:$0xff]  ;;  %v534_v46 = vld [vmem:[#allocation3 + $0x8] sm:$0xff] }
  0x17   : > { %v275_v24 = vpack.c.bf16 %v271_v22, %v271_v22  ;;  %v600_v7 = vpack.c.bf16 %v596_v6, %v596_v6  ;;  %v601_v10 = vpack.c.bf16 %v597_v9, %v597_v9 }
  0x18   : > { %v607_v2 = vsel %vm605_vm3, %v598_v63, 0  ;;  %v653_v5 = vsel %vm605_vm3, %v599_v4, 0  ;;  %v562_v4 = vld [vmem:[#allocation4] sm:$0xff] }
  0x19   : > { %v699_v8 = vsel %vm605_vm3, %v600_v7, 0  ;;  %v745_v11 = vsel %vm605_vm3, %v601_v10, 0  ;;  %v563_v7 = vld [vmem:[#allocation4 + $0x8] sm:$0xff] }
  0x1c   : > { %987 = vmatmul.mubr.msk.bf16.vlgmr.msra.gmra.mrb[0].mxu0 %vm259_vm0, %v272_v15  ;;  %993 = vmatmul.mubr.msk.bf16.vlgmr.msra.gmra.mrb[0].mxu1 %vm259_vm0, %v273_v16 }
  0x1d   : > { %997 = vmatpush3.bf16.xpose.msra.mxu0 %v381_v19  ;;  %1003 = vmatpush3.bf16.xpose.msra.mxu1 %v427_v20 }
  0x1e   : > { %998 = vmatprep.mubr.msk.bf16.mxu0 %vm1111_vm1, %v1110_v0  ;;  %1004 = vmatprep.mubr.msk.bf16.mxu1 %vm1111_vm1, %v1110_v0 }
  0x1f   : > { %1008 = vmatprep.subr.bf16.mxu0 %v1110_v0  ;;  %1014 = vmatprep.subr.bf16.mxu1 %v1110_v0 }
  0x24   : > { %999 = vmatmul.mubr.msk.bf16.vlgmr.msra.gmra.mrb[4].mxu0 %vm259_vm0, %v274_v23  ;;  %1005 = vmatmul.mubr.msk.bf16.vlgmr.msra.gmra.mrb[4].mxu1 %vm259_vm0, %v275_v24 }
  0x25   : > { %1010 = vmatprep.mubr.msk.bf16.mxu0 %vm1111_vm1, %v1110_v0  ;;  %1016 = vmatprep.mubr.msk.bf16.mxu1 %vm1111_vm1, %v1110_v0 }
  0x26   : > { %1009 = vmatpush3.bf16.msra.mxu0 %v607_v2  ;;  %1015 = vmatpush3.bf16.msra.mxu1 %v653_v5 }
  0x27   : > { %1020 = vmatprep.subr.bf16.mxu0 %v1110_v0  ;;  %1026 = vmatprep.subr.bf16.mxu1 %v1110_v0 }
  0xef   : > { %v1208_v26 = vpop.f32.mrb[0].mxu0  ;;  %v1210_v27 = vpop.f32.mrb[0].mxu1 }
  0xf0   : > { %v988_v28 = vpop.f32.mrb[1].mxu0  ;;  %v473_v29 = vsel %vm259_vm0, %v1208_v26, -inf  ;;  %v994_v30 = vpop.f32.mrb[1].mxu1  ;;  %v476_v35 = vsel %vm259_vm0, %v1210_v27, -inf }
  0xf1   : > { %474 = vmax.xlane.f32.xlu0 %v473_v29  ;;  %v328_v31 = vpop.f32.mrb[2].mxu0  ;;  %v374_v32 = vpop.f32.mrb[2].mxu1 }
  0xf2   : > { %v989_v33 = vpop.f32.mrb[3].mxu0  ;;  %v995_v34 = vpop.f32.mrb[3].mxu1 }
  0xf5   : > { %477 = vmax.xlane.f32.xlu0 %v476_v35 }
  0xf7   : > { %v1216_v36 = vpop.f32.mrb[4].mxu0  ;;  %v1218_v37 = vpop.f32.mrb[4].mxu1 }
  0xf8   : > { %v1000_v38 = vpop.f32.mrb[5].mxu0  ;;  %v479_v39 = vsel %vm259_vm0, %v1216_v36, -inf  ;;  %v1006_v40 = vpop.f32.mrb[5].mxu1  ;;  %v482_v45 = vsel %vm259_vm0, %v1218_v37, -inf }
  0xf9   : > { %480 = vmax.xlane.f32.xlu1 %v479_v39  ;;  %v420_v41 = vpop.f32.mrb[6].mxu0  ;;  %v466_v42 = vpop.f32.mrb[6].mxu1 }
  0xfa   : > { %v1001_v43 = vpop.f32.mrb[7].mxu0  ;;  %v1007_v44 = vpop.f32.mrb[7].mxu1 }
  0xfb   : > { %v533_v43 = vld [vmem:[#allocation3] sm:$0xff] }
  0xfd   : > { %483 = vmax.xlane.f32.xlu1 %v482_v45 }
 0x17e   : > { %v475_v48 = vpop.xlane.xlu0 %474 }
 0x17f   : > { %v1227_v49 = vmax.f32 %v1224_v47, %v475_v48 }
 0x181   : > { %v489_v51 = vsub.f32 %v1224_v47, %v1227_v49  ;;  %795 = vst.msk [vmem:[#allocation2] sm:$0xff] %vm250_vm2, %v1227_v49  ;;  %503 = vperm.xlu0 %1060, %v1227_v49  }
 0x182   : > { %v478_v52 = vpop.xlane.xlu0 %477 }
 0x183   : > { %v1237_v53 = vmax.f32 %v1229_v50, %v478_v52 }
 0x185   : > { %v490_v55 = vsub.f32 %v1229_v50, %v1237_v53  ;;  %796 = vst.msk [vmem:[#allocation2 + $0x8] sm:$0xff] %vm250_vm2, %v1237_v53  ;;  %508 = vperm.xlu1 %1061, %v1237_v53   ;;  %v535_v50 = vld [vmem:[#allocation3 + $0x10] sm:$0xff] }
 0x186   : > { %v481_v56 = vpop.xlane.xlu1 %480 }
 0x187   : > { %v1247_v57 = vmax.f32 %v1239_v54, %v481_v56  ;;  %v495_v34 = vmul.f32 1.442695, %v490_v55 }
 0x189   : > { %v491_v59 = vsub.f32 %v1239_v54, %v1247_v57  ;;  %797 = vst.msk [vmem:[#allocation2 + $0x10] sm:$0xff] %vm250_vm2, %v1247_v57  ;;  %513 = vperm.xlu1 %1061, %v1247_v57   ;;  %v536_v54 = vld [vmem:[#allocation3 + $0x18] sm:$0xff] }
 0x18a   : > { %v484_v60 = vpop.xlane.xlu1 %483 }
 0x18b   : > { %v1261_v61 = vmax.f32 %v1249_v58, %v484_v60 }
 0x18d   : > { %v492_v1 = vsub.f32 %v1249_v58, %v1261_v61  ;;  %798 = vst.msk [vmem:[#allocation2 + $0x18] sm:$0xff] %vm250_vm2, %v1261_v61  ;;  %518 = vperm.xlu1 %1061, %v1261_v61  }
 0x18f   : > { %v499_v38 = vmul.f32 1.442695, %v492_v1 }
 0x200   : > { %v504_v12 = vpop.permute.xlu0 %503 }
 0x201   : > { %v521_v13 = vsub.f32 %v1208_v26, %v504_v12 }
 0x203   : > { %v525_v14 = vmul.f32 1.442695, %v521_v13 }
 0x204   : > { %v509_v15 = vpop.permute.xlu1 %508 }
 0x205   : > { %1062 = vpow2.f32 %v525_v14  ;;  %v522_v16 = vsub.f32 %v1210_v27, %v509_v15 }
 0x207   : > { %v527_v17 = vmul.f32 1.442695, %v522_v16  ;;  %v564_v16 = vld [vmem:[#allocation4 + $0x10] sm:$0xff] }
 0x208   : > { %v514_v18 = vpop.permute.xlu1 %513 }
 0x209   : > { %1064 = vpow2.f32 %v527_v17  ;;  %v523_v19 = vsub.f32 %v1216_v36, %v514_v18 }
 0x20b   : > { %v529_v20 = vmul.f32 1.442695, %v523_v19 }
 0x20c   : > { %v519_v21 = vpop.permute.xlu1 %518 }
 0x20d   : > { %1066 = vpow2.f32 %v529_v20  ;;  %v524_v22 = vsub.f32 %v1218_v37, %v519_v21  ;;  %v497_v37 = vmul.f32 1.442695, %v491_v59 }
 0x20f   : > { %v1063_v23 = vpop.eup %1062  ;;  %v531_v24 = vmul.f32 1.442695, %v524_v22 }
 0x210   : > { %v541_v25 = vsel %vm259_vm0, %v1063_v23, 0.0  ;;  %v590_v26 = vpack.c.bf16 %v1063_v23, %v1063_v23  ;;  %v565_v23 = vld [vmem:[#allocation4 + $0x18] sm:$0xff] }
 0x211   : > { %1068 = vpow2.f32 %v531_v24  ;;  %542 = vadd.xlane.f32.xlu1 %v541_v25 }
 0x212   : > { %1011 = vmatmul.mubr.msk.bf16.vlgmr.msra.gmra.mrb[8].mxu0 %vm259_vm0, %v590_v26  ;;  %1070 = vpow2.f32 %v495_v34 }
 0x213   : > { %v1065_v27 = vpop.eup %1064  ;;  %1021 = vmatpush3.bf16.msra.mxu0 %v699_v8  ;;  %1022 = vmatprep.mubr.msk.bf16.mxu0 %vm1111_vm1, %v1110_v0 }
 0x214   : > { %v544_v28 = vsel %vm259_vm0, %v1065_v27, 0.0  ;;  %v591_v29 = vpack.c.bf16 %v1065_v27, %v1065_v27 }
 0x215   : > { %545 = vadd.xlane.f32.xlu0 %v544_v28 }
 0x216   : > { %1017 = vmatmul.mubr.msk.bf16.vlgmr.msra.gmra.mrb[8].mxu1 %vm259_vm0, %v591_v29 }
 0x217   : > { %v1067_v30 = vpop.eup %1066  ;;  %1027 = vmatpush3.bf16.msra.mxu1 %v745_v11  ;;  %1028 = vmatprep.mubr.msk.bf16.mxu1 %vm1111_vm1, %v1110_v0  ;;  %v493_v0 = vmul.f32 1.442695, %v489_v51 }
 0x218   : > { %v547_v31 = vsel %vm259_vm0, %v1067_v30, 0.0  ;;  %v592_v32 = vpack.c.bf16 %v1067_v30, %v1067_v30 }
 0x219   : > { %548 = vadd.xlane.f32.xlu1 %v547_v31  ;;  %1072 = vpow2.f32 %v493_v0 }
 0x21a   : > { %1023 = vmatmul.mubr.msk.bf16.vlgmr.msra.gmra.mrb[12].mxu0 %vm259_vm0, %v592_v32  ;;  %1074 = vpow2.f32 %v497_v37 }
 0x21b   : > { %v1069_v33 = vpop.eup %1068  ;;  %1076 = vpow2.f32 %v499_v38 }
 0x21c   : > { %v550_v35 = vsel %vm259_vm0, %v1069_v33, 0.0  ;;  %v593_v36 = vpack.c.bf16 %v1069_v33, %v1069_v33  ;;  %v1071_v39 = vpop.eup %1070 }
 0x21d   : > { %551 = vadd.xlane.f32.xlu1 %v550_v35  ;;  %v538_v48 = vmul.f32 %v1071_v39, %v534_v46 }
 0x21e   : > { %1029 = vmatmul.mubr.msk.bf16.vlgmr.msra.gmra.mrb[12].mxu1 %vm259_vm0, %v593_v36 }
 0x223   : > { %v1073_v40 = vpop.eup %1072 }
 0x224   : > { %v1075_v41 = vpop.eup %1074  ;;  %v537_v44 = vmul.f32 %v1073_v40, %v533_v43 }
 0x225   : > { %v1077_v42 = vpop.eup %1076  ;;  %v539_v52 = vmul.f32 %v1075_v41, %v535_v50 }
 0x226   : > { %v540_v57 = vmul.f32 %v1077_v42, %v536_v54 }
 0x22b   : > { %573 = vperm.xlu0 %1060, %v1071_v39  }
 0x22e   : > { %568 = vperm.xlu1 %1061, %v1073_v40  }
 0x232   : > { %578 = vperm.xlu1 %1061, %v1075_v41  }
 0x236   : > { %583 = vperm.xlu1 %1061, %v1077_v42  }
 0x29e   : > { %v543_v45 = vpop.xlane.xlu1 %542 }
 0x29f   : > { %v553_v47 = vadd.f32 %v543_v45, %v537_v44 }
 0x2a1   : > { %558 = vst.msk [vmem:[#allocation3] sm:$0xff] %vm250_vm2, %v553_v47 }
 0x2a2   : > { %v546_v49 = vpop.xlane.xlu0 %545 }
 0x2a3   : > { %v554_v51 = vadd.f32 %v546_v49, %v538_v48 }
 0x2a5   : > { %559 = vst.msk [vmem:[#allocation3 + $0x8] sm:$0xff] %vm250_vm2, %v554_v51 }
 0x2a6   : > { %v549_v53 = vpop.xlane.xlu1 %548 }
 0x2a7   : > { %v555_v55 = vadd.f32 %v549_v53, %v539_v52 }
 0x2a8   : > { %v806_v56 = vld [vmem:[#allocation3] sm:$0xff] }
 0x2a9   : > { %560 = vst.msk [vmem:[#allocation3 + $0x10] sm:$0xff] %vm250_vm2, %v555_v55  ;;  %1078 = vrcp.f32 %v806_v56 }
 0x2aa   : > { %v552_v58 = vpop.xlane.xlu1 %551  ;;  %v574_v8 = vpop.permute.xlu0 %573 }
 0x2ab   : > { %v556_v59 = vadd.f32 %v552_v58, %v540_v57  ;;  %v587_v14 = vmul.f32 %v574_v8, %v563_v7 }
 0x2ac   : > { %v807_v60 = vld [vmem:[#allocation3 + $0x8] sm:$0xff] }
 0x2ad   : > { %561 = vst.msk [vmem:[#allocation3 + $0x18] sm:$0xff] %vm250_vm2, %v556_v59  ;;  %1080 = vrcp.f32 %v807_v60 }
 0x2ae   : > { %v569_v5 = vpop.permute.xlu1 %568 }
 0x2af   : > { %v586_v6 = vmul.f32 %v569_v5, %v562_v4 }
 0x2b0   : > { %v808_v61 = vld [vmem:[#allocation3 + $0x10] sm:$0xff] }
 0x2b1   : > { %1082 = vrcp.f32 %v808_v61 }
 0x2b2   : > { %v579_v12 = vpop.permute.xlu1 %578 }
 0x2b3   : > { %v1079_v62 = vpop.eup %1078  ;;  %v588_v21 = vmul.f32 %v579_v12, %v564_v16 }
 0x2b4   : > { %816 = vperm.xlu1 %1061, %v1079_v62   ;;  %v809_v63 = vld [vmem:[#allocation3 + $0x18] sm:$0xff] }
 0x2b5   : > { %1084 = vrcp.f32 %v809_v63 }
 0x2b6   : > { %v584_v24 = vpop.permute.xlu1 %583 }
 0x2b7   : > { %v1081_v1 = vpop.eup %1080  ;;  %v589_v29 = vmul.f32 %v584_v24, %v565_v23 }
 0x2b8   : > { %821 = vperm.xlu0 %1060, %v1081_v1  }
 0x2bb   : > { %v1083_v2 = vpop.eup %1082 }
 0x2bc   : > { %826 = vperm.xlu1 %1061, %v1083_v2  }
 0x2bf   : > { %v1085_v3 = vpop.eup %1084 }
 0x2c0   : > { %831 = vperm.xlu0 %1060, %v1085_v3  }
 0x2e5   : > { %v643_v9 = vpop.f32.mrb[8].mxu0 }
 0x2e6   : > { %v787_v10 = vadd.f32 %v643_v9, %v586_v6  ;;  %v1012_v11 = vpop.f32.mrb[9].mxu0 }
 0x2e7   : > { %v646_v13 = vpop.f32.mrb[10].mxu0 }
 0x2e8   : > { %791 = vst.msk [vmem:[#allocation4] sm:$0xff] %vm259_vm0, %v787_v10  ;;  %v1013_v15 = vpop.f32.mrb[11].mxu0 }
 0x2e9   : > { %v689_v17 = vpop.f32.mrb[8].mxu1 }
 0x2ea   : > { %v788_v18 = vadd.f32 %v689_v17, %v587_v14  ;;  %v1018_v19 = vpop.f32.mrb[9].mxu1 }
 0x2eb   : > { %v692_v20 = vpop.f32.mrb[10].mxu1 }
 0x2ec   : > { %792 = vst.msk [vmem:[#allocation4 + $0x8] sm:$0xff] %vm259_vm0, %v788_v18  ;;  %v1019_v22 = vpop.f32.mrb[11].mxu1 }
 0x2ed   : > { %v735_v25 = vpop.f32.mrb[12].mxu0 }
 0x2ee   : > { %v789_v26 = vadd.f32 %v735_v25, %v588_v21  ;;  %v1024_v27 = vpop.f32.mrb[13].mxu0 }
 0x2ef   : > { %v738_v28 = vpop.f32.mrb[14].mxu0  ;;  %v802_v0 = vld [vmem:[#allocation4] sm:$0xff] }
 0x2f0   : > { %793 = vst.msk [vmem:[#allocation4 + $0x10] sm:$0xff] %vm259_vm0, %v789_v26  ;;  %v1025_v30 = vpop.f32.mrb[15].mxu0 }
 0x2f1   : > { %v781_v31 = vpop.f32.mrb[12].mxu1 }
 0x2f2   : > { %v790_v32 = vadd.f32 %v781_v31, %v589_v29  ;;  %v1030_v33 = vpop.f32.mrb[13].mxu1 }
 0x2f3   : > { %v784_v34 = vpop.f32.mrb[14].mxu1  ;;  %v803_v38 = vld [vmem:[#allocation4 + $0x8] sm:$0xff] }
 0x2f4   : > { %794 = vst.msk [vmem:[#allocation4 + $0x18] sm:$0xff] %vm259_vm0, %v790_v32  ;;  %v1031_v35 = vpop.f32.mrb[15].mxu1 }
 0x2f7   : > { %v804_v42 = vld [vmem:[#allocation4 + $0x10] sm:$0xff] }
 0x2fb   : > { %v805_v45 = vld [vmem:[#allocation4 + $0x18] sm:$0xff] }
 0x333   : > { %v817_v36 = vpop.permute.xlu1 %816 }
 0x334   : > { %v834_v37 = vmul.f32 %v817_v36, %v802_v0 }
 0x336   : > { %838 = vst.msk [vmem:[%s244_s28] sm:$0xff] %vm259_vm0, %v834_v37 }
 0x337   : > { %v822_v39 = vpop.permute.xlu0 %821 }
 0x338   : > { %v835_v40 = vmul.f32 %v822_v39, %v803_v38 }
 0x33a   : > { %839 = vst.msk [vmem:[%s244_s28 + $0x8] sm:$0xff] %vm259_vm0, %v835_v40 }
 0x33b   : > { %v827_v41 = vpop.permute.xlu1 %826 }
 0x33c   : > { %v836_v43 = vmul.f32 %v827_v41, %v804_v42 }
 0x33e   : > { %840 = vst.msk [vmem:[%s244_s28 + $0x10] sm:$0xff] %vm259_vm0, %v836_v43 }
 0x33f   : > { %v832_v44 = vpop.permute.xlu0 %831 }
 0x340   : > { %v837_v46 = vmul.f32 %v832_v44, %v805_v45 }
 0x342   : > { %841 = vst.msk [vmem:[%s244_s28 + $0x18] sm:$0xff] %vm259_vm0, %v837_v46 }
 0x343 PF: > { %s13_s14 = sadd.s32 1, %s1108_s14   ;;  %s1327_s12 = smov %s1104_s13 }
 0x344   : > { %p10_p5 = scmp.ge.s32.totalorder %s13_s14, 4   ;;  %s1328_s13 = smov %s1330_s15 }
 0x346   :  { %12 = sbr.rel (!%p10_p5) target bundleno = 2 (0x2), region = 76 }

</bundles_post_ra>
